<compile_context>
chip_gen: v5e
topology: v5e:2x2
jax: 0.10.0
libtpu: 0.0.40
codegen_flags: <defaults>
</compile_context>

<pallas_src>
import functools

import numpy as np
import jax
import jax.numpy as jnp
from jax.experimental import pallas as pl
from jax.experimental.pallas import tpu as pltpu

BN_EPS = 1e-5


def _bilinear_matrix_align_corners(n_in: int, scale: int) -> np.ndarray:
    """Interpolation matrix for nn.UpsamplingBilinear2d (align_corners=True)."""
    n_out = n_in * scale
    m = np.zeros((n_out, n_in), dtype=np.float32)
    if n_out == 1 or n_in == 1:
        m[:, 0] = 1.0
        return m
    for i in range(n_out):
        src = i * (n_in - 1) / (n_out - 1)
        i0 = int(np.floor(src))
        i1 = min(i0 + 1, n_in - 1)
        t = src - i0
        m[i, i0] += 1.0 - t
        m[i, i1] += t
    return m


def _fused_upsample_kernel(x_ref, mwt_ref, mhb_ref, wc_ref, gb_ref, o_ref, *,
                           n, cin, cout, h, w, ho, wo, eps):
    """Single-step fused kernel: bilinear x2 upsample + 1x1 conv + BatchNorm (batch stats).

    x_ref   : (N*Cin*H, W)   f32  VMEM   input, NCHW flattened (free reshape)
    mwt_ref : (W, Wo)        f32  VMEM   width-interp matrix, transposed
    mhb_ref : (N*Cin, Ho, H) f32  VMEM   height-interp matrix, broadcast over N*Cin
    wc_ref  : (Cout, Cin)    f32  SMEM   1x1 conv weight
    gb_ref  : (2, Cout)      f32  SMEM   row 0 = gamma, row 1 = beta
    o_ref   : (N, Cout, Ho, Wo) f32 VMEM output (NCHW)
    """
    # 1) Width interpolation on the MXU: contraction over W only (no kron(Mw, I_Cin)).
    u1 = jnp.dot(x_ref[...], mwt_ref[...],
                 preferred_element_type=jnp.float32)            # (N*Cin*H, Wo)

    # 2) Height interpolation on the MXU as a batched matmul over (n, c): contracts H only.
    u1 = u1.reshape(n * cin, h, wo)                             # leading-dim split (free)
    u2 = jnp.einsum('boh,bhw->bow', mhb_ref[...], u1,
                    preferred_element_type=jnp.float32)         # (N*Cin, Ho, Wo)

    # 3) 1x1 conv (contraction over Cin only, unrolled on the VPU) fused with
    #    training-mode BatchNorm; normalized output is written once, directly in NCHW.
    #    Conv bias omitted: it cancels exactly against the BN mean subtraction.
    inv_count = 1.0 / float(n * ho * wo)
    for k in range(cout):
        tiles = []
        s = jnp.zeros((1, 1), jnp.float32)
        ss = jnp.zeros((1, 1), jnp.float32)
        for ni in range(n):
            base = ni * cin
            acc = wc_ref[k, 0] * u2[base]
            for c in range(1, cin):
                acc = acc + wc_ref[k, c] * u2[base + c]
            tiles.append(acc)
            s = s + jnp.sum(acc, keepdims=True)
            ss = ss + jnp.sum(acc * acc, keepdims=True)
        mean = s * inv_count
        var = ss * inv_count - mean * mean
        var = jnp.maximum(var, 0.0)            # guard E[y^2] - E[y]^2 cancellation
        inv_std = jax.lax.rsqrt(var + eps)
        scale = gb_ref[0, k] * inv_std         # gamma_k / sqrt(var_k + eps)
        shift = gb_ref[1, k] - mean * scale    # beta_k - mean_k * scale_k
        for ni in range(n):
            o_ref[ni, k] = tiles[ni] * scale + shift


def upsample_forward(x_nchw, w_conv, b_conv, gamma, beta, *, eps=BN_EPS):
    """UpSample block forward.  b_conv is accepted for interface parity but has provably
    no effect on the output (per-channel constant cancels in BatchNorm)."""
    del b_conv
    n, cin, h, w = x_nchw.shape
    cout = w_conv.shape[0]
    ho, wo = 2 * h, 2 * w
    nc = n * cin

    mh = jnp.asarray(_bilinear_matrix_align_corners(h, 2))       # (Ho, H)
    mw = jnp.asarray(_bilinear_matrix_align_corners(w, 2))       # (Wo, W)

    # Glue (free / tiny): contiguous NCHW reshape, interp matrices, per-channel params.
    x2d = x_nchw.reshape(nc * h, w)                               # (N*Cin*H, W)
    mwt = mw.T                                                    # (W, Wo)
    mhb = jnp.broadcast_to(mh[None], (nc, ho, h))                 # (N*Cin, Ho, H)
    gb = jnp.stack([gamma, beta]).astype(jnp.float32)             # (2, Cout)

    kernel = functools.partial(_fused_upsample_kernel, n=n, cin=cin, cout=cout,
                               h=h, w=w, ho=ho, wo=wo, eps=eps)

    return pl.pallas_call(
        kernel,
        out_shape=jax.ShapeDtypeStruct((n, cout, ho, wo), jnp.float32),
        grid_spec=pltpu.PrefetchScalarGridSpec(
            num_scalar_prefetch=0,
            grid=(1,),                                            # single fused grid step
            in_specs=[
                pl.BlockSpec((nc * h, w), lambda i: (0, 0)),
                pl.BlockSpec((w, wo), lambda i: (0, 0)),
                pl.BlockSpec((nc, ho, h), lambda i: (0, 0, 0)),
                pl.BlockSpec(memory_space=pltpu.MemorySpace.SMEM),   # conv weight (Cout, Cin)
                pl.BlockSpec(memory_space=pltpu.MemorySpace.SMEM),   # [gamma; beta] (2, Cout)
            ],
            out_specs=pl.BlockSpec((n, cout, ho, wo), lambda i: (0, 0, 0, 0)),
        ),
        compiler_params=pltpu.CompilerParams(dimension_semantics=("arbitrary",)),
    )(x2d, mwt, mhb, w_conv.astype(jnp.float32), gb)


def reference(x_nchw, w_conv, b_conv, gamma, beta, eps=BN_EPS):
    """Pure-JAX reference (NCHW), mirrors the PyTorch UpSample module semantics."""
    _, _, h, w = x_nchw.shape
    mh = jnp.asarray(_bilinear_matrix_align_corners(h, 2))
    mw = jnp.asarray(_bilinear_matrix_align_corners(w, 2))
    up = jnp.einsum('oh,nchw,pw->ncop', mh, x_nchw, mw)
    y = jnp.einsum('kc,ncop->nkop', w_conv, up) + b_conv[None, :, None, None]
    mean = y.mean(axis=(0, 2, 3), keepdims=True)
    var = ((y - mean) ** 2).mean(axis=(0, 2, 3), keepdims=True)   # biased, training-mode BN
    yn = (y - mean) / jnp.sqrt(var + eps)
    return yn * gamma[None, :, None, None] + beta[None, :, None, None]


if __name__ == "__main__":
    N, CIN, COUT, H, W = 2, 4, 8, 16, 16

    key = jax.random.PRNGKey(0)
    k_x, k_w, k_b = jax.random.split(key, 3)
    x = jax.random.normal(k_x, (N, CIN, H, W), dtype=jnp.float32)
    # Conv2d(in_ch, out_ch, (1,1)) weight is (out_ch, in_ch, 1, 1); 1x1 spatial dims squeezed.
    w_conv = jax.random.normal(k_w, (COUT, CIN), dtype=jnp.float32) * 0.1
    b_conv = jax.random.normal(k_b, (COUT,), dtype=jnp.float32) * 0.1
    # nn.BatchNorm2d default affine init.
    gamma = jnp.ones((COUT,), dtype=jnp.float32)
    beta = jnp.zeros((COUT,), dtype=jnp.float32)

    out = upsample_forward(x, w_conv, b_conv, gamma, beta)
    out = jax.block_until_ready(out)

    ref = reference(x, w_conv, b_conv, gamma, beta)
    assert out.shape == (N, COUT, 2 * H, 2 * W), out.shape
    if not jnp.allclose(out, ref, atol=2e-3, rtol=2e-3):
        raise AssertionError(
            "mismatch: max abs err = %f" % float(jnp.max(jnp.abs(out - ref))))
    print("KERNEL_OK")
</pallas_src>

<mosaic_0001>
module attributes {stable_mosaic.version = 11 : i64} {
  func.func @_fused_upsample_kernel(%arg0: i32, %arg1: memref<128x16xf32, #tpu.memory_space<vmem>>, %arg2: memref<16x32xf32, #tpu.memory_space<vmem>>, %arg3: memref<8x32x16xf32, #tpu.memory_space<vmem>>, %arg4: memref<8x4xf32, #tpu.memory_space<smem>>, %arg5: memref<2x8xf32, #tpu.memory_space<smem>>, %arg6: memref<2x8x32x32xf32, #tpu.memory_space<vmem>>) attributes {dimension_semantics = [#tpu.dimension_semantics<arbitrary>], iteration_bounds = array<i64: 1>, scalar_prefetch = 0 : i64, scratch_operands = 0 : i64, tpu.core_type = #tpu.core_type<tc>, window_params = [{pipeline_mode = #tpu.pipeline_mode<synchronous>, transform_indices = @transform_0, window_bounds = array<i64: 128, 16>}, {pipeline_mode = #tpu.pipeline_mode<synchronous>, transform_indices = @transform_1, window_bounds = array<i64: 16, 32>}, {pipeline_mode = #tpu.pipeline_mode<synchronous>, transform_indices = @transform_2, window_bounds = array<i64: 8, 32, 16>}, {transform_indices = @transform_3, window_bounds = array<i64: 8, 4>}, {transform_indices = @transform_4, window_bounds = array<i64: 2, 8>}, {pipeline_mode = #tpu.pipeline_mode<synchronous>, transform_indices = @transform_5, window_bounds = array<i64: 2, 8, 32, 32>}]} {
    %c0 = arith.constant 0 : index
    %c0_0 = arith.constant 0 : index
    %0 = vector.load %arg1[%c0, %c0_0] : memref<128x16xf32, #tpu.memory_space<vmem>>, vector<128x16xf32>
    %c0_1 = arith.constant 0 : index
    %c0_2 = arith.constant 0 : index
    %1 = vector.load %arg2[%c0_1, %c0_2] : memref<16x32xf32, #tpu.memory_space<vmem>>, vector<16x32xf32>
    %cst = arith.constant dense<0.000000e+00> : vector<128x32xf32>
    %2 = tpu.matmul %0, %1, %cst {dimension_numbers = #tpu.dot_dimension_numbers<[1], [0], [0], [1], [0, 0, 1, 1], [], []>} : vector<128x16xf32>, vector<16x32xf32>, vector<128x32xf32> -> vector<128x32xf32>
    %3 = vector.shape_cast %2 : vector<128x32xf32> to vector<8x16x32xf32>
    %c0_3 = arith.constant 0 : index
    %c0_4 = arith.constant 0 : index
    %c0_5 = arith.constant 0 : index
    %4 = vector.load %arg3[%c0_3, %c0_4, %c0_5] : memref<8x32x16xf32, #tpu.memory_space<vmem>>, vector<8x32x16xf32>
    "tpu.trace_start"() <{level = 10 : i32, message = "boh,bhw->bow"}> : () -> ()
    %cst_6 = arith.constant dense<0.000000e+00> : vector<8x32x32xf32>
    %5 = tpu.matmul %4, %3, %cst_6 {dimension_numbers = #tpu.dot_dimension_numbers<[2], [1], [1], [2], [0, 0, 0, 1, 1, 2], [0], [0]>} : vector<8x32x16xf32>, vector<8x16x32xf32>, vector<8x32x32xf32> -> vector<8x32x32xf32>
    %cst_7 = arith.constant 0.000000e+00 : f32
    "tpu.trace_stop"() : () -> ()
    %6 = vector.broadcast %cst_7 : f32 to vector<1x1xf32>
    %cst_8 = arith.constant 0.000000e+00 : f32
    %7 = vector.broadcast %cst_8 : f32 to vector<1x1xf32>
    %c0_9 = arith.constant 0 : index
    %c0_10 = arith.constant 0 : index
    %8 = memref.load %arg4[%c0_9, %c0_10] : memref<8x4xf32, #tpu.memory_space<smem>>
    %9 = vector.extract_strided_slice %5 {offsets = [0, 0, 0], sizes = [1, 32, 32], strides = [1, 1, 1]} : vector<8x32x32xf32> to vector<1x32x32xf32>
    %10 = vector.shape_cast %9 : vector<1x32x32xf32> to vector<32x32xf32>
    %11 = vector.broadcast %8 : f32 to vector<32x32xf32>
    %12 = arith.mulf %11, %10 : vector<32x32xf32>
    %c0_11 = arith.constant 0 : index
    %c1 = arith.constant 1 : index
    %13 = memref.load %arg4[%c0_11, %c1] : memref<8x4xf32, #tpu.memory_space<smem>>
    %14 = vector.extract_strided_slice %5 {offsets = [1, 0, 0], sizes = [1, 32, 32], strides = [1, 1, 1]} : vector<8x32x32xf32> to vector<1x32x32xf32>
    %15 = vector.shape_cast %14 : vector<1x32x32xf32> to vector<32x32xf32>
    %16 = vector.broadcast %13 : f32 to vector<32x32xf32>
    %17 = arith.mulf %16, %15 : vector<32x32xf32>
    %18 = arith.addf %12, %17 : vector<32x32xf32>
    %c0_12 = arith.constant 0 : index
    %c2 = arith.constant 2 : index
    %19 = memref.load %arg4[%c0_12, %c2] : memref<8x4xf32, #tpu.memory_space<smem>>
    %20 = vector.extract_strided_slice %5 {offsets = [2, 0, 0], sizes = [1, 32, 32], strides = [1, 1, 1]} : vector<8x32x32xf32> to vector<1x32x32xf32>
    %21 = vector.shape_cast %20 : vector<1x32x32xf32> to vector<32x32xf32>
    %22 = vector.broadcast %19 : f32 to vector<32x32xf32>
    %23 = arith.mulf %22, %21 : vector<32x32xf32>
    %24 = arith.addf %18, %23 : vector<32x32xf32>
    %c0_13 = arith.constant 0 : index
    %c3 = arith.constant 3 : index
    %25 = memref.load %arg4[%c0_13, %c3] : memref<8x4xf32, #tpu.memory_space<smem>>
    %26 = vector.extract_strided_slice %5 {offsets = [3, 0, 0], sizes = [1, 32, 32], strides = [1, 1, 1]} : vector<8x32x32xf32> to vector<1x32x32xf32>
    %27 = vector.shape_cast %26 : vector<1x32x32xf32> to vector<32x32xf32>
    %28 = vector.broadcast %25 : f32 to vector<32x32xf32>
    %29 = arith.mulf %28, %27 : vector<32x32xf32>
    %30 = arith.addf %24, %29 : vector<32x32xf32>
    %31 = vector.shape_cast %30 : vector<32x32xf32> to vector<1x32x32xf32>
    %cst_14 = arith.constant dense<0.000000e+00> : vector<1xf32>
    %32 = vector.multi_reduction <add>, %31, %cst_14 [1, 2] : vector<1x32x32xf32> to vector<1xf32>
    %33 = vector.shape_cast %32 : vector<1xf32> to vector<1x1x1xf32>
    %34 = vector.extract %33[0, 0, 0] : f32 from vector<1x1x1xf32>
    %35 = vector.broadcast %34 : f32 to vector<1x1xf32>
    %36 = arith.addf %6, %35 : vector<1x1xf32>
    %37 = arith.mulf %30, %30 : vector<32x32xf32>
    %38 = vector.shape_cast %37 : vector<32x32xf32> to vector<1x32x32xf32>
    %cst_15 = arith.constant dense<0.000000e+00> : vector<1xf32>
    %39 = vector.multi_reduction <add>, %38, %cst_15 [1, 2] : vector<1x32x32xf32> to vector<1xf32>
    %40 = vector.shape_cast %39 : vector<1xf32> to vector<1x1x1xf32>
    %41 = vector.extract %40[0, 0, 0] : f32 from vector<1x1x1xf32>
    %42 = vector.broadcast %41 : f32 to vector<1x1xf32>
    %43 = arith.addf %7, %42 : vector<1x1xf32>
    %c0_16 = arith.constant 0 : index
    %c0_17 = arith.constant 0 : index
    %44 = memref.load %arg4[%c0_16, %c0_17] : memref<8x4xf32, #tpu.memory_space<smem>>
    %45 = vector.extract_strided_slice %5 {offsets = [4, 0, 0], sizes = [1, 32, 32], strides = [1, 1, 1]} : vector<8x32x32xf32> to vector<1x32x32xf32>
    %46 = vector.shape_cast %45 : vector<1x32x32xf32> to vector<32x32xf32>
    %47 = vector.broadcast %44 : f32 to vector<32x32xf32>
    %48 = arith.mulf %47, %46 : vector<32x32xf32>
    %c0_18 = arith.constant 0 : index
    %c1_19 = arith.constant 1 : index
    %49 = memref.load %arg4[%c0_18, %c1_19] : memref<8x4xf32, #tpu.memory_space<smem>>
    %50 = vector.extract_strided_slice %5 {offsets = [5, 0, 0], sizes = [1, 32, 32], strides = [1, 1, 1]} : vector<8x32x32xf32> to vector<1x32x32xf32>
    %51 = vector.shape_cast %50 : vector<1x32x32xf32> to vector<32x32xf32>
    %52 = vector.broadcast %49 : f32 to vector<32x32xf32>
    %53 = arith.mulf %52, %51 : vector<32x32xf32>
    %54 = arith.addf %48, %53 : vector<32x32xf32>
    %c0_20 = arith.constant 0 : index
    %c2_21 = arith.constant 2 : index
    %55 = memref.load %arg4[%c0_20, %c2_21] : memref<8x4xf32, #tpu.memory_space<smem>>
    %56 = vector.extract_strided_slice %5 {offsets = [6, 0, 0], sizes = [1, 32, 32], strides = [1, 1, 1]} : vector<8x32x32xf32> to vector<1x32x32xf32>
    %57 = vector.shape_cast %56 : vector<1x32x32xf32> to vector<32x32xf32>
    %58 = vector.broadcast %55 : f32 to vector<32x32xf32>
    %59 = arith.mulf %58, %57 : vector<32x32xf32>
    %60 = arith.addf %54, %59 : vector<32x32xf32>
    %c0_22 = arith.constant 0 : index
    %c3_23 = arith.constant 3 : index
    %61 = memref.load %arg4[%c0_22, %c3_23] : memref<8x4xf32, #tpu.memory_space<smem>>
    %62 = vector.extract_strided_slice %5 {offsets = [7, 0, 0], sizes = [1, 32, 32], strides = [1, 1, 1]} : vector<8x32x32xf32> to vector<1x32x32xf32>
    %63 = vector.shape_cast %62 : vector<1x32x32xf32> to vector<32x32xf32>
    %64 = vector.broadcast %61 : f32 to vector<32x32xf32>
    %65 = arith.mulf %64, %63 : vector<32x32xf32>
    %66 = arith.addf %60, %65 : vector<32x32xf32>
    %67 = vector.shape_cast %66 : vector<32x32xf32> to vector<1x32x32xf32>
    %cst_24 = arith.constant dense<0.000000e+00> : vector<1xf32>
    %68 = vector.multi_reduction <add>, %67, %cst_24 [1, 2] : vector<1x32x32xf32> to vector<1xf32>
    %69 = vector.shape_cast %68 : vector<1xf32> to vector<1x1x1xf32>
    %70 = vector.extract %69[0, 0, 0] : f32 from vector<1x1x1xf32>
    %71 = vector.broadcast %70 : f32 to vector<1x1xf32>
    %72 = arith.addf %36, %71 : vector<1x1xf32>
    %73 = arith.mulf %66, %66 : vector<32x32xf32>
    %74 = vector.shape_cast %73 : vector<32x32xf32> to vector<1x32x32xf32>
    %cst_25 = arith.constant dense<0.000000e+00> : vector<1xf32>
    %75 = vector.multi_reduction <add>, %74, %cst_25 [1, 2] : vector<1x32x32xf32> to vector<1xf32>
    %76 = vector.shape_cast %75 : vector<1xf32> to vector<1x1x1xf32>
    %77 = vector.extract %76[0, 0, 0] : f32 from vector<1x1x1xf32>
    %78 = vector.broadcast %77 : f32 to vector<1x1xf32>
    %79 = arith.addf %43, %78 : vector<1x1xf32>
    %cst_26 = arith.constant 4.8828125E-4 : f32
    %80 = vector.broadcast %cst_26 : f32 to vector<1x1xf32>
    %81 = arith.mulf %72, %80 : vector<1x1xf32>
    %cst_27 = arith.constant 4.8828125E-4 : f32
    %82 = vector.broadcast %cst_27 : f32 to vector<1x1xf32>
    %83 = arith.mulf %79, %82 : vector<1x1xf32>
    %84 = arith.mulf %81, %81 : vector<1x1xf32>
    %85 = arith.subf %83, %84 : vector<1x1xf32>
    %cst_28 = arith.constant 0.000000e+00 : f32
    %86 = vector.broadcast %cst_28 : f32 to vector<1x1xf32>
    %87 = arith.maximumf %85, %86 : vector<1x1xf32>
    %cst_29 = arith.constant 9.99999974E-6 : f32
    %88 = vector.broadcast %cst_29 : f32 to vector<1x1xf32>
    %89 = arith.addf %87, %88 : vector<1x1xf32>
    %90 = math.rsqrt %89 : vector<1x1xf32>
    %c0_30 = arith.constant 0 : index
    %c0_31 = arith.constant 0 : index
    %91 = memref.load %arg5[%c0_30, %c0_31] : memref<2x8xf32, #tpu.memory_space<smem>>
    %92 = vector.broadcast %91 : f32 to vector<1x1xf32>
    %93 = arith.mulf %92, %90 : vector<1x1xf32>
    %c1_32 = arith.constant 1 : index
    %c0_33 = arith.constant 0 : index
    %94 = memref.load %arg5[%c1_32, %c0_33] : memref<2x8xf32, #tpu.memory_space<smem>>
    %95 = arith.mulf %81, %93 : vector<1x1xf32>
    %96 = vector.broadcast %94 : f32 to vector<1x1xf32>
    %97 = arith.subf %96, %95 : vector<1x1xf32>
    %98 = vector.broadcast %93 : vector<1x1xf32> to vector<32x32xf32>
    %99 = arith.mulf %30, %98 : vector<32x32xf32>
    %100 = vector.broadcast %97 : vector<1x1xf32> to vector<32x32xf32>
    %101 = arith.addf %99, %100 : vector<32x32xf32>
    %c0_34 = arith.constant 0 : index
    %c0_35 = arith.constant 0 : index
    %c0_36 = arith.constant 0 : index
    %c0_37 = arith.constant 0 : index
    %102 = vector.load %arg6[%c0_34, %c0_35, %c0_36, %c0_37] : memref<2x8x32x32xf32, #tpu.memory_space<vmem>>, vector<1x1x32x32xf32>
    %103 = vector.shape_cast %102 : vector<1x1x32x32xf32> to vector<32x32xf32>
    %104 = vector.shape_cast %101 : vector<32x32xf32> to vector<1x1x32x32xf32>
    tpu.vector_store %arg6[%c0_34, %c0_35, %c0_36, %c0_37], %104 {strides = array<i32>} : memref<2x8x32x32xf32, #tpu.memory_space<vmem>>, vector<1x1x32x32xf32>,
    %105 = vector.broadcast %93 : vector<1x1xf32> to vector<32x32xf32>
    %106 = arith.mulf %66, %105 : vector<32x32xf32>
    %107 = vector.broadcast %97 : vector<1x1xf32> to vector<32x32xf32>
    %108 = arith.addf %106, %107 : vector<32x32xf32>
    %c1_38 = arith.constant 1 : index
    %c0_39 = arith.constant 0 : index
    %c0_40 = arith.constant 0 : index
    %c0_41 = arith.constant 0 : index
    %109 = vector.load %arg6[%c1_38, %c0_39, %c0_40, %c0_41] : memref<2x8x32x32xf32, #tpu.memory_space<vmem>>, vector<1x1x32x32xf32>
    %110 = vector.shape_cast %109 : vector<1x1x32x32xf32> to vector<32x32xf32>
    %111 = vector.shape_cast %108 : vector<32x32xf32> to vector<1x1x32x32xf32>
    tpu.vector_store %arg6[%c1_38, %c0_39, %c0_40, %c0_41], %111 {strides = array<i32>} : memref<2x8x32x32xf32, #tpu.memory_space<vmem>>, vector<1x1x32x32xf32>,
    %cst_42 = arith.constant 0.000000e+00 : f32
    %112 = vector.broadcast %cst_42 : f32 to vector<1x1xf32>
    %cst_43 = arith.constant 0.000000e+00 : f32
    %113 = vector.broadcast %cst_43 : f32 to vector<1x1xf32>
    %c1_44 = arith.constant 1 : index
    %c0_45 = arith.constant 0 : index
    %114 = memref.load %arg4[%c1_44, %c0_45] : memref<8x4xf32, #tpu.memory_space<smem>>
    %115 = vector.extract_strided_slice %5 {offsets = [0, 0, 0], sizes = [1, 32, 32], strides = [1, 1, 1]} : vector<8x32x32xf32> to vector<1x32x32xf32>
    %116 = vector.shape_cast %115 : vector<1x32x32xf32> to vector<32x32xf32>
    %117 = vector.broadcast %114 : f32 to vector<32x32xf32>
    %118 = arith.mulf %117, %116 : vector<32x32xf32>
    %c1_46 = arith.constant 1 : index
    %c1_47 = arith.constant 1 : index
    %119 = memref.load %arg4[%c1_46, %c1_47] : memref<8x4xf32, #tpu.memory_space<smem>>
    %120 = vector.extract_strided_slice %5 {offsets = [1, 0, 0], sizes = [1, 32, 32], strides = [1, 1, 1]} : vector<8x32x32xf32> to vector<1x32x32xf32>
    %121 = vector.shape_cast %120 : vector<1x32x32xf32> to vector<32x32xf32>
    %122 = vector.broadcast %119 : f32 to vector<32x32xf32>
    %123 = arith.mulf %122, %121 : vector<32x32xf32>
    %124 = arith.addf %118, %123 : vector<32x32xf32>
    %c1_48 = arith.constant 1 : index
    %c2_49 = arith.constant 2 : index
    %125 = memref.load %arg4[%c1_48, %c2_49] : memref<8x4xf32, #tpu.memory_space<smem>>
    %126 = vector.extract_strided_slice %5 {offsets = [2, 0, 0], sizes = [1, 32, 32], strides = [1, 1, 1]} : vector<8x32x32xf32> to vector<1x32x32xf32>
    %127 = vector.shape_cast %126 : vector<1x32x32xf32> to vector<32x32xf32>
    %128 = vector.broadcast %125 : f32 to vector<32x32xf32>
    %129 = arith.mulf %128, %127 : vector<32x32xf32>
    %130 = arith.addf %124, %129 : vector<32x32xf32>
    %c1_50 = arith.constant 1 : index
    %c3_51 = arith.constant 3 : index
    %131 = memref.load %arg4[%c1_50, %c3_51] : memref<8x4xf32, #tpu.memory_space<smem>>
    %132 = vector.extract_strided_slice %5 {offsets = [3, 0, 0], sizes = [1, 32, 32], strides = [1, 1, 1]} : vector<8x32x32xf32> to vector<1x32x32xf32>
    %133 = vector.shape_cast %132 : vector<1x32x32xf32> to vector<32x32xf32>
    %134 = vector.broadcast %131 : f32 to vector<32x32xf32>
    %135 = arith.mulf %134, %133 : vector<32x32xf32>
    %136 = arith.addf %130, %135 : vector<32x32xf32>
    %137 = vector.shape_cast %136 : vector<32x32xf32> to vector<1x32x32xf32>
    %cst_52 = arith.constant dense<0.000000e+00> : vector<1xf32>
    %138 = vector.multi_reduction <add>, %137, %cst_52 [1, 2] : vector<1x32x32xf32> to vector<1xf32>
    %139 = vector.shape_cast %138 : vector<1xf32> to vector<1x1x1xf32>
    %140 = vector.extract %139[0, 0, 0] : f32 from vector<1x1x1xf32>
    %141 = vector.broadcast %140 : f32 to vector<1x1xf32>
    %142 = arith.addf %112, %141 : vector<1x1xf32>
    %143 = arith.mulf %136, %136 : vector<32x32xf32>
    %144 = vector.shape_cast %143 : vector<32x32xf32> to vector<1x32x32xf32>
    %cst_53 = arith.constant dense<0.000000e+00> : vector<1xf32>
    %145 = vector.multi_reduction <add>, %144, %cst_53 [1, 2] : vector<1x32x32xf32> to vector<1xf32>
    %146 = vector.shape_cast %145 : vector<1xf32> to vector<1x1x1xf32>
    %147 = vector.extract %146[0, 0, 0] : f32 from vector<1x1x1xf32>
    %148 = vector.broadcast %147 : f32 to vector<1x1xf32>
    %149 = arith.addf %113, %148 : vector<1x1xf32>
    %c1_54 = arith.constant 1 : index
    %c0_55 = arith.constant 0 : index
    %150 = memref.load %arg4[%c1_54, %c0_55] : memref<8x4xf32, #tpu.memory_space<smem>>
    %151 = vector.extract_strided_slice %5 {offsets = [4, 0, 0], sizes = [1, 32, 32], strides = [1, 1, 1]} : vector<8x32x32xf32> to vector<1x32x32xf32>
    %152 = vector.shape_cast %151 : vector<1x32x32xf32> to vector<32x32xf32>
    %153 = vector.broadcast %150 : f32 to vector<32x32xf32>
    %154 = arith.mulf %153, %152 : vector<32x32xf32>
    %c1_56 = arith.constant 1 : index
    %c1_57 = arith.constant 1 : index
    %155 = memref.load %arg4[%c1_56, %c1_57] : memref<8x4xf32, #tpu.memory_space<smem>>
    %156 = vector.extract_strided_slice %5 {offsets = [5, 0, 0], sizes = [1, 32, 32], strides = [1, 1, 1]} : vector<8x32x32xf32> to vector<1x32x32xf32>
    %157 = vector.shape_cast %156 : vector<1x32x32xf32> to vector<32x32xf32>
    %158 = vector.broadcast %155 : f32 to vector<32x32xf32>
    %159 = arith.mulf %158, %157 : vector<32x32xf32>
    %160 = arith.addf %154, %159 : vector<32x32xf32>
    %c1_58 = arith.constant 1 : index
    %c2_59 = arith.constant 2 : index
    %161 = memref.load %arg4[%c1_58, %c2_59] : memref<8x4xf32, #tpu.memory_space<smem>>
    %162 = vector.extract_strided_slice %5 {offsets = [6, 0, 0], sizes = [1, 32, 32], strides = [1, 1, 1]} : vector<8x32x32xf32> to vector<1x32x32xf32>
    %163 = vector.shape_cast %162 : vector<1x32x32xf32> to vector<32x32xf32>
    %164 = vector.broadcast %161 : f32 to vector<32x32xf32>
    %165 = arith.mulf %164, %163 : vector<32x32xf32>
    %166 = arith.addf %160, %165 : vector<32x32xf32>
    %c1_60 = arith.constant 1 : index
    %c3_61 = arith.constant 3 : index
    %167 = memref.load %arg4[%c1_60, %c3_61] : memref<8x4xf32, #tpu.memory_space<smem>>
    %168 = vector.extract_strided_slice %5 {offsets = [7, 0, 0], sizes = [1, 32, 32], strides = [1, 1, 1]} : vector<8x32x32xf32> to vector<1x32x32xf32>
    %169 = vector.shape_cast %168 : vector<1x32x32xf32> to vector<32x32xf32>
    %170 = vector.broadcast %167 : f32 to vector<32x32xf32>
    %171 = arith.mulf %170, %169 : vector<32x32xf32>
    %172 = arith.addf %166, %171 : vector<32x32xf32>
    %173 = vector.shape_cast %172 : vector<32x32xf32> to vector<1x32x32xf32>
    %cst_62 = arith.constant dense<0.000000e+00> : vector<1xf32>
    %174 = vector.multi_reduction <add>, %173, %cst_62 [1, 2] : vector<1x32x32xf32> to vector<1xf32>
    %175 = vector.shape_cast %174 : vector<1xf32> to vector<1x1x1xf32>
    %176 = vector.extract %175[0, 0, 0] : f32 from vector<1x1x1xf32>
    %177 = vector.broadcast %176 : f32 to vector<1x1xf32>
    %178 = arith.addf %142, %177 : vector<1x1xf32>
    %179 = arith.mulf %172, %172 : vector<32x32xf32>
    %180 = vector.shape_cast %179 : vector<32x32xf32> to vector<1x32x32xf32>
    %cst_63 = arith.constant dense<0.000000e+00> : vector<1xf32>
    %181 = vector.multi_reduction <add>, %180, %cst_63 [1, 2] : vector<1x32x32xf32> to vector<1xf32>
    %182 = vector.shape_cast %181 : vector<1xf32> to vector<1x1x1xf32>
    %183 = vector.extract %182[0, 0, 0] : f32 from vector<1x1x1xf32>
    %184 = vector.broadcast %183 : f32 to vector<1x1xf32>
    %185 = arith.addf %149, %184 : vector<1x1xf32>
    %cst_64 = arith.constant 4.8828125E-4 : f32
    %186 = vector.broadcast %cst_64 : f32 to vector<1x1xf32>
    %187 = arith.mulf %178, %186 : vector<1x1xf32>
    %cst_65 = arith.constant 4.8828125E-4 : f32
    %188 = vector.broadcast %cst_65 : f32 to vector<1x1xf32>
    %189 = arith.mulf %185, %188 : vector<1x1xf32>
    %190 = arith.mulf %187, %187 : vector<1x1xf32>
    %191 = arith.subf %189, %190 : vector<1x1xf32>
    %cst_66 = arith.constant 0.000000e+00 : f32
    %192 = vector.broadcast %cst_66 : f32 to vector<1x1xf32>
    %193 = arith.maximumf %191, %192 : vector<1x1xf32>
    %cst_67 = arith.constant 9.99999974E-6 : f32
    %194 = vector.broadcast %cst_67 : f32 to vector<1x1xf32>
    %195 = arith.addf %193, %194 : vector<1x1xf32>
    %196 = math.rsqrt %195 : vector<1x1xf32>
    %c0_68 = arith.constant 0 : index
    %c1_69 = arith.constant 1 : index
    %197 = memref.load %arg5[%c0_68, %c1_69] : memref<2x8xf32, #tpu.memory_space<smem>>
    %198 = vector.broadcast %197 : f32 to vector<1x1xf32>
    %199 = arith.mulf %198, %196 : vector<1x1xf32>
    %c1_70 = arith.constant 1 : index
    %c1_71 = arith.constant 1 : index
    %200 = memref.load %arg5[%c1_70, %c1_71] : memref<2x8xf32, #tpu.memory_space<smem>>
    %201 = arith.mulf %187, %199 : vector<1x1xf32>
    %202 = vector.broadcast %200 : f32 to vector<1x1xf32>
    %203 = arith.subf %202, %201 : vector<1x1xf32>
    %204 = vector.broadcast %199 : vector<1x1xf32> to vector<32x32xf32>
    %205 = arith.mulf %136, %204 : vector<32x32xf32>
    %206 = vector.broadcast %203 : vector<1x1xf32> to vector<32x32xf32>
    %207 = arith.addf %205, %206 : vector<32x32xf32>
    %c0_72 = arith.constant 0 : index
    %c1_73 = arith.constant 1 : index
    %c0_74 = arith.constant 0 : index
    %c0_75 = arith.constant 0 : index
    %208 = vector.load %arg6[%c0_72, %c1_73, %c0_74, %c0_75] : memref<2x8x32x32xf32, #tpu.memory_space<vmem>>, vector<1x1x32x32xf32>
    %209 = vector.shape_cast %208 : vector<1x1x32x32xf32> to vector<32x32xf32>
    %210 = vector.shape_cast %207 : vector<32x32xf32> to vector<1x1x32x32xf32>
    tpu.vector_store %arg6[%c0_72, %c1_73, %c0_74, %c0_75], %210 {strides = array<i32>} : memref<2x8x32x32xf32, #tpu.memory_space<vmem>>, vector<1x1x32x32xf32>,
    %211 = vector.broadcast %199 : vector<1x1xf32> to vector<32x32xf32>
    %212 = arith.mulf %172, %211 : vector<32x32xf32>
    %213 = vector.broadcast %203 : vector<1x1xf32> to vector<32x32xf32>
    %214 = arith.addf %212, %213 : vector<32x32xf32>
    %c1_76 = arith.constant 1 : index
    %c1_77 = arith.constant 1 : index
    %c0_78 = arith.constant 0 : index
    %c0_79 = arith.constant 0 : index
    %215 = vector.load %arg6[%c1_76, %c1_77, %c0_78, %c0_79] : memref<2x8x32x32xf32, #tpu.memory_space<vmem>>, vector<1x1x32x32xf32>
    %216 = vector.shape_cast %215 : vector<1x1x32x32xf32> to vector<32x32xf32>
    %217 = vector.shape_cast %214 : vector<32x32xf32> to vector<1x1x32x32xf32>
    tpu.vector_store %arg6[%c1_76, %c1_77, %c0_78, %c0_79], %217 {strides = array<i32>} : memref<2x8x32x32xf32, #tpu.memory_space<vmem>>, vector<1x1x32x32xf32>,
    %cst_80 = arith.constant 0.000000e+00 : f32
    %218 = vector.broadcast %cst_80 : f32 to vector<1x1xf32>
    %cst_81 = arith.constant 0.000000e+00 : f32
    %219 = vector.broadcast %cst_81 : f32 to vector<1x1xf32>
    %c2_82 = arith.constant 2 : index
    %c0_83 = arith.constant 0 : index
    %220 = memref.load %arg4[%c2_82, %c0_83] : memref<8x4xf32, #tpu.memory_space<smem>>
    %221 = vector.extract_strided_slice %5 {offsets = [0, 0, 0], sizes = [1, 32, 32], strides = [1, 1, 1]} : vector<8x32x32xf32> to vector<1x32x32xf32>
    %222 = vector.shape_cast %221 : vector<1x32x32xf32> to vector<32x32xf32>
    %223 = vector.broadcast %220 : f32 to vector<32x32xf32>
    %224 = arith.mulf %223, %222 : vector<32x32xf32>
    %c2_84 = arith.constant 2 : index
    %c1_85 = arith.constant 1 : index
    %225 = memref.load %arg4[%c2_84, %c1_85] : memref<8x4xf32, #tpu.memory_space<smem>>
    %226 = vector.extract_strided_slice %5 {offsets = [1, 0, 0], sizes = [1, 32, 32], strides = [1, 1, 1]} : vector<8x32x32xf32> to vector<1x32x32xf32>
    %227 = vector.shape_cast %226 : vector<1x32x32xf32> to vector<32x32xf32>
    %228 = vector.broadcast %225 : f32 to vector<32x32xf32>
    %229 = arith.mulf %228, %227 : vector<32x32xf32>
    %230 = arith.addf %224, %229 : vector<32x32xf32>
    %c2_86 = arith.constant 2 : index
    %c2_87 = arith.constant 2 : index
    %231 = memref.load %arg4[%c2_86, %c2_87] : memref<8x4xf32, #tpu.memory_space<smem>>
    %232 = vector.extract_strided_slice %5 {offsets = [2, 0, 0], sizes = [1, 32, 32], strides = [1, 1, 1]} : vector<8x32x32xf32> to vector<1x32x32xf32>
    %233 = vector.shape_cast %232 : vector<1x32x32xf32> to vector<32x32xf32>
    %234 = vector.broadcast %231 : f32 to vector<32x32xf32>
    %235 = arith.mulf %234, %233 : vector<32x32xf32>
    %236 = arith.addf %230, %235 : vector<32x32xf32>
    %c2_88 = arith.constant 2 : index
    %c3_89 = arith.constant 3 : index
    %237 = memref.load %arg4[%c2_88, %c3_89] : memref<8x4xf32, #tpu.memory_space<smem>>
    %238 = vector.extract_strided_slice %5 {offsets = [3, 0, 0], sizes = [1, 32, 32], strides = [1, 1, 1]} : vector<8x32x32xf32> to vector<1x32x32xf32>
    %239 = vector.shape_cast %238 : vector<1x32x32xf32> to vector<32x32xf32>
    %240 = vector.broadcast %237 : f32 to vector<32x32xf32>
    %241 = arith.mulf %240, %239 : vector<32x32xf32>
    %242 = arith.addf %236, %241 : vector<32x32xf32>
    %243 = vector.shape_cast %242 : vector<32x32xf32> to vector<1x32x32xf32>
    %cst_90 = arith.constant dense<0.000000e+00> : vector<1xf32>
    %244 = vector.multi_reduction <add>, %243, %cst_90 [1, 2] : vector<1x32x32xf32> to vector<1xf32>
    %245 = vector.shape_cast %244 : vector<1xf32> to vector<1x1x1xf32>
    %246 = vector.extract %245[0, 0, 0] : f32 from vector<1x1x1xf32>
    %247 = vector.broadcast %246 : f32 to vector<1x1xf32>
    %248 = arith.addf %218, %247 : vector<1x1xf32>
    %249 = arith.mulf %242, %242 : vector<32x32xf32>
    %250 = vector.shape_cast %249 : vector<32x32xf32> to vector<1x32x32xf32>
    %cst_91 = arith.constant dense<0.000000e+00> : vector<1xf32>
    %251 = vector.multi_reduction <add>, %250, %cst_91 [1, 2] : vector<1x32x32xf32> to vector<1xf32>
    %252 = vector.shape_cast %251 : vector<1xf32> to vector<1x1x1xf32>
    %253 = vector.extract %252[0, 0, 0] : f32 from vector<1x1x1xf32>
    %254 = vector.broadcast %253 : f32 to vector<1x1xf32>
    %255 = arith.addf %219, %254 : vector<1x1xf32>
    %c2_92 = arith.constant 2 : index
    %c0_93 = arith.constant 0 : index
    %256 = memref.load %arg4[%c2_92, %c0_93] : memref<8x4xf32, #tpu.memory_space<smem>>
    %257 = vector.extract_strided_slice %5 {offsets = [4, 0, 0], sizes = [1, 32, 32], strides = [1, 1, 1]} : vector<8x32x32xf32> to vector<1x32x32xf32>
    %258 = vector.shape_cast %257 : vector<1x32x32xf32> to vector<32x32xf32>
    %259 = vector.broadcast %256 : f32 to vector<32x32xf32>
    %260 = arith.mulf %259, %258 : vector<32x32xf32>
    %c2_94 = arith.constant 2 : index
    %c1_95 = arith.constant 1 : index
    %261 = memref.load %arg4[%c2_94, %c1_95] : memref<8x4xf32, #tpu.memory_space<smem>>
    %262 = vector.extract_strided_slice %5 {offsets = [5, 0, 0], sizes = [1, 32, 32], strides = [1, 1, 1]} : vector<8x32x32xf32> to vector<1x32x32xf32>
    %263 = vector.shape_cast %262 : vector<1x32x32xf32> to vector<32x32xf32>
    %264 = vector.broadcast %261 : f32 to vector<32x32xf32>
    %265 = arith.mulf %264, %263 : vector<32x32xf32>
    %266 = arith.addf %260, %265 : vector<32x32xf32>
    %c2_96 = arith.constant 2 : index
    %c2_97 = arith.constant 2 : index
    %267 = memref.load %arg4[%c2_96, %c2_97] : memref<8x4xf32, #tpu.memory_space<smem>>
    %268 = vector.extract_strided_slice %5 {offsets = [6, 0, 0], sizes = [1, 32, 32], strides = [1, 1, 1]} : vector<8x32x32xf32> to vector<1x32x32xf32>
    %269 = vector.shape_cast %268 : vector<1x32x32xf32> to vector<32x32xf32>
    %270 = vector.broadcast %267 : f32 to vector<32x32xf32>
    %271 = arith.mulf %270, %269 : vector<32x32xf32>
    %272 = arith.addf %266, %271 : vector<32x32xf32>
    %c2_98 = arith.constant 2 : index
    %c3_99 = arith.constant 3 : index
    %273 = memref.load %arg4[%c2_98, %c3_99] : memref<8x4xf32, #tpu.memory_space<smem>>
    %274 = vector.extract_strided_slice %5 {offsets = [7, 0, 0], sizes = [1, 32, 32], strides = [1, 1, 1]} : vector<8x32x32xf32> to vector<1x32x32xf32>
    %275 = vector.shape_cast %274 : vector<1x32x32xf32> to vector<32x32xf32>
    %276 = vector.broadcast %273 : f32 to vector<32x32xf32>
    %277 = arith.mulf %276, %275 : vector<32x32xf32>
    %278 = arith.addf %272, %277 : vector<32x32xf32>
    %279 = vector.shape_cast %278 : vector<32x32xf32> to vector<1x32x32xf32>
    %cst_100 = arith.constant dense<0.000000e+00> : vector<1xf32>
    %280 = vector.multi_reduction <add>, %279, %cst_100 [1, 2] : vector<1x32x32xf32> to vector<1xf32>
    %281 = vector.shape_cast %280 : vector<1xf32> to vector<1x1x1xf32>
    %282 = vector.extract %281[0, 0, 0] : f32 from vector<1x1x1xf32>
    %283 = vector.broadcast %282 : f32 to vector<1x1xf32>
    %284 = arith.addf %248, %283 : vector<1x1xf32>
    %285 = arith.mulf %278, %278 : vector<32x32xf32>
    %286 = vector.shape_cast %285 : vector<32x32xf32> to vector<1x32x32xf32>
    %cst_101 = arith.constant dense<0.000000e+00> : vector<1xf32>
    %287 = vector.multi_reduction <add>, %286, %cst_101 [1, 2] : vector<1x32x32xf32> to vector<1xf32>
    %288 = vector.shape_cast %287 : vector<1xf32> to vector<1x1x1xf32>
    %289 = vector.extract %288[0, 0, 0] : f32 from vector<1x1x1xf32>
    %290 = vector.broadcast %289 : f32 to vector<1x1xf32>
    %291 = arith.addf %255, %290 : vector<1x1xf32>
    %cst_102 = arith.constant 4.8828125E-4 : f32
    %292 = vector.broadcast %cst_102 : f32 to vector<1x1xf32>
    %293 = arith.mulf %284, %292 : vector<1x1xf32>
    %cst_103 = arith.constant 4.8828125E-4 : f32
    %294 = vector.broadcast %cst_103 : f32 to vector<1x1xf32>
    %295 = arith.mulf %291, %294 : vector<1x1xf32>
    %296 = arith.mulf %293, %293 : vector<1x1xf32>
    %297 = arith.subf %295, %296 : vector<1x1xf32>
    %cst_104 = arith.constant 0.000000e+00 : f32
    %298 = vector.broadcast %cst_104 : f32 to vector<1x1xf32>
    %299 = arith.maximumf %297, %298 : vector<1x1xf32>
    %cst_105 = arith.constant 9.99999974E-6 : f32
    %300 = vector.broadcast %cst_105 : f32 to vector<1x1xf32>
    %301 = arith.addf %299, %300 : vector<1x1xf32>
    %302 = math.rsqrt %301 : vector<1x1xf32>
    %c0_106 = arith.constant 0 : index
    %c2_107 = arith.constant 2 : index
    %303 = memref.load %arg5[%c0_106, %c2_107] : memref<2x8xf32, #tpu.memory_space<smem>>
    %304 = vector.broadcast %303 : f32 to vector<1x1xf32>
    %305 = arith.mulf %304, %302 : vector<1x1xf32>
    %c1_108 = arith.constant 1 : index
    %c2_109 = arith.constant 2 : index
    %306 = memref.load %arg5[%c1_108, %c2_109] : memref<2x8xf32, #tpu.memory_space<smem>>
    %307 = arith.mulf %293, %305 : vector<1x1xf32>
    %308 = vector.broadcast %306 : f32 to vector<1x1xf32>
    %309 = arith.subf %308, %307 : vector<1x1xf32>
    %310 = vector.broadcast %305 : vector<1x1xf32> to vector<32x32xf32>
    %311 = arith.mulf %242, %310 : vector<32x32xf32>
    %312 = vector.broadcast %309 : vector<1x1xf32> to vector<32x32xf32>
    %313 = arith.addf %311, %312 : vector<32x32xf32>
    %c0_110 = arith.constant 0 : index
    %c2_111 = arith.constant 2 : index
    %c0_112 = arith.constant 0 : index
    %c0_113 = arith.constant 0 : index
    %314 = vector.load %arg6[%c0_110, %c2_111, %c0_112, %c0_113] : memref<2x8x32x32xf32, #tpu.memory_space<vmem>>, vector<1x1x32x32xf32>
    %315 = vector.shape_cast %314 : vector<1x1x32x32xf32> to vector<32x32xf32>
    %316 = vector.shape_cast %313 : vector<32x32xf32> to vector<1x1x32x32xf32>
    tpu.vector_store %arg6[%c0_110, %c2_111, %c0_112, %c0_113], %316 {strides = array<i32>} : memref<2x8x32x32xf32, #tpu.memory_space<vmem>>, vector<1x1x32x32xf32>,
    %317 = vector.broadcast %305 : vector<1x1xf32> to vector<32x32xf32>
    %318 = arith.mulf %278, %317 : vector<32x32xf32>
    %319 = vector.broadcast %309 : vector<1x1xf32> to vector<32x32xf32>
    %320 = arith.addf %318, %319 : vector<32x32xf32>
    %c1_114 = arith.constant 1 : index
    %c2_115 = arith.constant 2 : index
    %c0_116 = arith.constant 0 : index
    %c0_117 = arith.constant 0 : index
    %321 = vector.load %arg6[%c1_114, %c2_115, %c0_116, %c0_117] : memref<2x8x32x32xf32, #tpu.memory_space<vmem>>, vector<1x1x32x32xf32>
    %322 = vector.shape_cast %321 : vector<1x1x32x32xf32> to vector<32x32xf32>
    %323 = vector.shape_cast %320 : vector<32x32xf32> to vector<1x1x32x32xf32>
    tpu.vector_store %arg6[%c1_114, %c2_115, %c0_116, %c0_117], %323 {strides = array<i32>} : memref<2x8x32x32xf32, #tpu.memory_space<vmem>>, vector<1x1x32x32xf32>,
    %cst_118 = arith.constant 0.000000e+00 : f32
    %324 = vector.broadcast %cst_118 : f32 to vector<1x1xf32>
    %cst_119 = arith.constant 0.000000e+00 : f32
    %325 = vector.broadcast %cst_119 : f32 to vector<1x1xf32>
    %c3_120 = arith.constant 3 : index
    %c0_121 = arith.constant 0 : index
    %326 = memref.load %arg4[%c3_120, %c0_121] : memref<8x4xf32, #tpu.memory_space<smem>>
    %327 = vector.extract_strided_slice %5 {offsets = [0, 0, 0], sizes = [1, 32, 32], strides = [1, 1, 1]} : vector<8x32x32xf32> to vector<1x32x32xf32>
    %328 = vector.shape_cast %327 : vector<1x32x32xf32> to vector<32x32xf32>
    %329 = vector.broadcast %326 : f32 to vector<32x32xf32>
    %330 = arith.mulf %329, %328 : vector<32x32xf32>
    %c3_122 = arith.constant 3 : index
    %c1_123 = arith.constant 1 : index
    %331 = memref.load %arg4[%c3_122, %c1_123] : memref<8x4xf32, #tpu.memory_space<smem>>
    %332 = vector.extract_strided_slice %5 {offsets = [1, 0, 0], sizes = [1, 32, 32], strides = [1, 1, 1]} : vector<8x32x32xf32> to vector<1x32x32xf32>
    %333 = vector.shape_cast %332 : vector<1x32x32xf32> to vector<32x32xf32>
    %334 = vector.broadcast %331 : f32 to vector<32x32xf32>
    %335 = arith.mulf %334, %333 : vector<32x32xf32>
    %336 = arith.addf %330, %335 : vector<32x32xf32>
    %c3_124 = arith.constant 3 : index
    %c2_125 = arith.constant 2 : index
    %337 = memref.load %arg4[%c3_124, %c2_125] : memref<8x4xf32, #tpu.memory_space<smem>>
    %338 = vector.extract_strided_slice %5 {offsets = [2, 0, 0], sizes = [1, 32, 32], strides = [1, 1, 1]} : vector<8x32x32xf32> to vector<1x32x32xf32>
    %339 = vector.shape_cast %338 : vector<1x32x32xf32> to vector<32x32xf32>
    %340 = vector.broadcast %337 : f32 to vector<32x32xf32>
    %341 = arith.mulf %340, %339 : vector<32x32xf32>
    %342 = arith.addf %336, %341 : vector<32x32xf32>
    %c3_126 = arith.constant 3 : index
    %c3_127 = arith.constant 3 : index
    %343 = memref.load %arg4[%c3_126, %c3_127] : memref<8x4xf32, #tpu.memory_space<smem>>
    %344 = vector.extract_strided_slice %5 {offsets = [3, 0, 0], sizes = [1, 32, 32], strides = [1, 1, 1]} : vector<8x32x32xf32> to vector<1x32x32xf32>
    %345 = vector.shape_cast %344 : vector<1x32x32xf32> to vector<32x32xf32>
    %346 = vector.broadcast %343 : f32 to vector<32x32xf32>
    %347 = arith.mulf %346, %345 : vector<32x32xf32>
    %348 = arith.addf %342, %347 : vector<32x32xf32>
    %349 = vector.shape_cast %348 : vector<32x32xf32> to vector<1x32x32xf32>
    %cst_128 = arith.constant dense<0.000000e+00> : vector<1xf32>
    %350 = vector.multi_reduction <add>, %349, %cst_128 [1, 2] : vector<1x32x32xf32> to vector<1xf32>
    %351 = vector.shape_cast %350 : vector<1xf32> to vector<1x1x1xf32>
    %352 = vector.extract %351[0, 0, 0] : f32 from vector<1x1x1xf32>
    %353 = vector.broadcast %352 : f32 to vector<1x1xf32>
    %354 = arith.addf %324, %353 : vector<1x1xf32>
    %355 = arith.mulf %348, %348 : vector<32x32xf32>
    %356 = vector.shape_cast %355 : vector<32x32xf32> to vector<1x32x32xf32>
    %cst_129 = arith.constant dense<0.000000e+00> : vector<1xf32>
    %357 = vector.multi_reduction <add>, %356, %cst_129 [1, 2] : vector<1x32x32xf32> to vector<1xf32>
    %358 = vector.shape_cast %357 : vector<1xf32> to vector<1x1x1xf32>
    %359 = vector.extract %358[0, 0, 0] : f32 from vector<1x1x1xf32>
    %360 = vector.broadcast %359 : f32 to vector<1x1xf32>
    %361 = arith.addf %325, %360 : vector<1x1xf32>
    %c3_130 = arith.constant 3 : index
    %c0_131 = arith.constant 0 : index
    %362 = memref.load %arg4[%c3_130, %c0_131] : memref<8x4xf32, #tpu.memory_space<smem>>
    %363 = vector.extract_strided_slice %5 {offsets = [4, 0, 0], sizes = [1, 32, 32], strides = [1, 1, 1]} : vector<8x32x32xf32> to vector<1x32x32xf32>
    %364 = vector.shape_cast %363 : vector<1x32x32xf32> to vector<32x32xf32>
    %365 = vector.broadcast %362 : f32 to vector<32x32xf32>
    %366 = arith.mulf %365, %364 : vector<32x32xf32>
    %c3_132 = arith.constant 3 : index
    %c1_133 = arith.constant 1 : index
    %367 = memref.load %arg4[%c3_132, %c1_133] : memref<8x4xf32, #tpu.memory_space<smem>>
    %368 = vector.extract_strided_slice %5 {offsets = [5, 0, 0], sizes = [1, 32, 32], strides = [1, 1, 1]} : vector<8x32x32xf32> to vector<1x32x32xf32>
    %369 = vector.shape_cast %368 : vector<1x32x32xf32> to vector<32x32xf32>
    %370 = vector.broadcast %367 : f32 to vector<32x32xf32>
    %371 = arith.mulf %370, %369 : vector<32x32xf32>
    %372 = arith.addf %366, %371 : vector<32x32xf32>
    %c3_134 = arith.constant 3 : index
    %c2_135 = arith.constant 2 : index
    %373 = memref.load %arg4[%c3_134, %c2_135] : memref<8x4xf32, #tpu.memory_space<smem>>
    %374 = vector.extract_strided_slice %5 {offsets = [6, 0, 0], sizes = [1, 32, 32], strides = [1, 1, 1]} : vector<8x32x32xf32> to vector<1x32x32xf32>
    %375 = vector.shape_cast %374 : vector<1x32x32xf32> to vector<32x32xf32>
    %376 = vector.broadcast %373 : f32 to vector<32x32xf32>
    %377 = arith.mulf %376, %375 : vector<32x32xf32>
    %378 = arith.addf %372, %377 : vector<32x32xf32>
    %c3_136 = arith.constant 3 : index
    %c3_137 = arith.constant 3 : index
    %379 = memref.load %arg4[%c3_136, %c3_137] : memref<8x4xf32, #tpu.memory_space<smem>>
    %380 = vector.extract_strided_slice %5 {offsets = [7, 0, 0], sizes = [1, 32, 32], strides = [1, 1, 1]} : vector<8x32x32xf32> to vector<1x32x32xf32>
    %381 = vector.shape_cast %380 : vector<1x32x32xf32> to vector<32x32xf32>
    %382 = vector.broadcast %379 : f32 to vector<32x32xf32>
    %383 = arith.mulf %382, %381 : vector<32x32xf32>
    %384 = arith.addf %378, %383 : vector<32x32xf32>
    %385 = vector.shape_cast %384 : vector<32x32xf32> to vector<1x32x32xf32>
    %cst_138 = arith.constant dense<0.000000e+00> : vector<1xf32>
    %386 = vector.multi_reduction <add>, %385, %cst_138 [1, 2] : vector<1x32x32xf32> to vector<1xf32>
    %387 = vector.shape_cast %386 : vector<1xf32> to vector<1x1x1xf32>
    %388 = vector.extract %387[0, 0, 0] : f32 from vector<1x1x1xf32>
    %389 = vector.broadcast %388 : f32 to vector<1x1xf32>
    %390 = arith.addf %354, %389 : vector<1x1xf32>
    %391 = arith.mulf %384, %384 : vector<32x32xf32>
    %392 = vector.shape_cast %391 : vector<32x32xf32> to vector<1x32x32xf32>
    %cst_139 = arith.constant dense<0.000000e+00> : vector<1xf32>
    %393 = vector.multi_reduction <add>, %392, %cst_139 [1, 2] : vector<1x32x32xf32> to vector<1xf32>
    %394 = vector.shape_cast %393 : vector<1xf32> to vector<1x1x1xf32>
    %395 = vector.extract %394[0, 0, 0] : f32 from vector<1x1x1xf32>
    %396 = vector.broadcast %395 : f32 to vector<1x1xf32>
    %397 = arith.addf %361, %396 : vector<1x1xf32>
    %cst_140 = arith.constant 4.8828125E-4 : f32
    %398 = vector.broadcast %cst_140 : f32 to vector<1x1xf32>
    %399 = arith.mulf %390, %398 : vector<1x1xf32>
    %cst_141 = arith.constant 4.8828125E-4 : f32
    %400 = vector.broadcast %cst_141 : f32 to vector<1x1xf32>
    %401 = arith.mulf %397, %400 : vector<1x1xf32>
    %402 = arith.mulf %399, %399 : vector<1x1xf32>
    %403 = arith.subf %401, %402 : vector<1x1xf32>
    %cst_142 = arith.constant 0.000000e+00 : f32
    %404 = vector.broadcast %cst_142 : f32 to vector<1x1xf32>
    %405 = arith.maximumf %403, %404 : vector<1x1xf32>
    %cst_143 = arith.constant 9.99999974E-6 : f32
    %406 = vector.broadcast %cst_143 : f32 to vector<1x1xf32>
    %407 = arith.addf %405, %406 : vector<1x1xf32>
    %408 = math.rsqrt %407 : vector<1x1xf32>
    %c0_144 = arith.constant 0 : index
    %c3_145 = arith.constant 3 : index
    %409 = memref.load %arg5[%c0_144, %c3_145] : memref<2x8xf32, #tpu.memory_space<smem>>
    %410 = vector.broadcast %409 : f32 to vector<1x1xf32>
    %411 = arith.mulf %410, %408 : vector<1x1xf32>
    %c1_146 = arith.constant 1 : index
    %c3_147 = arith.constant 3 : index
    %412 = memref.load %arg5[%c1_146, %c3_147] : memref<2x8xf32, #tpu.memory_space<smem>>
    %413 = arith.mulf %399, %411 : vector<1x1xf32>
    %414 = vector.broadcast %412 : f32 to vector<1x1xf32>
    %415 = arith.subf %414, %413 : vector<1x1xf32>
    %416 = vector.broadcast %411 : vector<1x1xf32> to vector<32x32xf32>
    %417 = arith.mulf %348, %416 : vector<32x32xf32>
    %418 = vector.broadcast %415 : vector<1x1xf32> to vector<32x32xf32>
    %419 = arith.addf %417, %418 : vector<32x32xf32>
    %c0_148 = arith.constant 0 : index
    %c3_149 = arith.constant 3 : index
    %c0_150 = arith.constant 0 : index
    %c0_151 = arith.constant 0 : index
    %420 = vector.load %arg6[%c0_148, %c3_149, %c0_150, %c0_151] : memref<2x8x32x32xf32, #tpu.memory_space<vmem>>, vector<1x1x32x32xf32>
    %421 = vector.shape_cast %420 : vector<1x1x32x32xf32> to vector<32x32xf32>
    %422 = vector.shape_cast %419 : vector<32x32xf32> to vector<1x1x32x32xf32>
    tpu.vector_store %arg6[%c0_148, %c3_149, %c0_150, %c0_151], %422 {strides = array<i32>} : memref<2x8x32x32xf32, #tpu.memory_space<vmem>>, vector<1x1x32x32xf32>,
    %423 = vector.broadcast %411 : vector<1x1xf32> to vector<32x32xf32>
    %424 = arith.mulf %384, %423 : vector<32x32xf32>
    %425 = vector.broadcast %415 : vector<1x1xf32> to vector<32x32xf32>
    %426 = arith.addf %424, %425 : vector<32x32xf32>
    %c1_152 = arith.constant 1 : index
    %c3_153 = arith.constant 3 : index
    %c0_154 = arith.constant 0 : index
    %c0_155 = arith.constant 0 : index
    %427 = vector.load %arg6[%c1_152, %c3_153, %c0_154, %c0_155] : memref<2x8x32x32xf32, #tpu.memory_space<vmem>>, vector<1x1x32x32xf32>
    %428 = vector.shape_cast %427 : vector<1x1x32x32xf32> to vector<32x32xf32>
    %429 = vector.shape_cast %426 : vector<32x32xf32> to vector<1x1x32x32xf32>
    tpu.vector_store %arg6[%c1_152, %c3_153, %c0_154, %c0_155], %429 {strides = array<i32>} : memref<2x8x32x32xf32, #tpu.memory_space<vmem>>, vector<1x1x32x32xf32>,
    %cst_156 = arith.constant 0.000000e+00 : f32
    %430 = vector.broadcast %cst_156 : f32 to vector<1x1xf32>
    %cst_157 = arith.constant 0.000000e+00 : f32
    %431 = vector.broadcast %cst_157 : f32 to vector<1x1xf32>
    %c4 = arith.constant 4 : index
    %c0_158 = arith.constant 0 : index
    %432 = memref.load %arg4[%c4, %c0_158] : memref<8x4xf32, #tpu.memory_space<smem>>
    %433 = vector.extract_strided_slice %5 {offsets = [0, 0, 0], sizes = [1, 32, 32], strides = [1, 1, 1]} : vector<8x32x32xf32> to vector<1x32x32xf32>
    %434 = vector.shape_cast %433 : vector<1x32x32xf32> to vector<32x32xf32>
    %435 = vector.broadcast %432 : f32 to vector<32x32xf32>
    %436 = arith.mulf %435, %434 : vector<32x32xf32>
    %c4_159 = arith.constant 4 : index
    %c1_160 = arith.constant 1 : index
    %437 = memref.load %arg4[%c4_159, %c1_160] : memref<8x4xf32, #tpu.memory_space<smem>>
    %438 = vector.extract_strided_slice %5 {offsets = [1, 0, 0], sizes = [1, 32, 32], strides = [1, 1, 1]} : vector<8x32x32xf32> to vector<1x32x32xf32>
    %439 = vector.shape_cast %438 : vector<1x32x32xf32> to vector<32x32xf32>
    %440 = vector.broadcast %437 : f32 to vector<32x32xf32>
    %441 = arith.mulf %440, %439 : vector<32x32xf32>
    %442 = arith.addf %436, %441 : vector<32x32xf32>
    %c4_161 = arith.constant 4 : index
    %c2_162 = arith.constant 2 : index
    %443 = memref.load %arg4[%c4_161, %c2_162] : memref<8x4xf32, #tpu.memory_space<smem>>
    %444 = vector.extract_strided_slice %5 {offsets = [2, 0, 0], sizes = [1, 32, 32], strides = [1, 1, 1]} : vector<8x32x32xf32> to vector<1x32x32xf32>
    %445 = vector.shape_cast %444 : vector<1x32x32xf32> to vector<32x32xf32>
    %446 = vector.broadcast %443 : f32 to vector<32x32xf32>
    %447 = arith.mulf %446, %445 : vector<32x32xf32>
    %448 = arith.addf %442, %447 : vector<32x32xf32>
    %c4_163 = arith.constant 4 : index
    %c3_164 = arith.constant 3 : index
    %449 = memref.load %arg4[%c4_163, %c3_164] : memref<8x4xf32, #tpu.memory_space<smem>>
    %450 = vector.extract_strided_slice %5 {offsets = [3, 0, 0], sizes = [1, 32, 32], strides = [1, 1, 1]} : vector<8x32x32xf32> to vector<1x32x32xf32>
    %451 = vector.shape_cast %450 : vector<1x32x32xf32> to vector<32x32xf32>
    %452 = vector.broadcast %449 : f32 to vector<32x32xf32>
    %453 = arith.mulf %452, %451 : vector<32x32xf32>
    %454 = arith.addf %448, %453 : vector<32x32xf32>
    %455 = vector.shape_cast %454 : vector<32x32xf32> to vector<1x32x32xf32>
    %cst_165 = arith.constant dense<0.000000e+00> : vector<1xf32>
    %456 = vector.multi_reduction <add>, %455, %cst_165 [1, 2] : vector<1x32x32xf32> to vector<1xf32>
    %457 = vector.shape_cast %456 : vector<1xf32> to vector<1x1x1xf32>
    %458 = vector.extract %457[0, 0, 0] : f32 from vector<1x1x1xf32>
    %459 = vector.broadcast %458 : f32 to vector<1x1xf32>
    %460 = arith.addf %430, %459 : vector<1x1xf32>
    %461 = arith.mulf %454, %454 : vector<32x32xf32>
    %462 = vector.shape_cast %461 : vector<32x32xf32> to vector<1x32x32xf32>
    %cst_166 = arith.constant dense<0.000000e+00> : vector<1xf32>
    %463 = vector.multi_reduction <add>, %462, %cst_166 [1, 2] : vector<1x32x32xf32> to vector<1xf32>
    %464 = vector.shape_cast %463 : vector<1xf32> to vector<1x1x1xf32>
    %465 = vector.extract %464[0, 0, 0] : f32 from vector<1x1x1xf32>
    %466 = vector.broadcast %465 : f32 to vector<1x1xf32>
    %467 = arith.addf %431, %466 : vector<1x1xf32>
    %c4_167 = arith.constant 4 : index
    %c0_168 = arith.constant 0 : index
    %468 = memref.load %arg4[%c4_167, %c0_168] : memref<8x4xf32, #tpu.memory_space<smem>>
    %469 = vector.extract_strided_slice %5 {offsets = [4, 0, 0], sizes = [1, 32, 32], strides = [1, 1, 1]} : vector<8x32x32xf32> to vector<1x32x32xf32>
    %470 = vector.shape_cast %469 : vector<1x32x32xf32> to vector<32x32xf32>
    %471 = vector.broadcast %468 : f32 to vector<32x32xf32>
    %472 = arith.mulf %471, %470 : vector<32x32xf32>
    %c4_169 = arith.constant 4 : index
    %c1_170 = arith.constant 1 : index
    %473 = memref.load %arg4[%c4_169, %c1_170] : memref<8x4xf32, #tpu.memory_space<smem>>
    %474 = vector.extract_strided_slice %5 {offsets = [5, 0, 0], sizes = [1, 32, 32], strides = [1, 1, 1]} : vector<8x32x32xf32> to vector<1x32x32xf32>
    %475 = vector.shape_cast %474 : vector<1x32x32xf32> to vector<32x32xf32>
    %476 = vector.broadcast %473 : f32 to vector<32x32xf32>
    %477 = arith.mulf %476, %475 : vector<32x32xf32>
    %478 = arith.addf %472, %477 : vector<32x32xf32>
    %c4_171 = arith.constant 4 : index
    %c2_172 = arith.constant 2 : index
    %479 = memref.load %arg4[%c4_171, %c2_172] : memref<8x4xf32, #tpu.memory_space<smem>>
    %480 = vector.extract_strided_slice %5 {offsets = [6, 0, 0], sizes = [1, 32, 32], strides = [1, 1, 1]} : vector<8x32x32xf32> to vector<1x32x32xf32>
    %481 = vector.shape_cast %480 : vector<1x32x32xf32> to vector<32x32xf32>
    %482 = vector.broadcast %479 : f32 to vector<32x32xf32>
    %483 = arith.mulf %482, %481 : vector<32x32xf32>
    %484 = arith.addf %478, %483 : vector<32x32xf32>
    %c4_173 = arith.constant 4 : index
    %c3_174 = arith.constant 3 : index
    %485 = memref.load %arg4[%c4_173, %c3_174] : memref<8x4xf32, #tpu.memory_space<smem>>
    %486 = vector.extract_strided_slice %5 {offsets = [7, 0, 0], sizes = [1, 32, 32], strides = [1, 1, 1]} : vector<8x32x32xf32> to vector<1x32x32xf32>
    %487 = vector.shape_cast %486 : vector<1x32x32xf32> to vector<32x32xf32>
    %488 = vector.broadcast %485 : f32 to vector<32x32xf32>
    %489 = arith.mulf %488, %487 : vector<32x32xf32>
    %490 = arith.addf %484, %489 : vector<32x32xf32>
    %491 = vector.shape_cast %490 : vector<32x32xf32> to vector<1x32x32xf32>
    %cst_175 = arith.constant dense<0.000000e+00> : vector<1xf32>
    %492 = vector.multi_reduction <add>, %491, %cst_175 [1, 2] : vector<1x32x32xf32> to vector<1xf32>
    %493 = vector.shape_cast %492 : vector<1xf32> to vector<1x1x1xf32>
    %494 = vector.extract %493[0, 0, 0] : f32 from vector<1x1x1xf32>
    %495 = vector.broadcast %494 : f32 to vector<1x1xf32>
    %496 = arith.addf %460, %495 : vector<1x1xf32>
    %497 = arith.mulf %490, %490 : vector<32x32xf32>
    %498 = vector.shape_cast %497 : vector<32x32xf32> to vector<1x32x32xf32>
    %cst_176 = arith.constant dense<0.000000e+00> : vector<1xf32>
    %499 = vector.multi_reduction <add>, %498, %cst_176 [1, 2] : vector<1x32x32xf32> to vector<1xf32>
    %500 = vector.shape_cast %499 : vector<1xf32> to vector<1x1x1xf32>
    %501 = vector.extract %500[0, 0, 0] : f32 from vector<1x1x1xf32>
    %502 = vector.broadcast %501 : f32 to vector<1x1xf32>
    %503 = arith.addf %467, %502 : vector<1x1xf32>
    %cst_177 = arith.constant 4.8828125E-4 : f32
    %504 = vector.broadcast %cst_177 : f32 to vector<1x1xf32>
    %505 = arith.mulf %496, %504 : vector<1x1xf32>
    %cst_178 = arith.constant 4.8828125E-4 : f32
    %506 = vector.broadcast %cst_178 : f32 to vector<1x1xf32>
    %507 = arith.mulf %503, %506 : vector<1x1xf32>
    %508 = arith.mulf %505, %505 : vector<1x1xf32>
    %509 = arith.subf %507, %508 : vector<1x1xf32>
    %cst_179 = arith.constant 0.000000e+00 : f32
    %510 = vector.broadcast %cst_179 : f32 to vector<1x1xf32>
    %511 = arith.maximumf %509, %510 : vector<1x1xf32>
    %cst_180 = arith.constant 9.99999974E-6 : f32
    %512 = vector.broadcast %cst_180 : f32 to vector<1x1xf32>
    %513 = arith.addf %511, %512 : vector<1x1xf32>
    %514 = math.rsqrt %513 : vector<1x1xf32>
    %c0_181 = arith.constant 0 : index
    %c4_182 = arith.constant 4 : index
    %515 = memref.load %arg5[%c0_181, %c4_182] : memref<2x8xf32, #tpu.memory_space<smem>>
    %516 = vector.broadcast %515 : f32 to vector<1x1xf32>
    %517 = arith.mulf %516, %514 : vector<1x1xf32>
    %c1_183 = arith.constant 1 : index
    %c4_184 = arith.constant 4 : index
    %518 = memref.load %arg5[%c1_183, %c4_184] : memref<2x8xf32, #tpu.memory_space<smem>>
    %519 = arith.mulf %505, %517 : vector<1x1xf32>
    %520 = vector.broadcast %518 : f32 to vector<1x1xf32>
    %521 = arith.subf %520, %519 : vector<1x1xf32>
    %522 = vector.broadcast %517 : vector<1x1xf32> to vector<32x32xf32>
    %523 = arith.mulf %454, %522 : vector<32x32xf32>
    %524 = vector.broadcast %521 : vector<1x1xf32> to vector<32x32xf32>
    %525 = arith.addf %523, %524 : vector<32x32xf32>
    %c0_185 = arith.constant 0 : index
    %c4_186 = arith.constant 4 : index
    %c0_187 = arith.constant 0 : index
    %c0_188 = arith.constant 0 : index
    %526 = vector.load %arg6[%c0_185, %c4_186, %c0_187, %c0_188] : memref<2x8x32x32xf32, #tpu.memory_space<vmem>>, vector<1x1x32x32xf32>
    %527 = vector.shape_cast %526 : vector<1x1x32x32xf32> to vector<32x32xf32>
    %528 = vector.shape_cast %525 : vector<32x32xf32> to vector<1x1x32x32xf32>
    tpu.vector_store %arg6[%c0_185, %c4_186, %c0_187, %c0_188], %528 {strides = array<i32>} : memref<2x8x32x32xf32, #tpu.memory_space<vmem>>, vector<1x1x32x32xf32>,
    %529 = vector.broadcast %517 : vector<1x1xf32> to vector<32x32xf32>
    %530 = arith.mulf %490, %529 : vector<32x32xf32>
    %531 = vector.broadcast %521 : vector<1x1xf32> to vector<32x32xf32>
    %532 = arith.addf %530, %531 : vector<32x32xf32>
    %c1_189 = arith.constant 1 : index
    %c4_190 = arith.constant 4 : index
    %c0_191 = arith.constant 0 : index
    %c0_192 = arith.constant 0 : index
    %533 = vector.load %arg6[%c1_189, %c4_190, %c0_191, %c0_192] : memref<2x8x32x32xf32, #tpu.memory_space<vmem>>, vector<1x1x32x32xf32>
    %534 = vector.shape_cast %533 : vector<1x1x32x32xf32> to vector<32x32xf32>
    %535 = vector.shape_cast %532 : vector<32x32xf32> to vector<1x1x32x32xf32>
    tpu.vector_store %arg6[%c1_189, %c4_190, %c0_191, %c0_192], %535 {strides = array<i32>} : memref<2x8x32x32xf32, #tpu.memory_space<vmem>>, vector<1x1x32x32xf32>,
    %cst_193 = arith.constant 0.000000e+00 : f32
    %536 = vector.broadcast %cst_193 : f32 to vector<1x1xf32>
    %cst_194 = arith.constant 0.000000e+00 : f32
    %537 = vector.broadcast %cst_194 : f32 to vector<1x1xf32>
    %c5 = arith.constant 5 : index
    %c0_195 = arith.constant 0 : index
    %538 = memref.load %arg4[%c5, %c0_195] : memref<8x4xf32, #tpu.memory_space<smem>>
    %539 = vector.extract_strided_slice %5 {offsets = [0, 0, 0], sizes = [1, 32, 32], strides = [1, 1, 1]} : vector<8x32x32xf32> to vector<1x32x32xf32>
    %540 = vector.shape_cast %539 : vector<1x32x32xf32> to vector<32x32xf32>
    %541 = vector.broadcast %538 : f32 to vector<32x32xf32>
    %542 = arith.mulf %541, %540 : vector<32x32xf32>
    %c5_196 = arith.constant 5 : index
    %c1_197 = arith.constant 1 : index
    %543 = memref.load %arg4[%c5_196, %c1_197] : memref<8x4xf32, #tpu.memory_space<smem>>
    %544 = vector.extract_strided_slice %5 {offsets = [1, 0, 0], sizes = [1, 32, 32], strides = [1, 1, 1]} : vector<8x32x32xf32> to vector<1x32x32xf32>
    %545 = vector.shape_cast %544 : vector<1x32x32xf32> to vector<32x32xf32>
    %546 = vector.broadcast %543 : f32 to vector<32x32xf32>
    %547 = arith.mulf %546, %545 : vector<32x32xf32>
    %548 = arith.addf %542, %547 : vector<32x32xf32>
    %c5_198 = arith.constant 5 : index
    %c2_199 = arith.constant 2 : index
    %549 = memref.load %arg4[%c5_198, %c2_199] : memref<8x4xf32, #tpu.memory_space<smem>>
    %550 = vector.extract_strided_slice %5 {offsets = [2, 0, 0], sizes = [1, 32, 32], strides = [1, 1, 1]} : vector<8x32x32xf32> to vector<1x32x32xf32>
    %551 = vector.shape_cast %550 : vector<1x32x32xf32> to vector<32x32xf32>
    %552 = vector.broadcast %549 : f32 to vector<32x32xf32>
    %553 = arith.mulf %552, %551 : vector<32x32xf32>
    %554 = arith.addf %548, %553 : vector<32x32xf32>
    %c5_200 = arith.constant 5 : index
    %c3_201 = arith.constant 3 : index
    %555 = memref.load %arg4[%c5_200, %c3_201] : memref<8x4xf32, #tpu.memory_space<smem>>
    %556 = vector.extract_strided_slice %5 {offsets = [3, 0, 0], sizes = [1, 32, 32], strides = [1, 1, 1]} : vector<8x32x32xf32> to vector<1x32x32xf32>
    %557 = vector.shape_cast %556 : vector<1x32x32xf32> to vector<32x32xf32>
    %558 = vector.broadcast %555 : f32 to vector<32x32xf32>
    %559 = arith.mulf %558, %557 : vector<32x32xf32>
    %560 = arith.addf %554, %559 : vector<32x32xf32>
    %561 = vector.shape_cast %560 : vector<32x32xf32> to vector<1x32x32xf32>
    %cst_202 = arith.constant dense<0.000000e+00> : vector<1xf32>
    %562 = vector.multi_reduction <add>, %561, %cst_202 [1, 2] : vector<1x32x32xf32> to vector<1xf32>
    %563 = vector.shape_cast %562 : vector<1xf32> to vector<1x1x1xf32>
    %564 = vector.extract %563[0, 0, 0] : f32 from vector<1x1x1xf32>
    %565 = vector.broadcast %564 : f32 to vector<1x1xf32>
    %566 = arith.addf %536, %565 : vector<1x1xf32>
    %567 = arith.mulf %560, %560 : vector<32x32xf32>
    %568 = vector.shape_cast %567 : vector<32x32xf32> to vector<1x32x32xf32>
    %cst_203 = arith.constant dense<0.000000e+00> : vector<1xf32>
    %569 = vector.multi_reduction <add>, %568, %cst_203 [1, 2] : vector<1x32x32xf32> to vector<1xf32>
    %570 = vector.shape_cast %569 : vector<1xf32> to vector<1x1x1xf32>
    %571 = vector.extract %570[0, 0, 0] : f32 from vector<1x1x1xf32>
    %572 = vector.broadcast %571 : f32 to vector<1x1xf32>
    %573 = arith.addf %537, %572 : vector<1x1xf32>
    %c5_204 = arith.constant 5 : index
    %c0_205 = arith.constant 0 : index
    %574 = memref.load %arg4[%c5_204, %c0_205] : memref<8x4xf32, #tpu.memory_space<smem>>
    %575 = vector.extract_strided_slice %5 {offsets = [4, 0, 0], sizes = [1, 32, 32], strides = [1, 1, 1]} : vector<8x32x32xf32> to vector<1x32x32xf32>
    %576 = vector.shape_cast %575 : vector<1x32x32xf32> to vector<32x32xf32>
    %577 = vector.broadcast %574 : f32 to vector<32x32xf32>
    %578 = arith.mulf %577, %576 : vector<32x32xf32>
    %c5_206 = arith.constant 5 : index
    %c1_207 = arith.constant 1 : index
    %579 = memref.load %arg4[%c5_206, %c1_207] : memref<8x4xf32, #tpu.memory_space<smem>>
    %580 = vector.extract_strided_slice %5 {offsets = [5, 0, 0], sizes = [1, 32, 32], strides = [1, 1, 1]} : vector<8x32x32xf32> to vector<1x32x32xf32>
    %581 = vector.shape_cast %580 : vector<1x32x32xf32> to vector<32x32xf32>
    %582 = vector.broadcast %579 : f32 to vector<32x32xf32>
    %583 = arith.mulf %582, %581 : vector<32x32xf32>
    %584 = arith.addf %578, %583 : vector<32x32xf32>
    %c5_208 = arith.constant 5 : index
    %c2_209 = arith.constant 2 : index
    %585 = memref.load %arg4[%c5_208, %c2_209] : memref<8x4xf32, #tpu.memory_space<smem>>
    %586 = vector.extract_strided_slice %5 {offsets = [6, 0, 0], sizes = [1, 32, 32], strides = [1, 1, 1]} : vector<8x32x32xf32> to vector<1x32x32xf32>
    %587 = vector.shape_cast %586 : vector<1x32x32xf32> to vector<32x32xf32>
    %588 = vector.broadcast %585 : f32 to vector<32x32xf32>
    %589 = arith.mulf %588, %587 : vector<32x32xf32>
    %590 = arith.addf %584, %589 : vector<32x32xf32>
    %c5_210 = arith.constant 5 : index
    %c3_211 = arith.constant 3 : index
    %591 = memref.load %arg4[%c5_210, %c3_211] : memref<8x4xf32, #tpu.memory_space<smem>>
    %592 = vector.extract_strided_slice %5 {offsets = [7, 0, 0], sizes = [1, 32, 32], strides = [1, 1, 1]} : vector<8x32x32xf32> to vector<1x32x32xf32>
    %593 = vector.shape_cast %592 : vector<1x32x32xf32> to vector<32x32xf32>
    %594 = vector.broadcast %591 : f32 to vector<32x32xf32>
    %595 = arith.mulf %594, %593 : vector<32x32xf32>
    %596 = arith.addf %590, %595 : vector<32x32xf32>
    %597 = vector.shape_cast %596 : vector<32x32xf32> to vector<1x32x32xf32>
    %cst_212 = arith.constant dense<0.000000e+00> : vector<1xf32>
    %598 = vector.multi_reduction <add>, %597, %cst_212 [1, 2] : vector<1x32x32xf32> to vector<1xf32>
    %599 = vector.shape_cast %598 : vector<1xf32> to vector<1x1x1xf32>
    %600 = vector.extract %599[0, 0, 0] : f32 from vector<1x1x1xf32>
    %601 = vector.broadcast %600 : f32 to vector<1x1xf32>
    %602 = arith.addf %566, %601 : vector<1x1xf32>
    %603 = arith.mulf %596, %596 : vector<32x32xf32>
    %604 = vector.shape_cast %603 : vector<32x32xf32> to vector<1x32x32xf32>
    %cst_213 = arith.constant dense<0.000000e+00> : vector<1xf32>
    %605 = vector.multi_reduction <add>, %604, %cst_213 [1, 2] : vector<1x32x32xf32> to vector<1xf32>
    %606 = vector.shape_cast %605 : vector<1xf32> to vector<1x1x1xf32>
    %607 = vector.extract %606[0, 0, 0] : f32 from vector<1x1x1xf32>
    %608 = vector.broadcast %607 : f32 to vector<1x1xf32>
    %609 = arith.addf %573, %608 : vector<1x1xf32>
    %cst_214 = arith.constant 4.8828125E-4 : f32
    %610 = vector.broadcast %cst_214 : f32 to vector<1x1xf32>
    %611 = arith.mulf %602, %610 : vector<1x1xf32>
    %cst_215 = arith.constant 4.8828125E-4 : f32
    %612 = vector.broadcast %cst_215 : f32 to vector<1x1xf32>
    %613 = arith.mulf %609, %612 : vector<1x1xf32>
    %614 = arith.mulf %611, %611 : vector<1x1xf32>
    %615 = arith.subf %613, %614 : vector<1x1xf32>
    %cst_216 = arith.constant 0.000000e+00 : f32
    %616 = vector.broadcast %cst_216 : f32 to vector<1x1xf32>
    %617 = arith.maximumf %615, %616 : vector<1x1xf32>
    %cst_217 = arith.constant 9.99999974E-6 : f32
    %618 = vector.broadcast %cst_217 : f32 to vector<1x1xf32>
    %619 = arith.addf %617, %618 : vector<1x1xf32>
    %620 = math.rsqrt %619 : vector<1x1xf32>
    %c0_218 = arith.constant 0 : index
    %c5_219 = arith.constant 5 : index
    %621 = memref.load %arg5[%c0_218, %c5_219] : memref<2x8xf32, #tpu.memory_space<smem>>
    %622 = vector.broadcast %621 : f32 to vector<1x1xf32>
    %623 = arith.mulf %622, %620 : vector<1x1xf32>
    %c1_220 = arith.constant 1 : index
    %c5_221 = arith.constant 5 : index
    %624 = memref.load %arg5[%c1_220, %c5_221] : memref<2x8xf32, #tpu.memory_space<smem>>
    %625 = arith.mulf %611, %623 : vector<1x1xf32>
    %626 = vector.broadcast %624 : f32 to vector<1x1xf32>
    %627 = arith.subf %626, %625 : vector<1x1xf32>
    %628 = vector.broadcast %623 : vector<1x1xf32> to vector<32x32xf32>
    %629 = arith.mulf %560, %628 : vector<32x32xf32>
    %630 = vector.broadcast %627 : vector<1x1xf32> to vector<32x32xf32>
    %631 = arith.addf %629, %630 : vector<32x32xf32>
    %c0_222 = arith.constant 0 : index
    %c5_223 = arith.constant 5 : index
    %c0_224 = arith.constant 0 : index
    %c0_225 = arith.constant 0 : index
    %632 = vector.load %arg6[%c0_222, %c5_223, %c0_224, %c0_225] : memref<2x8x32x32xf32, #tpu.memory_space<vmem>>, vector<1x1x32x32xf32>
    %633 = vector.shape_cast %632 : vector<1x1x32x32xf32> to vector<32x32xf32>
    %634 = vector.shape_cast %631 : vector<32x32xf32> to vector<1x1x32x32xf32>
    tpu.vector_store %arg6[%c0_222, %c5_223, %c0_224, %c0_225], %634 {strides = array<i32>} : memref<2x8x32x32xf32, #tpu.memory_space<vmem>>, vector<1x1x32x32xf32>,
    %635 = vector.broadcast %623 : vector<1x1xf32> to vector<32x32xf32>
    %636 = arith.mulf %596, %635 : vector<32x32xf32>
    %637 = vector.broadcast %627 : vector<1x1xf32> to vector<32x32xf32>
    %638 = arith.addf %636, %637 : vector<32x32xf32>
    %c1_226 = arith.constant 1 : index
    %c5_227 = arith.constant 5 : index
    %c0_228 = arith.constant 0 : index
    %c0_229 = arith.constant 0 : index
    %639 = vector.load %arg6[%c1_226, %c5_227, %c0_228, %c0_229] : memref<2x8x32x32xf32, #tpu.memory_space<vmem>>, vector<1x1x32x32xf32>
    %640 = vector.shape_cast %639 : vector<1x1x32x32xf32> to vector<32x32xf32>
    %641 = vector.shape_cast %638 : vector<32x32xf32> to vector<1x1x32x32xf32>
    tpu.vector_store %arg6[%c1_226, %c5_227, %c0_228, %c0_229], %641 {strides = array<i32>} : memref<2x8x32x32xf32, #tpu.memory_space<vmem>>, vector<1x1x32x32xf32>,
    %cst_230 = arith.constant 0.000000e+00 : f32
    %642 = vector.broadcast %cst_230 : f32 to vector<1x1xf32>
    %cst_231 = arith.constant 0.000000e+00 : f32
    %643 = vector.broadcast %cst_231 : f32 to vector<1x1xf32>
    %c6 = arith.constant 6 : index
    %c0_232 = arith.constant 0 : index
    %644 = memref.load %arg4[%c6, %c0_232] : memref<8x4xf32, #tpu.memory_space<smem>>
    %645 = vector.extract_strided_slice %5 {offsets = [0, 0, 0], sizes = [1, 32, 32], strides = [1, 1, 1]} : vector<8x32x32xf32> to vector<1x32x32xf32>
    %646 = vector.shape_cast %645 : vector<1x32x32xf32> to vector<32x32xf32>
    %647 = vector.broadcast %644 : f32 to vector<32x32xf32>
    %648 = arith.mulf %647, %646 : vector<32x32xf32>
    %c6_233 = arith.constant 6 : index
    %c1_234 = arith.constant 1 : index
    %649 = memref.load %arg4[%c6_233, %c1_234] : memref<8x4xf32, #tpu.memory_space<smem>>
    %650 = vector.extract_strided_slice %5 {offsets = [1, 0, 0], sizes = [1, 32, 32], strides = [1, 1, 1]} : vector<8x32x32xf32> to vector<1x32x32xf32>
    %651 = vector.shape_cast %650 : vector<1x32x32xf32> to vector<32x32xf32>
    %652 = vector.broadcast %649 : f32 to vector<32x32xf32>
    %653 = arith.mulf %652, %651 : vector<32x32xf32>
    %654 = arith.addf %648, %653 : vector<32x32xf32>
    %c6_235 = arith.constant 6 : index
    %c2_236 = arith.constant 2 : index
    %655 = memref.load %arg4[%c6_235, %c2_236] : memref<8x4xf32, #tpu.memory_space<smem>>
    %656 = vector.extract_strided_slice %5 {offsets = [2, 0, 0], sizes = [1, 32, 32], strides = [1, 1, 1]} : vector<8x32x32xf32> to vector<1x32x32xf32>
    %657 = vector.shape_cast %656 : vector<1x32x32xf32> to vector<32x32xf32>
    %658 = vector.broadcast %655 : f32 to vector<32x32xf32>
    %659 = arith.mulf %658, %657 : vector<32x32xf32>
    %660 = arith.addf %654, %659 : vector<32x32xf32>
    %c6_237 = arith.constant 6 : index
    %c3_238 = arith.constant 3 : index
    %661 = memref.load %arg4[%c6_237, %c3_238] : memref<8x4xf32, #tpu.memory_space<smem>>
    %662 = vector.extract_strided_slice %5 {offsets = [3, 0, 0], sizes = [1, 32, 32], strides = [1, 1, 1]} : vector<8x32x32xf32> to vector<1x32x32xf32>
    %663 = vector.shape_cast %662 : vector<1x32x32xf32> to vector<32x32xf32>
    %664 = vector.broadcast %661 : f32 to vector<32x32xf32>
    %665 = arith.mulf %664, %663 : vector<32x32xf32>
    %666 = arith.addf %660, %665 : vector<32x32xf32>
    %667 = vector.shape_cast %666 : vector<32x32xf32> to vector<1x32x32xf32>
    %cst_239 = arith.constant dense<0.000000e+00> : vector<1xf32>
    %668 = vector.multi_reduction <add>, %667, %cst_239 [1, 2] : vector<1x32x32xf32> to vector<1xf32>
    %669 = vector.shape_cast %668 : vector<1xf32> to vector<1x1x1xf32>
    %670 = vector.extract %669[0, 0, 0] : f32 from vector<1x1x1xf32>
    %671 = vector.broadcast %670 : f32 to vector<1x1xf32>
    %672 = arith.addf %642, %671 : vector<1x1xf32>
    %673 = arith.mulf %666, %666 : vector<32x32xf32>
    %674 = vector.shape_cast %673 : vector<32x32xf32> to vector<1x32x32xf32>
    %cst_240 = arith.constant dense<0.000000e+00> : vector<1xf32>
    %675 = vector.multi_reduction <add>, %674, %cst_240 [1, 2] : vector<1x32x32xf32> to vector<1xf32>
    %676 = vector.shape_cast %675 : vector<1xf32> to vector<1x1x1xf32>
    %677 = vector.extract %676[0, 0, 0] : f32 from vector<1x1x1xf32>
    %678 = vector.broadcast %677 : f32 to vector<1x1xf32>
    %679 = arith.addf %643, %678 : vector<1x1xf32>
    %c6_241 = arith.constant 6 : index
    %c0_242 = arith.constant 0 : index
    %680 = memref.load %arg4[%c6_241, %c0_242] : memref<8x4xf32, #tpu.memory_space<smem>>
    %681 = vector.extract_strided_slice %5 {offsets = [4, 0, 0], sizes = [1, 32, 32], strides = [1, 1, 1]} : vector<8x32x32xf32> to vector<1x32x32xf32>
    %682 = vector.shape_cast %681 : vector<1x32x32xf32> to vector<32x32xf32>
    %683 = vector.broadcast %680 : f32 to vector<32x32xf32>
    %684 = arith.mulf %683, %682 : vector<32x32xf32>
    %c6_243 = arith.constant 6 : index
    %c1_244 = arith.constant 1 : index
    %685 = memref.load %arg4[%c6_243, %c1_244] : memref<8x4xf32, #tpu.memory_space<smem>>
    %686 = vector.extract_strided_slice %5 {offsets = [5, 0, 0], sizes = [1, 32, 32], strides = [1, 1, 1]} : vector<8x32x32xf32> to vector<1x32x32xf32>
    %687 = vector.shape_cast %686 : vector<1x32x32xf32> to vector<32x32xf32>
    %688 = vector.broadcast %685 : f32 to vector<32x32xf32>
    %689 = arith.mulf %688, %687 : vector<32x32xf32>
    %690 = arith.addf %684, %689 : vector<32x32xf32>
    %c6_245 = arith.constant 6 : index
    %c2_246 = arith.constant 2 : index
    %691 = memref.load %arg4[%c6_245, %c2_246] : memref<8x4xf32, #tpu.memory_space<smem>>
    %692 = vector.extract_strided_slice %5 {offsets = [6, 0, 0], sizes = [1, 32, 32], strides = [1, 1, 1]} : vector<8x32x32xf32> to vector<1x32x32xf32>
    %693 = vector.shape_cast %692 : vector<1x32x32xf32> to vector<32x32xf32>
    %694 = vector.broadcast %691 : f32 to vector<32x32xf32>
    %695 = arith.mulf %694, %693 : vector<32x32xf32>
    %696 = arith.addf %690, %695 : vector<32x32xf32>
    %c6_247 = arith.constant 6 : index
    %c3_248 = arith.constant 3 : index
    %697 = memref.load %arg4[%c6_247, %c3_248] : memref<8x4xf32, #tpu.memory_space<smem>>
    %698 = vector.extract_strided_slice %5 {offsets = [7, 0, 0], sizes = [1, 32, 32], strides = [1, 1, 1]} : vector<8x32x32xf32> to vector<1x32x32xf32>
    %699 = vector.shape_cast %698 : vector<1x32x32xf32> to vector<32x32xf32>
    %700 = vector.broadcast %697 : f32 to vector<32x32xf32>
    %701 = arith.mulf %700, %699 : vector<32x32xf32>
    %702 = arith.addf %696, %701 : vector<32x32xf32>
    %703 = vector.shape_cast %702 : vector<32x32xf32> to vector<1x32x32xf32>
    %cst_249 = arith.constant dense<0.000000e+00> : vector<1xf32>
    %704 = vector.multi_reduction <add>, %703, %cst_249 [1, 2] : vector<1x32x32xf32> to vector<1xf32>
    %705 = vector.shape_cast %704 : vector<1xf32> to vector<1x1x1xf32>
    %706 = vector.extract %705[0, 0, 0] : f32 from vector<1x1x1xf32>
    %707 = vector.broadcast %706 : f32 to vector<1x1xf32>
    %708 = arith.addf %672, %707 : vector<1x1xf32>
    %709 = arith.mulf %702, %702 : vector<32x32xf32>
    %710 = vector.shape_cast %709 : vector<32x32xf32> to vector<1x32x32xf32>
    %cst_250 = arith.constant dense<0.000000e+00> : vector<1xf32>
    %711 = vector.multi_reduction <add>, %710, %cst_250 [1, 2] : vector<1x32x32xf32> to vector<1xf32>
    %712 = vector.shape_cast %711 : vector<1xf32> to vector<1x1x1xf32>
    %713 = vector.extract %712[0, 0, 0] : f32 from vector<1x1x1xf32>
    %714 = vector.broadcast %713 : f32 to vector<1x1xf32>
    %715 = arith.addf %679, %714 : vector<1x1xf32>
    %cst_251 = arith.constant 4.8828125E-4 : f32
    %716 = vector.broadcast %cst_251 : f32 to vector<1x1xf32>
    %717 = arith.mulf %708, %716 : vector<1x1xf32>
    %cst_252 = arith.constant 4.8828125E-4 : f32
    %718 = vector.broadcast %cst_252 : f32 to vector<1x1xf32>
    %719 = arith.mulf %715, %718 : vector<1x1xf32>
    %720 = arith.mulf %717, %717 : vector<1x1xf32>
    %721 = arith.subf %719, %720 : vector<1x1xf32>
    %cst_253 = arith.constant 0.000000e+00 : f32
    %722 = vector.broadcast %cst_253 : f32 to vector<1x1xf32>
    %723 = arith.maximumf %721, %722 : vector<1x1xf32>
    %cst_254 = arith.constant 9.99999974E-6 : f32
    %724 = vector.broadcast %cst_254 : f32 to vector<1x1xf32>
    %725 = arith.addf %723, %724 : vector<1x1xf32>
    %726 = math.rsqrt %725 : vector<1x1xf32>
    %c0_255 = arith.constant 0 : index
    %c6_256 = arith.constant 6 : index
    %727 = memref.load %arg5[%c0_255, %c6_256] : memref<2x8xf32, #tpu.memory_space<smem>>
    %728 = vector.broadcast %727 : f32 to vector<1x1xf32>
    %729 = arith.mulf %728, %726 : vector<1x1xf32>
    %c1_257 = arith.constant 1 : index
    %c6_258 = arith.constant 6 : index
    %730 = memref.load %arg5[%c1_257, %c6_258] : memref<2x8xf32, #tpu.memory_space<smem>>
    %731 = arith.mulf %717, %729 : vector<1x1xf32>
    %732 = vector.broadcast %730 : f32 to vector<1x1xf32>
    %733 = arith.subf %732, %731 : vector<1x1xf32>
    %734 = vector.broadcast %729 : vector<1x1xf32> to vector<32x32xf32>
    %735 = arith.mulf %666, %734 : vector<32x32xf32>
    %736 = vector.broadcast %733 : vector<1x1xf32> to vector<32x32xf32>
    %737 = arith.addf %735, %736 : vector<32x32xf32>
    %c0_259 = arith.constant 0 : index
    %c6_260 = arith.constant 6 : index
    %c0_261 = arith.constant 0 : index
    %c0_262 = arith.constant 0 : index
    %738 = vector.load %arg6[%c0_259, %c6_260, %c0_261, %c0_262] : memref<2x8x32x32xf32, #tpu.memory_space<vmem>>, vector<1x1x32x32xf32>
    %739 = vector.shape_cast %738 : vector<1x1x32x32xf32> to vector<32x32xf32>
    %740 = vector.shape_cast %737 : vector<32x32xf32> to vector<1x1x32x32xf32>
    tpu.vector_store %arg6[%c0_259, %c6_260, %c0_261, %c0_262], %740 {strides = array<i32>} : memref<2x8x32x32xf32, #tpu.memory_space<vmem>>, vector<1x1x32x32xf32>,
    %741 = vector.broadcast %729 : vector<1x1xf32> to vector<32x32xf32>
    %742 = arith.mulf %702, %741 : vector<32x32xf32>
    %743 = vector.broadcast %733 : vector<1x1xf32> to vector<32x32xf32>
    %744 = arith.addf %742, %743 : vector<32x32xf32>
    %c1_263 = arith.constant 1 : index
    %c6_264 = arith.constant 6 : index
    %c0_265 = arith.constant 0 : index
    %c0_266 = arith.constant 0 : index
    %745 = vector.load %arg6[%c1_263, %c6_264, %c0_265, %c0_266] : memref<2x8x32x32xf32, #tpu.memory_space<vmem>>, vector<1x1x32x32xf32>
    %746 = vector.shape_cast %745 : vector<1x1x32x32xf32> to vector<32x32xf32>
    %747 = vector.shape_cast %744 : vector<32x32xf32> to vector<1x1x32x32xf32>
    tpu.vector_store %arg6[%c1_263, %c6_264, %c0_265, %c0_266], %747 {strides = array<i32>} : memref<2x8x32x32xf32, #tpu.memory_space<vmem>>, vector<1x1x32x32xf32>,
    %cst_267 = arith.constant 0.000000e+00 : f32
    %748 = vector.broadcast %cst_267 : f32 to vector<1x1xf32>
    %cst_268 = arith.constant 0.000000e+00 : f32
    %749 = vector.broadcast %cst_268 : f32 to vector<1x1xf32>
    %c7 = arith.constant 7 : index
    %c0_269 = arith.constant 0 : index
    %750 = memref.load %arg4[%c7, %c0_269] : memref<8x4xf32, #tpu.memory_space<smem>>
    %751 = vector.extract_strided_slice %5 {offsets = [0, 0, 0], sizes = [1, 32, 32], strides = [1, 1, 1]} : vector<8x32x32xf32> to vector<1x32x32xf32>
    %752 = vector.shape_cast %751 : vector<1x32x32xf32> to vector<32x32xf32>
    %753 = vector.broadcast %750 : f32 to vector<32x32xf32>
    %754 = arith.mulf %753, %752 : vector<32x32xf32>
    %c7_270 = arith.constant 7 : index
    %c1_271 = arith.constant 1 : index
    %755 = memref.load %arg4[%c7_270, %c1_271] : memref<8x4xf32, #tpu.memory_space<smem>>
    %756 = vector.extract_strided_slice %5 {offsets = [1, 0, 0], sizes = [1, 32, 32], strides = [1, 1, 1]} : vector<8x32x32xf32> to vector<1x32x32xf32>
    %757 = vector.shape_cast %756 : vector<1x32x32xf32> to vector<32x32xf32>
    %758 = vector.broadcast %755 : f32 to vector<32x32xf32>
    %759 = arith.mulf %758, %757 : vector<32x32xf32>
    %760 = arith.addf %754, %759 : vector<32x32xf32>
    %c7_272 = arith.constant 7 : index
    %c2_273 = arith.constant 2 : index
    %761 = memref.load %arg4[%c7_272, %c2_273] : memref<8x4xf32, #tpu.memory_space<smem>>
    %762 = vector.extract_strided_slice %5 {offsets = [2, 0, 0], sizes = [1, 32, 32], strides = [1, 1, 1]} : vector<8x32x32xf32> to vector<1x32x32xf32>
    %763 = vector.shape_cast %762 : vector<1x32x32xf32> to vector<32x32xf32>
    %764 = vector.broadcast %761 : f32 to vector<32x32xf32>
    %765 = arith.mulf %764, %763 : vector<32x32xf32>
    %766 = arith.addf %760, %765 : vector<32x32xf32>
    %c7_274 = arith.constant 7 : index
    %c3_275 = arith.constant 3 : index
    %767 = memref.load %arg4[%c7_274, %c3_275] : memref<8x4xf32, #tpu.memory_space<smem>>
    %768 = vector.extract_strided_slice %5 {offsets = [3, 0, 0], sizes = [1, 32, 32], strides = [1, 1, 1]} : vector<8x32x32xf32> to vector<1x32x32xf32>
    %769 = vector.shape_cast %768 : vector<1x32x32xf32> to vector<32x32xf32>
    %770 = vector.broadcast %767 : f32 to vector<32x32xf32>
    %771 = arith.mulf %770, %769 : vector<32x32xf32>
    %772 = arith.addf %766, %771 : vector<32x32xf32>
    %773 = vector.shape_cast %772 : vector<32x32xf32> to vector<1x32x32xf32>
    %cst_276 = arith.constant dense<0.000000e+00> : vector<1xf32>
    %774 = vector.multi_reduction <add>, %773, %cst_276 [1, 2] : vector<1x32x32xf32> to vector<1xf32>
    %775 = vector.shape_cast %774 : vector<1xf32> to vector<1x1x1xf32>
    %776 = vector.extract %775[0, 0, 0] : f32 from vector<1x1x1xf32>
    %777 = vector.broadcast %776 : f32 to vector<1x1xf32>
    %778 = arith.addf %748, %777 : vector<1x1xf32>
    %779 = arith.mulf %772, %772 : vector<32x32xf32>
    %780 = vector.shape_cast %779 : vector<32x32xf32> to vector<1x32x32xf32>
    %cst_277 = arith.constant dense<0.000000e+00> : vector<1xf32>
    %781 = vector.multi_reduction <add>, %780, %cst_277 [1, 2] : vector<1x32x32xf32> to vector<1xf32>
    %782 = vector.shape_cast %781 : vector<1xf32> to vector<1x1x1xf32>
    %783 = vector.extract %782[0, 0, 0] : f32 from vector<1x1x1xf32>
    %784 = vector.broadcast %783 : f32 to vector<1x1xf32>
    %785 = arith.addf %749, %784 : vector<1x1xf32>
    %c7_278 = arith.constant 7 : index
    %c0_279 = arith.constant 0 : index
    %786 = memref.load %arg4[%c7_278, %c0_279] : memref<8x4xf32, #tpu.memory_space<smem>>
    %787 = vector.extract_strided_slice %5 {offsets = [4, 0, 0], sizes = [1, 32, 32], strides = [1, 1, 1]} : vector<8x32x32xf32> to vector<1x32x32xf32>
    %788 = vector.shape_cast %787 : vector<1x32x32xf32> to vector<32x32xf32>
    %789 = vector.broadcast %786 : f32 to vector<32x32xf32>
    %790 = arith.mulf %789, %788 : vector<32x32xf32>
    %c7_280 = arith.constant 7 : index
    %c1_281 = arith.constant 1 : index
    %791 = memref.load %arg4[%c7_280, %c1_281] : memref<8x4xf32, #tpu.memory_space<smem>>
    %792 = vector.extract_strided_slice %5 {offsets = [5, 0, 0], sizes = [1, 32, 32], strides = [1, 1, 1]} : vector<8x32x32xf32> to vector<1x32x32xf32>
    %793 = vector.shape_cast %792 : vector<1x32x32xf32> to vector<32x32xf32>
    %794 = vector.broadcast %791 : f32 to vector<32x32xf32>
    %795 = arith.mulf %794, %793 : vector<32x32xf32>
    %796 = arith.addf %790, %795 : vector<32x32xf32>
    %c7_282 = arith.constant 7 : index
    %c2_283 = arith.constant 2 : index
    %797 = memref.load %arg4[%c7_282, %c2_283] : memref<8x4xf32, #tpu.memory_space<smem>>
    %798 = vector.extract_strided_slice %5 {offsets = [6, 0, 0], sizes = [1, 32, 32], strides = [1, 1, 1]} : vector<8x32x32xf32> to vector<1x32x32xf32>
    %799 = vector.shape_cast %798 : vector<1x32x32xf32> to vector<32x32xf32>
    %800 = vector.broadcast %797 : f32 to vector<32x32xf32>
    %801 = arith.mulf %800, %799 : vector<32x32xf32>
    %802 = arith.addf %796, %801 : vector<32x32xf32>
    %c7_284 = arith.constant 7 : index
    %c3_285 = arith.constant 3 : index
    %803 = memref.load %arg4[%c7_284, %c3_285] : memref<8x4xf32, #tpu.memory_space<smem>>
    %804 = vector.extract_strided_slice %5 {offsets = [7, 0, 0], sizes = [1, 32, 32], strides = [1, 1, 1]} : vector<8x32x32xf32> to vector<1x32x32xf32>
    %805 = vector.shape_cast %804 : vector<1x32x32xf32> to vector<32x32xf32>
    %806 = vector.broadcast %803 : f32 to vector<32x32xf32>
    %807 = arith.mulf %806, %805 : vector<32x32xf32>
    %808 = arith.addf %802, %807 : vector<32x32xf32>
    %809 = vector.shape_cast %808 : vector<32x32xf32> to vector<1x32x32xf32>
    %cst_286 = arith.constant dense<0.000000e+00> : vector<1xf32>
    %810 = vector.multi_reduction <add>, %809, %cst_286 [1, 2] : vector<1x32x32xf32> to vector<1xf32>
    %811 = vector.shape_cast %810 : vector<1xf32> to vector<1x1x1xf32>
    %812 = vector.extract %811[0, 0, 0] : f32 from vector<1x1x1xf32>
    %813 = vector.broadcast %812 : f32 to vector<1x1xf32>
    %814 = arith.addf %778, %813 : vector<1x1xf32>
    %815 = arith.mulf %808, %808 : vector<32x32xf32>
    %816 = vector.shape_cast %815 : vector<32x32xf32> to vector<1x32x32xf32>
    %cst_287 = arith.constant dense<0.000000e+00> : vector<1xf32>
    %817 = vector.multi_reduction <add>, %816, %cst_287 [1, 2] : vector<1x32x32xf32> to vector<1xf32>
    %818 = vector.shape_cast %817 : vector<1xf32> to vector<1x1x1xf32>
    %819 = vector.extract %818[0, 0, 0] : f32 from vector<1x1x1xf32>
    %820 = vector.broadcast %819 : f32 to vector<1x1xf32>
    %821 = arith.addf %785, %820 : vector<1x1xf32>
    %cst_288 = arith.constant 4.8828125E-4 : f32
    %822 = vector.broadcast %cst_288 : f32 to vector<1x1xf32>
    %823 = arith.mulf %814, %822 : vector<1x1xf32>
    %cst_289 = arith.constant 4.8828125E-4 : f32
    %824 = vector.broadcast %cst_289 : f32 to vector<1x1xf32>
    %825 = arith.mulf %821, %824 : vector<1x1xf32>
    %826 = arith.mulf %823, %823 : vector<1x1xf32>
    %827 = arith.subf %825, %826 : vector<1x1xf32>
    %cst_290 = arith.constant 0.000000e+00 : f32
    %828 = vector.broadcast %cst_290 : f32 to vector<1x1xf32>
    %829 = arith.maximumf %827, %828 : vector<1x1xf32>
    %cst_291 = arith.constant 9.99999974E-6 : f32
    %830 = vector.broadcast %cst_291 : f32 to vector<1x1xf32>
    %831 = arith.addf %829, %830 : vector<1x1xf32>
    %832 = math.rsqrt %831 : vector<1x1xf32>
    %c0_292 = arith.constant 0 : index
    %c7_293 = arith.constant 7 : index
    %833 = memref.load %arg5[%c0_292, %c7_293] : memref<2x8xf32, #tpu.memory_space<smem>>
    %834 = vector.broadcast %833 : f32 to vector<1x1xf32>
    %835 = arith.mulf %834, %832 : vector<1x1xf32>
    %c1_294 = arith.constant 1 : index
    %c7_295 = arith.constant 7 : index
    %836 = memref.load %arg5[%c1_294, %c7_295] : memref<2x8xf32, #tpu.memory_space<smem>>
    %837 = arith.mulf %823, %835 : vector<1x1xf32>
    %838 = vector.broadcast %836 : f32 to vector<1x1xf32>
    %839 = arith.subf %838, %837 : vector<1x1xf32>
    %840 = vector.broadcast %835 : vector<1x1xf32> to vector<32x32xf32>
    %841 = arith.mulf %772, %840 : vector<32x32xf32>
    %842 = vector.broadcast %839 : vector<1x1xf32> to vector<32x32xf32>
    %843 = arith.addf %841, %842 : vector<32x32xf32>
    %c0_296 = arith.constant 0 : index
    %c7_297 = arith.constant 7 : index
    %c0_298 = arith.constant 0 : index
    %c0_299 = arith.constant 0 : index
    %844 = vector.load %arg6[%c0_296, %c7_297, %c0_298, %c0_299] : memref<2x8x32x32xf32, #tpu.memory_space<vmem>>, vector<1x1x32x32xf32>
    %845 = vector.shape_cast %844 : vector<1x1x32x32xf32> to vector<32x32xf32>
    %846 = vector.shape_cast %843 : vector<32x32xf32> to vector<1x1x32x32xf32>
    tpu.vector_store %arg6[%c0_296, %c7_297, %c0_298, %c0_299], %846 {strides = array<i32>} : memref<2x8x32x32xf32, #tpu.memory_space<vmem>>, vector<1x1x32x32xf32>,
    %847 = vector.broadcast %835 : vector<1x1xf32> to vector<32x32xf32>
    %848 = arith.mulf %808, %847 : vector<32x32xf32>
    %849 = vector.broadcast %839 : vector<1x1xf32> to vector<32x32xf32>
    %850 = arith.addf %848, %849 : vector<32x32xf32>
    %c1_300 = arith.constant 1 : index
    %c7_301 = arith.constant 7 : index
    %c0_302 = arith.constant 0 : index
    %c0_303 = arith.constant 0 : index
    %851 = vector.load %arg6[%c1_300, %c7_301, %c0_302, %c0_303] : memref<2x8x32x32xf32, #tpu.memory_space<vmem>>, vector<1x1x32x32xf32>
    %852 = vector.shape_cast %851 : vector<1x1x32x32xf32> to vector<32x32xf32>
    %853 = vector.shape_cast %850 : vector<32x32xf32> to vector<1x1x32x32xf32>
    tpu.vector_store %arg6[%c1_300, %c7_301, %c0_302, %c0_303], %853 {strides = array<i32>} : memref<2x8x32x32xf32, #tpu.memory_space<vmem>>, vector<1x1x32x32xf32>,
    return
  }
  func.func @transform_0(%arg0: i32) -> (i32, i32) {
    %c0_i32 = arith.constant 0 : i32
    %c0_i32_0 = arith.constant 0 : i32
    %c0_i32_1 = arith.constant 0 : i32
    return %c0_i32, %c0_i32_0 : i32, i32
  }
  func.func @transform_1(%arg0: i32) -> (i32, i32) {
    %c0_i32 = arith.constant 0 : i32
    %c0_i32_0 = arith.constant 0 : i32
    %c0_i32_1 = arith.constant 0 : i32
    return %c0_i32, %c0_i32_0 : i32, i32
  }
  func.func @transform_2(%arg0: i32) -> (i32, i32, i32) {
    %c0_i32 = arith.constant 0 : i32
    %c0_i32_0 = arith.constant 0 : i32
    %c0_i32_1 = arith.constant 0 : i32
    %c0_i32_2 = arith.constant 0 : i32
    return %c0_i32, %c0_i32_0, %c0_i32_1 : i32, i32, i32
  }
  func.func @transform_3(%arg0: i32) -> (i32, i32) {
    %c0_i32 = arith.constant 0 : i32
    %c0_i32_0 = arith.constant 0 : i32
    %c0_i32_1 = arith.constant 0 : i32
    return %c0_i32, %c0_i32_0 : i32, i32
  }
  func.func @transform_4(%arg0: i32) -> (i32, i32) {
    %c0_i32 = arith.constant 0 : i32
    %c0_i32_0 = arith.constant 0 : i32
    %c0_i32_1 = arith.constant 0 : i32
    return %c0_i32, %c0_i32_0 : i32, i32
  }
  func.func @transform_5(%arg0: i32) -> (i32, i32, i32, i32) {
    %c0_i32 = arith.constant 0 : i32
    %c0_i32_0 = arith.constant 0 : i32
    %c0_i32_1 = arith.constant 0 : i32
    %c0_i32_2 = arith.constant 0 : i32
    %c0_i32_3 = arith.constant 0 : i32
    return %c0_i32, %c0_i32_0, %c0_i32_1, %c0_i32_2 : i32, i32, i32, i32
  }
}

</mosaic_0001>

<bundles_post_ra>
// kernel: tpu_custom_call.1
= control target key start
LH: loop header
LB: loop body
LE: loop exit
PB: predicated region body
PF: predicated region fallthrough
CT: control target
= control target key end

     0   :  { %10 = vsyncpa [#allocation4], 0  ;;  %s4166_s0 = inlined_call_operand.vmem [shape: f32[128,16], index: 0, kind: input, shape index: {}]   ;;  %s4167_s1 = inlined_call_operand.vmem [shape: f32[16,32], index: 1, kind: input, shape index: {}]   ;;  %s4168_s2 = inlined_call_operand.vmem [shape: f32[8,32,16], index: 2, kind: input, shape index: {}]   ;;  %s4169_s3 = inlined_call_operand.vmem [shape: f32[8,4], index: 3, kind: input, shape index: {}]   ;;  %s4170_s4 = inlined_call_operand.vmem [shape: f32[2,8], index: 4, kind: input, shape index: {}]   ;;  %s4171_s5 = inlined_call_operand.hbm [shape: f32[2,8,32,32], index: 5, kind: output, shape index: {}]  }
   0x1   :  { %11 = vsyncpa [#allocation6], 0 }
   0x2   :  { %12 = vsyncpa [#allocation3], 0  ;;  %s24_s20 = sshll.u32 %s4169_s3, 4  ;;  %s33_s23 = sshll.u32 %s4170_s4, 4  ;;  %s25_s20 = int_to_ptr.vmem [resolvable:$true] %s24_s20  ;;  %s34_s23 = int_to_ptr.vmem [resolvable:$true] %s33_s23 }
   0x3   :  { %s2337_s24 = smov [#allocation2]   ;;  %s2338_s25 = smov [#allocation5]  }
   0x4   :  { %27 = dma.vmem_to_smem %s25_s20, 128, %s2337_s24, [#allocation4]  }
   0x5   :  { %36 = dma.vmem_to_smem %s34_s23, 32, %s2338_s25, [#allocation6]  }
   0x6   :  { %2331 = dma.done.wait [#allocation4], 128  }
   0x7   :  { %2332 = vsyncadd [#allocation4], 4294967168 }
   0x8   :  { %2333 = dma.done.wait [#allocation6], 32  }
   0x9   :  { %2334 = vsyncadd [#allocation6], 4294967264 }
   0xa   :  { %45 = sfence }
   0xb   :  { %v63_v0 = vld [vmem:[%s4167_s1 + $0x8] sm:$0xff]  ;;  %v62_v1 = vld [vmem:[%s4167_s1] sm:$0xff]  ;;  %vm64_vm0 = vcmask 130048   ;;  %v48_v4 = vld [vmem:[%s4166_s0 + $0x10] sm:$0xff]  ;;  %s2172_s11 = sld [smem:[#allocation2 + $0x200]]  ;;  %vm574_vm1 = vcmask 261120  }
   0xc   :  { %127 = vmatpush.msra.mxu0 %v63_v0  ;;  %v46_v2 = vld [vmem:[%s4166_s0] sm:$0xff]  ;;  %2196 = vmatpush.msra.mxu3 %v63_v0  ;;  %v47_v3 = vld [vmem:[%s4166_s0 + $0x8] sm:$0xff]  ;;  %v49_v5 = vld [vmem:[%s4166_s0 + $0x18] sm:$0xff]  ;;  %s2173_s12 = sld [smem:[#allocation2 + $0x201]] }
   0xd   :  { %v50_v6 = vld [vmem:[%s4166_s0 + $0x20] sm:$0xff]  ;;  %v51_v8 = vld [vmem:[%s4166_s0 + $0x28] sm:$0xff]  ;;  %v52_v10 = vld [vmem:[%s4166_s0 + $0x30] sm:$0xff]  ;;  %s2576_s13 = sld [smem:[#allocation2 + $0x202]] }
   0xe   :  { %128 = vmatpush.msra.mxu0 %v62_v1  ;;  %2197 = vmatpush.msra.mxu3 %v62_v1  ;;  %v58_v7 = vld [vmem:[%s4166_s0 + $0x60] sm:$0xff]  ;;  %v59_v9 = vld [vmem:[%s4166_s0 + $0x68] sm:$0xff]  ;;  %v60_v11 = vld [vmem:[%s4166_s0 + $0x70] sm:$0xff]  ;;  %s2154_s14 = sld [smem:[#allocation2 + $0x80]] }
   0xf   :  { %2102 = vmatmul.msk.f32.vlgmr.msra.gmra.mxu0 %vm64_vm0, %v46_v2  ;;  %2114 = vmatmul.msk.f32.vlgmr.msra.gmra.mxu3 %vm64_vm0, %v58_v7  ;;  %v53_v12 = vld [vmem:[%s4166_s0 + $0x38] sm:$0xff]  ;;  %v54_v14 = vld [vmem:[%s4166_s0 + $0x40] sm:$0xff]  ;;  %v55_v15 = vld [vmem:[%s4166_s0 + $0x48] sm:$0xff]  ;;  %s2155_s15 = sld [smem:[#allocation2 + $0x81]] }
  0x10   :  { %v61_v13 = vld [vmem:[%s4166_s0 + $0x78] sm:$0xff]  ;;  %v56_v16 = vld [vmem:[%s4166_s0 + $0x50] sm:$0xff]  ;;  %v178_v20 = vld [vmem:[%s4168_s2] sm:$0xff]  ;;  %s2156_s16 = sld [smem:[#allocation2 + $0x82]] }
  0x11   :  { %v57_v17 = vld [vmem:[%s4166_s0 + $0x58] sm:$0xff]  ;;  %v179_v22 = vld [vmem:[%s4168_s2 + $0x8] sm:$0xff]  ;;  %v180_v24 = vld [vmem:[%s4168_s2 + $0x10] sm:$0xff]  ;;  %s538_s17 = sld [smem:[#allocation2]] }
  0x12   :  { %v182_v25 = vld [vmem:[%s4168_s2 + $0x20] sm:$0xff]  ;;  %v181_v27 = vld [vmem:[%s4168_s2 + $0x18] sm:$0xff]  ;;  %v183_v28 = vld [vmem:[%s4168_s2 + $0x28] sm:$0xff]  ;;  %s2150_s18 = sld [smem:[#allocation2 + $0x1]] }
  0x13   :  { %v186_v30 = vld [vmem:[%s4168_s2 + $0x40] sm:$0xff]  ;;  %v184_v31 = vld [vmem:[%s4168_s2 + $0x30] sm:$0xff]  ;;  %v187_v34 = vld [vmem:[%s4168_s2 + $0x48] sm:$0xff]  ;;  %s2580_s19 = sld [smem:[#allocation2 + $0x2]] }
  0x14   :  { %v185_v35 = vld [vmem:[%s4168_s2 + $0x38] sm:$0xff]  ;;  %v190_v38 = vld [vmem:[%s4168_s2 + $0x60] sm:$0xff]  ;;  %v188_v39 = vld [vmem:[%s4168_s2 + $0x50] sm:$0xff]  ;;  %s2190_s20 = sld [smem:[#allocation2 + $0x380]] }
  0x15   :  { %v191_v42 = vld [vmem:[%s4168_s2 + $0x68] sm:$0xff]  ;;  %v189_v43 = vld [vmem:[%s4168_s2 + $0x58] sm:$0xff]  ;;  %v192_v45 = vld [vmem:[%s4168_s2 + $0x70] sm:$0xff]  ;;  %s2582_s21 = sld [smem:[#allocation2 + $0x381]] }
  0x16   :  { %v194_v46 = vld [vmem:[%s4168_s2 + $0x80] sm:$0xff]  ;;  %v193_v49 = vld [vmem:[%s4168_s2 + $0x78] sm:$0xff]  ;;  %v195_v50 = vld [vmem:[%s4168_s2 + $0x88] sm:$0xff]  ;;  %s2584_s22 = sld [smem:[#allocation2 + $0x382]] }
  0x17   :  { %2103 = vmatmul.msk.f32.gmra.mxu0 %vm64_vm0, %v47_v3  ;;  %2115 = vmatmul.msk.f32.gmra.mxu3 %vm64_vm0, %v59_v9  ;;  %v196_v52 = vld [vmem:[%s4168_s2 + $0x90] sm:$0xff]  ;;  %v198_v53 = vld [vmem:[%s4168_s2 + $0xa0] sm:$0xff]  ;;  %v197_v55 = vld [vmem:[%s4168_s2 + $0x98] sm:$0xff]  ;;  %s2160_s23 = sld [smem:[#allocation2 + $0x100]]  ;;  %v2602_v7 = vstv %s538_s17 }
  0x18   :  { %v202_v54 = vld [vmem:[%s4168_s2 + $0xc0] sm:$0xff]  ;;  %v199_v56 = vld [vmem:[%s4168_s2 + $0xa8] sm:$0xff]  ;;  %v200_v59 = vld [vmem:[%s4168_s2 + $0xb0] sm:$0xff]  ;;  %s2166_s24 = sld [smem:[#allocation2 + $0x180]]  ;;  %4280 = vst [vmem:[#allocation14_spill] sm:$0xff] %v2602_v7 }
  0x19   :  { %v203_v57 = vld [vmem:[%s4168_s2 + $0xc8] sm:$0xff]  ;;  %v206_v58 = vld [vmem:[%s4168_s2 + $0xe0] sm:$0xff]  ;;  %v204_v60 = vld [vmem:[%s4168_s2 + $0xd0] sm:$0xff]  ;;  %s2161_s25 = sld [smem:[#allocation2 + $0x101]] }
  0x1a   :  { %v207_v61 = vld [vmem:[%s4168_s2 + $0xe8] sm:$0xff]  ;;  %v201_v62 = vld [vmem:[%s4168_s2 + $0xb8] sm:$0xff]  ;;  %v208_v0 = vld [vmem:[%s4168_s2 + $0xf0] sm:$0xff]  ;;  %s2162_s26 = sld [smem:[#allocation2 + $0x102]] }
  0x1b   :  { %v205_v63 = vld [vmem:[%s4168_s2 + $0xd8] sm:$0xff]  ;;  %s2590_s27 = sld [smem:[#allocation2 + $0x181]] }
  0x1c   :  { %v209_v1 = vld [vmem:[%s4168_s2 + $0xf8] sm:$0xff]  ;;  %s2586_s2 = sld [smem:[#allocation2 + $0x203]] }
  0x1d   :  { %s2596_s3 = sld [smem:[#allocation2 + $0x182]] }
  0x1e   :  { %s2598_s28 = sld [smem:[#allocation2 + $0x83]] }
  0x1f   :  { %2104 = vmatmul.msk.f32.gmra.mxu0 %vm64_vm0, %v48_v4  ;;  %2116 = vmatmul.msk.f32.gmra.mxu3 %vm64_vm0, %v60_v11  ;;  %v2592_v4 = vstv %s2172_s11  ;;  %s2604_s4 = sld [smem:[#allocation2 + $0x3]]  ;;  %v2612_v11 = vstv %s2155_s15 }
  0x20   :  { %4277 = vst [vmem:[#allocation11_spill] sm:$0xff] %v2592_v4  ;;  %s2614_s29 = sld [smem:[#allocation2 + $0x383]] }
  0x21   :  { %4282 = vst [vmem:[#allocation16_spill] sm:$0xff] %v2612_v11  ;;  %s2627_s30 = sld [smem:[#allocation2 + $0x103]] }
  0x22   :  { %s2661_s6 = sld [smem:[#allocation2 + $0x280]] }
  0x23   :  { %s2681_s7 = sld [smem:[#allocation2 + $0x281]] }
  0x24   :  { %s2702_s8 = sld [smem:[#allocation2 + $0x282]] }
  0x25   :  { %s2715_s1 = sld [smem:[#allocation2 + $0x183]] }
  0x26   :  { %s2765_s9 = sld [smem:[#allocation2 + $0x300]] }
  0x27   :  { %2105 = vmatmul.msk.f32.gmra.mxu0 %vm64_vm0, %v49_v5  ;;  %2117 = vmatmul.msk.f32.gmra.mxu3 %vm64_vm0, %v61_v13  ;;  %v2594_v5 = vstv %s2154_s14  ;;  %s3065_s0 = sld [smem:[#allocation2 + $0x283]] }
  0x28   :  { %4278 = vst [vmem:[#allocation12_spill] sm:$0xff] %v2594_v5  ;;  %s3081_s10 = sld [smem:[#allocation2 + $0x301]] }
  0x29   :  { %s3105_s11 = sld [smem:[#allocation2 + $0x302]] }
  0x2f   :  { %2106 = vmatmul.msk.f32.gmra.mxu0 %vm64_vm0, %v50_v6  ;;  %v2600_v6 = vstv %s2173_s12  ;;  %s3114_s12 = sld [smem:[#allocation2 + $0x303]] }
  0x30   :  { %4279 = vst [vmem:[#allocation13_spill] sm:$0xff] %v2600_v6 }
  0x37   :  { %2107 = vmatmul.msk.f32.gmra.mxu0 %vm64_vm0, %v51_v8  ;;  %v2606_v8 = vstv %s2190_s20 }
  0x38   :  { %4281 = vst [vmem:[#allocation15_spill] sm:$0xff] %v2606_v8 }
  0x3f   :  { %2108 = vmatmul.msk.f32.gmra.mxu0 %vm64_vm0, %v52_v10 }
  0x47   :  { %2109 = vmatmul.msk.f32.gmra.mxu0 %vm64_vm0, %v53_v12  ;;  %v2616_v12 = vstv %s2160_s23 }
  0x48   :  { %4283 = vst [vmem:[#allocation17_spill] sm:$0xff] %v2616_v12 }
  0x4f   :  { %2110 = vmatmul.msk.f32.gmra.mxu0 %vm64_vm0, %v54_v14  ;;  %v2621_v14 = vstv %s2576_s13 }
  0x50   :  { %4285 = vst [vmem:[#allocation19_spill] sm:$0xff] %v2621_v14 }
  0x57   :  { %2111 = vmatmul.msk.f32.gmra.mxu0 %vm64_vm0, %v55_v15  ;;  %v2623_v15 = vstv %s2156_s16 }
  0x58   :  { %4286 = vst [vmem:[#allocation20_spill] sm:$0xff] %v2623_v15 }
  0x5f   :  { %2112 = vmatmul.msk.f32.gmra.mxu0 %vm64_vm0, %v56_v16  ;;  %v2625_v16 = vstv %s2150_s18 }
  0x60   :  { %4287 = vst [vmem:[#allocation21_spill] sm:$0xff] %v2625_v16 }
  0x67   :  { %2113 = vmatmul.msk.f32.gmra.mxu0 %vm64_vm0, %v57_v17  ;;  %v2629_v17 = vstv %s2166_s24 }
  0x68   :  { %4288 = vst [vmem:[#allocation22_spill] sm:$0xff] %v2629_v17 }
  0x8c   :  { %v130_v18 = vpop.f32.mrf.mxu0 }
  0x92   :  { %v166_v32 = vpop.f32.mrf.mxu3 }
  0x94   :  { %v133_v19 = vpop.f32.mrf.mxu0 }
  0x95   :  { %236 = vmatpush.msra.mxu1 %v133_v19 }
  0x97   :  { %237 = vmatpush.msra.mxu1 %v130_v18 }
  0x98   :  { %2118 = vmatmul.msk.f32.vlgmr.msra.gmra.mxu1 %vm64_vm0, %v178_v20  ;;  %v2636_v20 = vstv %s2580_s19 }
  0x99   :  { %4290 = vst [vmem:[#allocation24_spill] sm:$0xff] %v2636_v20 }
  0x9a   :  { %v169_v36 = vpop.f32.mrf.mxu3 }
  0x9c   :  { %v136_v21 = vpop.f32.mrf.mxu0 }
  0xa0   :  { %2119 = vmatmul.msk.f32.gmra.mxu1 %vm64_vm0, %v179_v22  ;;  %v2641_v22 = vstv %s2582_s21  ;;  %s699_s21 = sld [smem:[#allocation5]] }
  0xa1   :  { %4291 = vst [vmem:[#allocation25_spill] sm:$0xff] %v2641_v22 }
  0xa2   :  { %v172_v41 = vpop.f32.mrf.mxu3 }
  0xa4   :  { %v139_v23 = vpop.f32.mrf.mxu0 }
  0xa5   :  { %277 = vmatpush.msra.mxu2 %v139_v23  ;;  %v2644_v23 = vstv %s2584_s22  ;;  %s2153_s22 = sld [smem:[#allocation5 + $0x80]] }
  0xa6   :  { %4292 = vst [vmem:[#allocation26_spill] sm:$0xff] %v2644_v23 }
  0xa7   :  { %278 = vmatpush.msra.mxu2 %v136_v21 }
  0xa8   :  { %2120 = vmatmul.msk.f32.gmra.mxu1 %vm64_vm0, %v180_v24  ;;  %2122 = vmatmul.msk.f32.vlgmr.msra.gmra.mxu2 %vm64_vm0, %v182_v25  ;;  %v2648_v25 = vstv %s2161_s25 }
  0xa9   :  { %4293 = vst [vmem:[#allocation27_spill] sm:$0xff] %v2648_v25 }
  0xaa   :  { %v175_v47 = vpop.f32.mrf.mxu3 }
  0xac   :  { %v142_v26 = vpop.f32.mrf.mxu0 }
  0xb0   :  { %2121 = vmatmul.msk.f32.gmra.mxu1 %vm64_vm0, %v181_v27  ;;  %2123 = vmatmul.msk.f32.gmra.mxu2 %vm64_vm0, %v183_v28 }
  0xb4   :  { %v145_v29 = vpop.f32.mrf.mxu0 }
  0xb5   :  { %318 = vmatpush.msrb.mxu3 %v145_v29 }
  0xb7   :  { %319 = vmatpush.msrb.mxu3 %v142_v26  ;;  %v2650_v26 = vstv %s2162_s26  ;;  %s3901_s26 = sld [smem:[#allocation5 + $0x1]] }
  0xb8   :  { %2126 = vmatmul.msk.f32.vlgmr.msrb.gmra.mxu3 %vm64_vm0, %v186_v30  ;;  %2124 = vmatmul.msk.f32.gmra.mxu2 %vm64_vm0, %v184_v31  ;;  %4294 = vst [vmem:[#allocation28_spill] sm:$0xff] %v2650_v26  ;;  %v2659_v30 = vstv %s2590_s27  ;;  %v2664_v31 = vstv %s2586_s2  ;;  %s2159_s27 = sld [smem:[#allocation5 + $0x81]] }
  0xb9   :  { %4295 = vst [vmem:[#allocation29_spill] sm:$0xff] %v2659_v30 }
  0xba   :  { %4296 = vst [vmem:[#allocation30_spill] sm:$0xff] %v2664_v31 }
  0xbc   :  { %v148_v33 = vpop.f32.mrf.mxu0 }
  0xc0   :  { %2127 = vmatmul.msk.f32.gmra.mxu3 %vm64_vm0, %v187_v34  ;;  %2125 = vmatmul.msk.f32.gmra.mxu2 %vm64_vm0, %v185_v35  ;;  %v2671_v34 = vstv %s2596_s3 }
  0xc4   :  { %v151_v37 = vpop.f32.mrf.mxu0 }
  0xc5   :  { %359 = vmatpush.msrb.mxu1 %v151_v37 }
  0xc7   :  { %360 = vmatpush.msrb.mxu1 %v148_v33 }
  0xc8   :  { %2130 = vmatmul.msk.f32.vlgmr.msrb.gmra.mxu1 %vm64_vm0, %v190_v38  ;;  %2128 = vmatmul.msk.f32.gmra.mxu3 %vm64_vm0, %v188_v39  ;;  %v2684_v39 = vstv %s2598_s28 }
  0xc9   :  { %482 = vmatpush.msra.mxu1 %v169_v36 }
  0xcb   :  { %483 = vmatpush.msra.mxu1 %v166_v32 }
  0xcc   :  { %v154_v40 = vpop.f32.mrf.mxu0 }
  0xd0   :  { %2131 = vmatmul.msk.f32.gmra.mxu1 %vm64_vm0, %v191_v42  ;;  %2129 = vmatmul.msk.f32.gmra.mxu3 %vm64_vm0, %v189_v43 }
  0xd4   :  { %v157_v44 = vpop.f32.mrf.mxu0 }
  0xd5   :  { %400 = vmatpush.msrb.mxu2 %v157_v44 }
  0xd7   :  { %401 = vmatpush.msrb.mxu2 %v154_v40  ;;  %v2687_v40 = vstv %s2604_s4 }
  0xd8   :  { %2132 = vmatmul.msk.f32.gmra.mxu1 %vm64_vm0, %v192_v45  ;;  %2134 = vmatmul.msk.f32.vlgmr.msrb.gmra.mxu2 %vm64_vm0, %v194_v46  ;;  %v2698_v45 = vstv %s2614_s29 }
  0xd9   :  { %523 = vmatpush.msra.mxu2 %v175_v47  ;;  %4297 = vst [vmem:[#allocation31_spill] sm:$0xff] %v2698_v45 }
  0xdb   :  { %524 = vmatpush.msra.mxu2 %v172_v41 }
  0xdc   :  { %v160_v48 = vpop.f32.mrf.mxu0 }
  0xe0   :  { %2133 = vmatmul.msk.f32.gmra.mxu1 %vm64_vm0, %v193_v49  ;;  %2135 = vmatmul.msk.f32.gmra.mxu2 %vm64_vm0, %v195_v50  ;;  %v2711_v50 = vstv %s2627_s30  ;;  %s3930_s30 = sld [smem:[#allocation5 + $0x2]] }
  0xe1   :  { %4298 = vst [vmem:[#allocation32_spill] sm:$0xff] %v2711_v50 }
  0xe4   :  { %v163_v51 = vpop.f32.mrf.mxu0 }
  0xe5   :  { %441 = vmatpush.msra.mxu3 %v163_v51 }
  0xe7   :  { %442 = vmatpush.msra.mxu3 %v160_v48 }
  0xe8   :  { %2136 = vmatmul.msk.f32.gmra.mxu2 %vm64_vm0, %v196_v52  ;;  %2138 = vmatmul.msk.f32.vlgmr.msra.gmra.mxu3 %vm64_vm0, %v198_v53 }
  0xe9   :  { %2142 = vmatmul.msk.f32.vlgmr.msra.gmra.mxu1 %vm64_vm0, %v202_v54 }
  0xf0   :  { %2137 = vmatmul.msk.f32.gmra.mxu2 %vm64_vm0, %v197_v55  ;;  %2139 = vmatmul.msk.f32.gmra.mxu3 %vm64_vm0, %v199_v56 }
  0xf1   :  { %2143 = vmatmul.msk.f32.gmra.mxu1 %vm64_vm0, %v203_v57 }
  0xf8   :  { %2146 = vmatmul.msk.f32.vlgmr.msra.gmra.mxu2 %vm64_vm0, %v206_v58  ;;  %2140 = vmatmul.msk.f32.gmra.mxu3 %vm64_vm0, %v200_v59 }
  0xf9   :  { %2144 = vmatmul.msk.f32.gmra.mxu1 %vm64_vm0, %v204_v60 }
 0x100   :  { %2147 = vmatmul.msk.f32.gmra.mxu2 %vm64_vm0, %v207_v61  ;;  %2141 = vmatmul.msk.f32.gmra.mxu3 %vm64_vm0, %v201_v62 }
 0x101   :  { %2145 = vmatmul.msk.f32.gmra.mxu1 %vm64_vm0, %v205_v63 }
 0x108   :  { %2148 = vmatmul.msk.f32.gmra.mxu2 %vm64_vm0, %v208_v0  ;;  %v2732_v0 = vstv %s2661_s6  ;;  %s2165_s6 = sld [smem:[#allocation5 + $0x82]] }
 0x110   :  { %2149 = vmatmul.msk.f32.gmra.mxu2 %vm64_vm0, %v209_v1 }
 0x115   :  { %v2578_v2 = vpop.f32.mrf.mxu1 }
 0x116   :  { %v1312_v9 = vmul.f32 %v2592_v4, %v2578_v2  ;;  %v733_v10 = vmul.f32 %v2594_v5, %v2578_v2  ;;  %v540_v19 = vmul.f32 %v2602_v7, %v2578_v2  ;;  %v1891_v21 = vmul.f32 %v2606_v8, %v2578_v2 }
 0x117   :  { %v926_v24 = vmul.f32 %v2616_v12, %v2578_v2  ;;  %v1119_v29 = vmul.f32 %v2629_v17, %v2578_v2 }
 0x11d   :  { %v2588_v3 = vpop.f32.mrf.mxu1 }
 0x11e   :  { %v1313_v27 = vmul.f32 %v2592_v4, %v2588_v3  ;;  %v734_v28 = vmul.f32 %v2594_v5, %v2588_v3  ;;  %v541_v32 = vmul.f32 %v2602_v7, %v2588_v3  ;;  %v1892_v33 = vmul.f32 %v2606_v8, %v2588_v3 }
 0x11f   :  { %v927_v38 = vmul.f32 %v2616_v12, %v2588_v3  ;;  %v1120_v46 = vmul.f32 %v2629_v17, %v2588_v3 }
 0x125   :  { %v2631_v18 = vpop.f32.mrf.mxu1 }
 0x126   :  { %4289 = vst [vmem:[#allocation23_spill] sm:$0xff] %v2631_v18  ;;  %v1314_v43 = vmul.f32 %v2592_v4, %v2631_v18  ;;  %v735_v44 = vmul.f32 %v2594_v5, %v2631_v18  ;;  %v542_v48 = vmul.f32 %v2602_v7, %v2631_v18  ;;  %v1893_v49 = vmul.f32 %v2606_v8, %v2631_v18 }
 0x127   :  { %v928_v55 = vmul.f32 %v2616_v12, %v2631_v18 }
 0x12b   :  { %v2618_v13 = vpop.f32.mrf.mxu2 }
 0x12c   :  { %4284 = vst [vmem:[#allocation18_spill] sm:$0xff] %v2618_v13  ;;  %v1318_v35 = vmul.f32 %v2600_v6, %v2618_v13  ;;  %v739_v36 = vmul.f32 %v2612_v11, %v2618_v13  ;;  %v546_v37 = vmul.f32 %v2625_v16, %v2618_v13  ;;  %v1897_v41 = vmul.f32 %v2641_v22, %v2618_v13 }
 0x12d   :  { %v932_v42 = vmul.f32 %v2648_v25, %v2618_v13  ;;  %v1125_v51 = vmul.f32 %v2659_v30, %v2618_v13  ;;  %v2723_v60 = vpop.f32.mrf.mxu1 }
 0x12e   :  { %v1322_v52 = vadd.f32 %v1318_v35, %v1312_v9  ;;  %v743_v53 = vadd.f32 %v739_v36, %v733_v10  ;;  %v550_v54 = vadd.f32 %v546_v37, %v540_v19  ;;  %v1901_v58 = vadd.f32 %v1897_v41, %v1891_v21  ;;  %4299 = vst [vmem:[#allocation33_spill] sm:$0xff] %v2723_v60 }
 0x12f   :  { %v936_v59 = vadd.f32 %v932_v42, %v926_v24  ;;  %v2736_v1 = vmul.f32 %v2592_v4, %v2723_v60  ;;  %v1121_v9 = vmul.f32 %v2629_v17, %v2631_v18  ;;  %v1129_v19 = vadd.f32 %v1125_v51, %v1119_v29 }
 0x130   :  { %v2744_v21 = vmul.f32 %v2594_v5, %v2723_v60  ;;  %v2748_v24 = vmul.f32 %v2602_v7, %v2723_v60  ;;  %v2752_v35 = vmul.f32 %v2606_v8, %v2723_v60  ;;  %v2755_v36 = vstv %s2681_s7 }
 0x131   :  { %v2759_v29 = vmul.f32 %v2616_v12, %v2723_v60  ;;  %v1505_v41 = vmul.f32 %v2732_v0, %v2578_v2  ;;  %v1511_v42 = vmul.f32 %v2755_v36, %v2618_v13  ;;  %v2782_v18 = vstv %s2715_s1 }
 0x132   :  { %4305 = vst [vmem:[#allocation39_spill] sm:$0xff] %v2782_v18  ;;  %v2785_v13 = vstv %s2702_s8 }
 0x133   :  { %v2704_v47 = vpop.f32.mrf.mxu2  ;;  %4300 = vst [vmem:[#allocation34_spill] sm:$0xff] %v2759_v29 }
 0x134   :  { %v1319_v56 = vmul.f32 %v2600_v6, %v2704_v47  ;;  %v740_v57 = vmul.f32 %v2612_v11, %v2704_v47  ;;  %v547_v61 = vmul.f32 %v2625_v16, %v2704_v47  ;;  %v1898_v62 = vmul.f32 %v2641_v22, %v2704_v47 }
 0x135   :  { %v933_v63 = vmul.f32 %v2648_v25, %v2704_v47  ;;  %v1126_v10 = vmul.f32 %v2659_v30, %v2704_v47 }
 0x136   :  { %v1323_v37 = vadd.f32 %v1319_v56, %v1313_v27  ;;  %v744_v51 = vadd.f32 %v740_v57, %v734_v28  ;;  %v551_v4 = vadd.f32 %v547_v61, %v541_v32  ;;  %v2767_v8 = vadd.f32 %v1898_v62, %v1892_v33 }
 0x137   :  { %v2769_v7 = vadd.f32 %v933_v63, %v927_v38  ;;  %v2777_v56 = vmul.f32 %v2629_v17, %v2723_v60  ;;  %v2779_v12 = vadd.f32 %v1126_v10, %v1120_v46  ;;  %v1515_v62 = vadd.f32 %v1511_v42, %v1505_v41 }
 0x139   :  { %4301 = vst [vmem:[#allocation35_spill] sm:$0xff] %v2769_v7 }
 0x13a   :  { %4303 = vst [vmem:[#allocation37_spill] sm:$0xff] %v2777_v56 }
 0x13b   :  { %v2771_v5 = vpop.f32.mrf.mxu3  ;;  %v2773_v27 = vpop.f32.mrf.mxu2  ;;  %4304 = vst [vmem:[#allocation38_spill] sm:$0xff] %v2779_v12 }
 0x13c   :  { %4302 = vst [vmem:[#allocation36_spill] sm:$0xff] %v2771_v5  ;;  %v1320_v28 = vmul.f32 %v2600_v6, %v2773_v27  ;;  %v1328_v32 = vmul.f32 %v2621_v14, %v2771_v5  ;;  %v741_v33 = vmul.f32 %v2612_v11, %v2773_v27  ;;  %v749_v38 = vmul.f32 %v2623_v15, %v2771_v5 }
 0x13d   :  { %v548_v46 = vmul.f32 %v2625_v16, %v2773_v27  ;;  %v556_v57 = vmul.f32 %v2636_v20, %v2771_v5  ;;  %v1899_v61 = vmul.f32 %v2641_v22, %v2773_v27  ;;  %v1907_v60 = vmul.f32 %v2644_v23, %v2771_v5 }
 0x13e   :  { %v2801_v63 = vadd.f32 %v1320_v28, %v1314_v43  ;;  %v1332_v10 = vadd.f32 %v1328_v32, %v1322_v52  ;;  %v2803_v17 = vadd.f32 %v741_v33, %v735_v44  ;;  %v753_v18 = vadd.f32 %v749_v38, %v743_v53 }
 0x13f   :  { %v2807_v12 = vadd.f32 %v548_v46, %v542_v48  ;;  %v560_v56 = vadd.f32 %v556_v57, %v550_v54  ;;  %v2809_v7 = vadd.f32 %v1899_v61, %v1893_v49  ;;  %v934_v29 = vmul.f32 %v2648_v25, %v2773_v27 }
 0x140   :  { %v942_v43 = vmul.f32 %v2650_v26, %v2771_v5  ;;  %v1127_v44 = vmul.f32 %v2659_v30, %v2773_v27  ;;  %v1135_v52 = vmul.f32 %v2671_v34, %v2771_v5  ;;  %v1506_v53 = vmul.f32 %v2732_v0, %v2588_v3 }
 0x141   :  { %v1512_v48 = vmul.f32 %v2755_v36, %v2704_v47  ;;  %v1521_v49 = vmul.f32 %v2785_v13, %v2771_v5  ;;  %v2826_v54 = vstv %s2765_s9  ;;  %v1911_v41 = vadd.f32 %v1907_v60, %v1901_v58 }
 0x142   :  { %v938_v42 = vadd.f32 %v934_v29, %v928_v55  ;;  %v946_v28 = vadd.f32 %v942_v43, %v936_v59  ;;  %v2828_v32 = vadd.f32 %v1127_v44, %v1121_v9  ;;  %v2834_v46 = vadd.f32 %v1135_v52, %v1129_v19 }
 0x143   :  { %v2830_v33 = vpop.f32.mrf.mxu3  ;;  %v2832_v38 = vpop.f32.mrf.mxu2  ;;  %v2836_v57 = vadd.f32 %v1512_v48, %v1506_v53  ;;  %v2838_v61 = vadd.f32 %v1521_v49, %v1515_v62  ;;  %v2842_v5 = vmul.f32 %v2826_v54, %v2578_v2 }
 0x144   :  { %v1321_v55 = vmul.f32 %v2600_v6, %v2832_v38  ;;  %v1329_v58 = vmul.f32 %v2621_v14, %v2830_v33  ;;  %v742_v59 = vmul.f32 %v2612_v11, %v2832_v38  ;;  %v750_v60 = vmul.f32 %v2623_v15, %v2830_v33 }
 0x145   :  { %v2852_v9 = vpop.f32.mrf.mxu1  ;;  %v549_v19 = vmul.f32 %v2625_v16, %v2832_v38  ;;  %v557_v2 = vmul.f32 %v2636_v20, %v2830_v33  ;;  %v1900_v29 = vmul.f32 %v2641_v22, %v2832_v38  ;;  %v1908_v62 = vmul.f32 %v2644_v23, %v2830_v33 }
 0x146   :  { %v2863_v43 = vadd.f32 %v1321_v55, %v2736_v1  ;;  %v1333_v44 = vadd.f32 %v1329_v58, %v1323_v37  ;;  %v1338_v52 = vmul.f32 %v2664_v31, %v2852_v9  ;;  %v2868_v53 = vadd.f32 %v742_v59, %v2744_v21 }
 0x147   :  { %v754_v48 = vadd.f32 %v750_v60, %v744_v51  ;;  %v759_v49 = vmul.f32 %v2684_v39, %v2852_v9  ;;  %v2873_v6 = vadd.f32 %v549_v19, %v2748_v24  ;;  %v561_v22 = vadd.f32 %v557_v2, %v551_v4  ;;  %v4310_v19 = vld [vmem:[#allocation34_spill] sm:$0xff] }
 0x148   :  { %v2875_v16 = vadd.f32 %v1338_v52, %v1332_v10  ;;  %v566_v1 = vmul.f32 %v2687_v40, %v2852_v9  ;;  %v2880_v37 = vadd.f32 %v1900_v29, %v2752_v35  ;;  %v1912_v55 = vadd.f32 %v1908_v62, %v2767_v8  ;;  %v4311_v29 = vld [vmem:[#allocation35_spill] sm:$0xff] }
 0x149   :  { %v2883_v21 = vadd.f32 %v759_v49, %v753_v18  ;;  %v1917_v51 = vmul.f32 %v2698_v45, %v2852_v9  ;;  %v935_v24 = vmul.f32 %v2648_v25, %v2832_v38  ;;  %v943_v4 = vmul.f32 %v2650_v26, %v2830_v33 }
 0x14a   :  { %4306 = vst [vmem:[#allocation40_spill] sm:$0xff] %v2875_v16  ;;  %v1346_v10 = vsel %vm574_vm1, %v2875_v16, 0.0  ;;  %v2893_v58 = vadd.f32 %v566_v1, %v560_v56  ;;  %v952_v35 = vmul.f32 %v2711_v50, %v2852_v9  ;;  %v1128_v8 = vmul.f32 %v2659_v30, %v2832_v38 }
 0x14b   :  { %4307 = vst [vmem:[#allocation41_spill] sm:$0xff] %v2883_v21  ;;  %v2899_v18 = vpop.f32.mrf.mxu3  ;;  %v767_v59 = vsel %vm574_vm1, %v2883_v21, 0.0  ;;  %v2903_v60 = vadd.f32 %v1917_v51, %v1911_v41  ;;  %v939_v2 = vadd.f32 %v935_v24, %v4310_v19  ;;  %v947_v62 = vadd.f32 %v943_v4, %v4311_v29 }
 0x14c   :  { %4308 = vst [vmem:[#allocation42_spill] sm:$0xff] %v2893_v58  ;;  %v1330_v56 = vmul.f32 %v2621_v14, %v2899_v18  ;;  %v751_v52 = vmul.f32 %v2623_v15, %v2899_v18  ;;  %v558_v49 = vmul.f32 %v2636_v20, %v2899_v18  ;;  %v575_v1 = vsel %vm574_vm1, %v2893_v58, 0.0 }
 0x14d   :  { %4309 = vst [vmem:[#allocation43_spill] sm:$0xff] %v2903_v60  ;;  %v2915_v25 = vpop.f32.mrf.mxu1  ;;  %v1909_v41 = vmul.f32 %v2644_v23, %v2899_v18  ;;  %v1925_v51 = vsel %vm574_vm1, %v2903_v60, 0.0  ;;  %v944_v24 = vmul.f32 %v2650_v26, %v2899_v18  ;;  %v2923_v4 = vadd.f32 %v952_v35, %v946_v28 }
 0x14e   :  { %v1334_v19 = vadd.f32 %v1330_v56, %v2801_v63  ;;  %v1339_v29 = vmul.f32 %v2664_v31, %v2915_v25  ;;  %v755_v11 = vadd.f32 %v751_v52, %v2803_v17  ;;  %v760_v30 = vmul.f32 %v2684_v39, %v2915_v25 }
 0x14f   :  { %4312 = vst [vmem:[#allocation34_spill] sm:$0xff] %v2923_v4  ;;  %v562_v16 = vadd.f32 %v558_v49, %v2807_v12  ;;  %v567_v60 = vmul.f32 %v2687_v40, %v2915_v25  ;;  %v1913_v58 = vadd.f32 %v1909_v41, %v2809_v7  ;;  %v1918_v28 = vmul.f32 %v2698_v45, %v2915_v25  ;;  %v4317_v49 = vld [vmem:[#allocation37_spill] sm:$0xff] }
 0x150   :  { %v2937_v35 = vadd.f32 %v1339_v29, %v1333_v44  ;;  %v2939_v63 = vadd.f32 %v760_v30, %v754_v48  ;;  %v948_v56 = vadd.f32 %v944_v24, %v938_v42  ;;  %v953_v17 = vmul.f32 %v2711_v50, %v2915_v25 }
 0x151   :  { %v2943_v52 = vadd.f32 %v567_v60, %v561_v22  ;;  %v2945_v21 = vadd.f32 %v1918_v28, %v1912_v55  ;;  %v960_v12 = vsel %vm574_vm1, %v2923_v4, 0.0  ;;  %v1132_v7 = vadd.f32 %v1128_v8, %v4317_v49 }
 0x152   :  { %4313 = vst [vmem:[#allocation35_spill] sm:$0xff] %v2937_v35  ;;  %v1347_v41 = vsel %vm574_vm1, %v2937_v35, 0.0  ;;  %v768_v30 = vsel %vm574_vm1, %v2939_v63, 0.0  ;;  %v2954_v44 = vadd.f32 %v953_v17, %v947_v62  ;;  %v1136_v42 = vmul.f32 %v2671_v34, %v2830_v33 }
 0x153   :  { %4314 = vst [vmem:[#allocation44_spill] sm:$0xff] %v2939_v63  ;;  %v2958_v22 = vpop.f32.mrf.mxu3  ;;  %v1348_v48 = vadd.f32 %v1347_v41, %v1346_v10  ;;  %v769_v55 = vadd.f32 %v768_v30, %v767_v59  ;;  %v576_v60 = vsel %vm574_vm1, %v2943_v52, 0.0  ;;  %v1926_v8 = vsel %vm574_vm1, %v2945_v21, 0.0 }
 0x154   :  { %4315 = vst [vmem:[#allocation45_spill] sm:$0xff] %v2943_v52  ;;  %v1331_v24 = vmul.f32 %v2621_v14, %v2958_v22  ;;  %v752_v62 = vmul.f32 %v2623_v15, %v2958_v22  ;;  %v559_v29 = vmul.f32 %v2636_v20, %v2958_v22  ;;  %v577_v28 = vadd.f32 %v576_v60, %v575_v1 }
 0x155   :  { %4316 = vst [vmem:[#allocation46_spill] sm:$0xff] %v2945_v21  ;;  %v2970_v17 = vpop.f32.mrf.mxu1  ;;  %v1910_v10 = vmul.f32 %v2644_v23, %v2958_v22  ;;  %v1927_v59 = vadd.f32 %v1926_v8, %v1925_v51  ;;  %v945_v49 = vmul.f32 %v2650_v26, %v2958_v22  ;;  %v961_v41 = vsel %vm574_vm1, %v2954_v44, 0.0 }
 0x156   :  { %4318 = vst [vmem:[#allocation37_spill] sm:$0xff] %v2954_v44  ;;  %v1335_v30 = vadd.f32 %v1331_v24, %v2863_v43  ;;  %v1340_v21 = vmul.f32 %v2664_v31, %v2970_v17  ;;  %v756_v14 = vadd.f32 %v752_v62, %v2868_v53  ;;  %v761_v1 = vmul.f32 %v2684_v39, %v2970_v17 }
 0x157   :  { %v563_v60 = vadd.f32 %v559_v29, %v2873_v6  ;;  %v568_v51 = vmul.f32 %v2687_v40, %v2970_v17  ;;  %v1914_v8 = vadd.f32 %v1910_v10, %v2880_v37  ;;  %v1919_v23 = vmul.f32 %v2698_v45, %v2970_v17 }
 0x158   :  { %v2990_v26 = vadd.f32 %v1340_v21, %v1334_v19  ;;  %v2992_v43 = vadd.f32 %v761_v1, %v755_v11  ;;  %v949_v24 = vadd.f32 %v945_v49, %v939_v2  ;;  %v954_v53 = vmul.f32 %v2711_v50, %v2970_v17 }
 0x159   :  { %v2996_v62 = vadd.f32 %v568_v51, %v562_v16  ;;  %v2998_v20 = vadd.f32 %v1919_v23, %v1913_v58  ;;  %v962_v6 = vadd.f32 %v961_v41, %v960_v12  ;;  %v1137_v29 = vmul.f32 %v2671_v34, %v2899_v18 }
 0x15a   :  { %4319 = vst [vmem:[#allocation47_spill] sm:$0xff] %v2990_v26  ;;  %v1349_v37 = vsel %vm574_vm1, %v2990_v26, 0.0  ;;  %v770_v21 = vsel %vm574_vm1, %v2992_v43, 0.0  ;;  %v3006_v11 = vadd.f32 %v954_v53, %v948_v56  ;;  %v1138_v2 = vmul.f32 %v2671_v34, %v2958_v22  ;;  %v4324_v56 = vld [vmem:[#allocation38_spill] sm:$0xff] }
 0x15b   :  { %4320 = vst [vmem:[#allocation48_spill] sm:$0xff] %v2992_v43  ;;  %v3010_v19 = vpop.f32.mrf.mxu2  ;;  %v1350_v16 = vadd.f32 %v1349_v37, %v1348_v48  ;;  %v771_v23 = vadd.f32 %v770_v21, %v769_v55  ;;  %v578_v58 = vsel %vm574_vm1, %v2996_v62, 0.0  ;;  %v1928_v12 = vsel %vm574_vm1, %v2998_v20, 0.0  ;;  %v4325_v55 = vld [vmem:[#allocation39_spill] sm:$0xff] }
 0x15c   :  { %4321 = vst [vmem:[#allocation49_spill] sm:$0xff] %v2996_v62  ;;  %v579_v10 = vadd.f32 %v578_v58, %v577_v28  ;;  %v1929_v49 = vadd.f32 %v1928_v12, %v1927_v59  ;;  %v963_v41 = vsel %vm574_vm1, %v3006_v11, 0.0  ;;  %v1140_v1 = vadd.f32 %v1136_v42, %v4324_v56 }
 0x15d   :  { %4322 = vst [vmem:[#allocation50_spill] sm:$0xff] %v2998_v20  ;;  %v3019_v51 = vpop.f32.mrf.mxu1  ;;  %v964_v53 = vadd.f32 %v963_v41, %v962_v6  ;;  %v1141_v15 = vadd.f32 %v1137_v29, %v2828_v32  ;;  %v1142_v48 = vadd.f32 %v1138_v2, %v1132_v7  ;;  %v1145_v37 = vmul.f32 %v4325_v55, %v2852_v9 }
 0x15e   :  { %4323 = vst [vmem:[#allocation51_spill] sm:$0xff] %v3006_v11  ;;  %v1341_v21 = vmul.f32 %v2664_v31, %v3019_v51  ;;  %v762_v28 = vmul.f32 %v2684_v39, %v3019_v51  ;;  %v569_v59 = vmul.f32 %v2687_v40, %v3019_v51  ;;  %v1920_v42 = vmul.f32 %v2698_v45, %v3019_v51 }
 0x15f   :  { %v955_v6 = vmul.f32 %v2711_v50, %v3019_v51  ;;  %v1146_v32 = vmul.f32 %v4325_v55, %v2915_v25  ;;  %v1147_v7 = vmul.f32 %v4325_v55, %v2970_v17  ;;  %v1148_v29 = vmul.f32 %v4325_v55, %v3019_v51 }
 0x160   :  { %v3040_v2 = vadd.f32 %v1341_v21, %v1335_v30  ;;  %v3042_v58 = vadd.f32 %v762_v28, %v756_v14  ;;  %v3044_v12 = vadd.f32 %v569_v59, %v563_v60  ;;  %v3046_v41 = vadd.f32 %v1920_v42, %v1914_v8 }
 0x161   :  { %v3048_v56 = vadd.f32 %v955_v6, %v949_v24  ;;  %v3051_v45 = vadd.f32 %v1145_v37, %v2834_v46  ;;  %v3053_v20 = vadd.f32 %v1146_v32, %v1140_v1  ;;  %v3055_v50 = vadd.f32 %v1147_v7, %v1141_v15  ;;  %v4335_v7 = vld [vmem:[#allocation23_spill] sm:$0xff] }
 0x162   :  { %4326 = vst [vmem:[#allocation38_spill] sm:$0xff] %v3040_v2  ;;  %v1351_v31 = vsel %vm574_vm1, %v3040_v2, 0.0  ;;  %v772_v14 = vsel %vm574_vm1, %v3042_v58, 0.0  ;;  %v580_v30 = vsel %vm574_vm1, %v3044_v12, 0.0  ;;  %v1930_v60 = vsel %vm574_vm1, %v3046_v41, 0.0 }
 0x163   :  { %4327 = vst [vmem:[#allocation39_spill] sm:$0xff] %v3042_v58  ;;  %v3067_v46 = vpop.f32.mrf.mxu2  ;;  %v1352_v8 = vadd.f32 %v1351_v31, %v1350_v16  ;;  %v773_v24 = vadd.f32 %v772_v14, %v771_v23  ;;  %v581_v15 = vadd.f32 %v580_v30, %v579_v10  ;;  %v1931_v1 = vadd.f32 %v1930_v60, %v1929_v49  ;;  %v4336_v14 = vld [vmem:[#allocation33_spill] sm:$0xff] }
 0x164   :  { %4328 = vst [vmem:[#allocation52_spill] sm:$0xff] %v3044_v12  ;;  %v965_v37 = vsel %vm574_vm1, %v3048_v56, 0.0  ;;  %v3071_v21 = vadd.f32 %v1148_v29, %v1142_v48  ;;  %v1153_v28 = vsel %vm574_vm1, %v3051_v45, 0.0  ;;  %v1154_v59 = vsel %vm574_vm1, %v3053_v20, 0.0 }
 0x165   :  { %4329 = vst [vmem:[#allocation53_spill] sm:$0xff] %v3046_v41  ;;  %1353 = vadd.xlane.f32.xlu1 %v1352_v8  ;;  %774 = vadd.xlane.f32.xlu2 %v773_v24  ;;  %v966_v42 = vadd.f32 %v965_v37, %v964_v53  ;;  %v1155_v6 = vadd.f32 %v1154_v59, %v1153_v28  ;;  %v1156_v31 = vsel %vm574_vm1, %v3055_v50, 0.0 }
 0x166   :  { %4330 = vst [vmem:[#allocation54_spill] sm:$0xff] %v3048_v56  ;;  %v1171_v16 = vmul.f32 %v3051_v45, %v3051_v45  ;;  %582 = vadd.xlane.f32.xlu0 %v581_v15  ;;  %v1158_v23 = vsel %vm574_vm1, %v3071_v21, 0.0  ;;  %v1172_v10 = vmul.f32 %v3053_v20, %v3053_v20  ;;  %v1173_v49 = vmul.f32 %v3055_v50, %v3055_v50 }
 0x167   :  { %4331 = vst [vmem:[#allocation55_spill] sm:$0xff] %v3051_v45  ;;  %v1174_v53 = vmul.f32 %v3071_v21, %v3071_v21  ;;  %v1157_v48 = vadd.f32 %v1156_v31, %v1155_v6  ;;  %v1507_v29 = vmul.f32 %v2732_v0, %v4335_v7  ;;  %v1508_v30 = vmul.f32 %v2732_v0, %v4336_v14  ;;  %v3129_v45 = vpop.f32.mrf.mxu1 }
 0x168   :  { %4332 = vst [vmem:[#allocation56_spill] sm:$0xff] %v3053_v20  ;;  %v1175_v32 = vsel %vm574_vm1, %v1171_v16, 0.0  ;;  %v1176_v60 = vsel %vm574_vm1, %v1172_v10, 0.0  ;;  %v1178_v8 = vsel %vm574_vm1, %v1173_v49, 0.0  ;;  %v1513_v15 = vmul.f32 %v2755_v36, %v2773_v27 }
 0x169   :  { %4333 = vst [vmem:[#allocation57_spill] sm:$0xff] %v3055_v50  ;;  %v1180_v24 = vsel %vm574_vm1, %v1174_v53, 0.0  ;;  %v1159_v37 = vadd.f32 %v1158_v23, %v1157_v48  ;;  %v1177_v28 = vadd.f32 %v1176_v60, %v1175_v32  ;;  %v1514_v59 = vmul.f32 %v2755_v36, %v2832_v38 }
 0x16a   :  { %4334 = vst [vmem:[#allocation58_spill] sm:$0xff] %v3071_v21  ;;  %v1522_v6 = vmul.f32 %v2785_v13, %v2830_v33  ;;  %v1517_v31 = vadd.f32 %v1513_v15, %v1507_v29  ;;  %v1523_v16 = vmul.f32 %v2785_v13, %v2899_v18  ;;  %v1524_v10 = vmul.f32 %v2785_v13, %v2958_v22 }
 0x16b   :  { %v3112_v49 = vstv %s3065_s0  ;;  %v3116_v23 = vpop.f32.mrf.mxu2  ;;  %v1179_v53 = vadd.f32 %v1178_v8, %v1177_v28  ;;  %v1518_v48 = vadd.f32 %v1514_v59, %v1508_v30  ;;  %v3121_v60 = vpop.f32.mrf.mxu3  ;;  %v3135_v28 = vstv %s3081_s10 }
 0x16c   :  { %v1526_v32 = vadd.f32 %v1522_v6, %v2836_v57  ;;  %v1531_v29 = vmul.f32 %v3112_v49, %v2852_v9  ;;  %v1527_v15 = vadd.f32 %v1523_v16, %v1517_v31  ;;  %v1532_v21 = vmul.f32 %v3112_v49, %v2915_v25 }
 0x16d   :  { %v1533_v50 = vmul.f32 %v3112_v49, %v2970_v17  ;;  %v1534_v20 = vmul.f32 %v3112_v49, %v3019_v51  ;;  %1932 = vadd.xlane.f32.xlu1 %v1931_v1  ;;  %967 = vadd.xlane.f32.xlu2 %v966_v42  ;;  %v1181_v57 = vadd.f32 %v1180_v24, %v1179_v53 }
 0x16e   :  { %v1528_v30 = vadd.f32 %v1524_v10, %v1518_v48  ;;  %v3132_v8 = vadd.f32 %v1531_v29, %v2838_v61  ;;  %1160 = vadd.xlane.f32.xlu0 %v1159_v37  ;;  %v3137_v59 = vadd.f32 %v1532_v21, %v1526_v32  ;;  %v1699_v31 = vmul.f32 %v2826_v54, %v2588_v3  ;;  %v4341_v21 = vld [vmem:[#allocation18_spill] sm:$0xff] }
 0x16f   :  { %v3139_v6 = vadd.f32 %v1533_v50, %v1527_v15  ;;  %v1700_v1 = vmul.f32 %v2826_v54, %v4335_v7  ;;  %v1701_v24 = vmul.f32 %v2826_v54, %v4336_v14  ;;  %v1704_v50 = vmul.f32 %v3135_v28, %v4341_v21 }
 0x170   :  { %4337 = vst [vmem:[#allocation23_spill] sm:$0xff] %v3132_v8  ;;  %v3145_v42 = vadd.f32 %v1534_v20, %v1528_v30  ;;  %v1539_v61 = vsel %vm574_vm1, %v3132_v8, 0.0  ;;  %v1540_v37 = vsel %vm574_vm1, %v3137_v59, 0.0  ;;  %v1705_v7 = vmul.f32 %v3135_v28, %v2704_v47 }
 0x171   :  { %4338 = vst [vmem:[#allocation33_spill] sm:$0xff] %v3137_v59  ;;  %v1542_v3 = vsel %vm574_vm1, %v3139_v6, 0.0  ;;  %v1706_v20 = vmul.f32 %v3135_v28, %v2773_v27  ;;  %v1541_v16 = vadd.f32 %v1540_v37, %v1539_v61  ;;  %v1707_v14 = vmul.f32 %v3135_v28, %v2832_v38  ;;  %v4342_v27 = vld [vmem:[#allocation36_spill] sm:$0xff] }
 0x172   :  { %4339 = vst [vmem:[#allocation59_spill] sm:$0xff] %v3139_v6  ;;  %v1544_v10 = vsel %vm574_vm1, %v3145_v42, 0.0  ;;  %v1708_v53 = vadd.f32 %v1704_v50, %v2842_v5  ;;  %v1709_v48 = vadd.f32 %v1705_v7, %v1699_v31  ;;  %v3167_v29 = vstv %s3105_s11 }
 0x173   :  { %4340 = vst [vmem:[#allocation60_spill] sm:$0xff] %v3145_v42  ;;  %v1710_v32 = vadd.f32 %v1706_v20, %v1700_v1  ;;  %v3170_v15 = vstv %s3114_s12  ;;  %v3172_v30 = vpop.f32.mrf.mxu2  ;;  %v1543_v47 = vadd.f32 %v1542_v3, %v1541_v16  ;;  %v1711_v21 = vadd.f32 %v1707_v14, %v1701_v24  ;;  %v3186_v50 = vpop.f32.mrf.mxu3  ;;  %v4343_v16 = vld [vmem:[#allocation41_spill] sm:$0xff]  ;;  %s3971_s12 = sld [smem:[#allocation5 + $0x3]] }
 0x174   :  { %v1714_v61 = vmul.f32 %v3167_v29, %v4342_v27  ;;  %v1715_v37 = vmul.f32 %v3167_v29, %v2830_v33  ;;  %v1716_v38 = vmul.f32 %v3167_v29, %v2899_v18  ;;  %v1717_v5 = vmul.f32 %v3167_v29, %v2958_v22  ;;  %v3194_v14 = vpop.f32.mrf.mxu1 }
 0x175   :  { %v1724_v31 = vmul.f32 %v3170_v15, %v2852_v9  ;;  %v1725_v1 = vmul.f32 %v3170_v15, %v2915_v25  ;;  %1182 = vadd.xlane.f32.xlu1 %v1181_v57  ;;  %v1545_v24 = vadd.f32 %v1544_v10, %v1543_v47  ;;  %v1726_v33 = vmul.f32 %v3170_v15, %v2970_v17 }
 0x176   :  { %v1718_v3 = vadd.f32 %v1714_v61, %v1708_v53  ;;  %v1719_v7 = vadd.f32 %v1715_v37, %v1709_v48  ;;  %v1720_v20 = vadd.f32 %v1716_v38, %v1710_v32  ;;  %v1721_v18 = vadd.f32 %v1717_v5, %v1711_v21 }
 0x177   :  { %v1727_v22 = vmul.f32 %v3170_v15, %v3019_v51  ;;  %v785_v9 = vmul.f32 %v4343_v16, %v4343_v16  ;;  %1546 = vadd.xlane.f32.xlu2 %v1545_v24  ;;  %v786_v10 = vmul.f32 %v2939_v63, %v2939_v63  ;;  %v787_v17 = vmul.f32 %v2992_v43, %v2992_v43 }
 0x178   :  { %v3196_v25 = vadd.f32 %v1724_v31, %v1718_v3  ;;  %v3198_v57 = vadd.f32 %v1725_v1, %v1719_v7  ;;  %v3204_v53 = vadd.f32 %v1726_v33, %v1720_v20  ;;  %v788_v51 = vmul.f32 %v3042_v58, %v3042_v58 }
 0x179   :  { %v3206_v48 = vadd.f32 %v1727_v22, %v1721_v18  ;;  %v789_v32 = vsel %vm574_vm1, %v785_v9, 0.0  ;;  %v790_v33 = vsel %vm574_vm1, %v786_v10, 0.0  ;;  %v594_v10 = vmul.f32 %v2943_v52, %v2943_v52 }
 0x17a   :  { %4344 = vst [vmem:[#allocation18_spill] sm:$0xff] %v3196_v25  ;;  %v1732_v47 = vsel %vm574_vm1, %v3196_v25, 0.0  ;;  %v1733_v21 = vsel %vm574_vm1, %v3198_v57, 0.0  ;;  %v1750_v27 = vmul.f32 %v3196_v25, %v3196_v25  ;;  %v1751_v61 = vmul.f32 %v3198_v57, %v3198_v57 }
 0x17b   :  { %4345 = vst [vmem:[#allocation36_spill] sm:$0xff] %v3198_v57  ;;  %v1734_v37 = vadd.f32 %v1733_v21, %v1732_v47  ;;  %v1735_v38 = vsel %vm574_vm1, %v3204_v53, 0.0  ;;  %v1737_v5 = vsel %vm574_vm1, %v3206_v48, 0.0  ;;  %v1752_v31 = vmul.f32 %v3204_v53, %v3204_v53  ;;  %v3225_v1 = vpop.f32.mrf.mxu2  ;;  %v4348_v57 = vld [vmem:[#allocation42_spill] sm:$0xff] }
 0x17c   :  { %4346 = vst [vmem:[#allocation61_spill] sm:$0xff] %v3204_v53  ;;  %v1753_v24 = vmul.f32 %v3206_v48, %v3206_v48  ;;  %v1754_v3 = vsel %vm574_vm1, %v1750_v27, 0.0  ;;  %v1755_v7 = vsel %vm574_vm1, %v1751_v61, 0.0  ;;  %v791_v9 = vadd.f32 %v790_v33, %v789_v32  ;;  %v3240_v61 = vpop.f32.mrf.mxu3 }
 0x17d   :  { %4347 = vst [vmem:[#allocation62_spill] sm:$0xff] %v3206_v48  ;;  %v1736_v20 = vadd.f32 %v1735_v38, %v1734_v37  ;;  %v1756_v18 = vadd.f32 %v1755_v7, %v1754_v3  ;;  %v1757_v22 = vsel %vm574_vm1, %v1752_v31, 0.0  ;;  %v792_v21 = vsel %vm574_vm1, %v787_v17, 0.0  ;;  %v3252_v7 = vpop.f32.mrf.mxu1 }
 0x17e   :  { %v1759_v47 = vsel %vm574_vm1, %v1753_v24, 0.0  ;;  %v794_v53 = vsel %vm574_vm1, %v788_v51, 0.0  ;;  %v593_v48 = vmul.f32 %v4348_v57, %v4348_v57  ;;  %v793_v58 = vadd.f32 %v792_v21, %v791_v9  ;;  %v4349_v51 = vld [vmem:[#allocation40_spill] sm:$0xff] }
 0x17f   :  { %v1738_v25 = vadd.f32 %v1737_v5, %v1736_v20  ;;  %v1758_v27 = vadd.f32 %v1757_v22, %v1756_v18  ;;  %v595_v32 = vmul.f32 %v2996_v62, %v2996_v62  ;;  %v596_v37 = vmul.f32 %v3044_v12, %v3044_v12 }
 0x180   :  { %v597_v17 = vsel %vm574_vm1, %v593_v48, 0.0  ;;  %v1364_v38 = vmul.f32 %v4349_v51, %v4349_v51  ;;  %v795_v31 = vadd.f32 %v794_v53, %v793_v58  ;;  %v598_v24 = vsel %vm574_vm1, %v594_v10, 0.0 }
 0x181   :  { %1739 = vadd.xlane.f32.xlu0 %v1738_v25  ;;  %v1760_v5 = vadd.f32 %v1759_v47, %v1758_v27  ;;  %v1365_v3 = vmul.f32 %v2937_v35, %v2937_v35  ;;  %v599_v33 = vadd.f32 %v598_v24, %v597_v17  ;;  %v600_v20 = vsel %vm574_vm1, %v595_v32, 0.0  ;;  %v4357_v35 = vld [vmem:[#allocation20_spill] sm:$0xff] }
 0x182   :  { %v602_v18 = vsel %vm574_vm1, %v596_v37, 0.0  ;;  %v1366_v48 = vmul.f32 %v2990_v26, %v2990_v26  ;;  %796 = vadd.xlane.f32.xlu2 %v795_v31  ;;  %v1367_v58 = vmul.f32 %v3040_v2, %v3040_v2  ;;  %v1368_v25 = vsel %vm574_vm1, %v1364_v38, 0.0 }
 0x183   :  { %1761 = vadd.xlane.f32.xlu1 %v1760_v5  ;;  %v1369_v53 = vsel %vm574_vm1, %v1365_v3, 0.0  ;;  %v978_v22 = vmul.f32 %v2923_v4, %v2923_v4  ;;  %v601_v9 = vadd.f32 %v600_v20, %v599_v33  ;;  %v3264_v47 = vpop.f32.mrf.mxu2  ;;  %v979_v10 = vmul.f32 %v2954_v44, %v2954_v44 }
 0x184   :  { %v1370_v21 = vadd.f32 %v1369_v53, %v1368_v25  ;;  %v1371_v27 = vsel %vm574_vm1, %v1366_v48, 0.0  ;;  %v1373_v32 = vsel %vm574_vm1, %v1367_v58, 0.0  ;;  %v980_v37 = vmul.f32 %v3006_v11, %v3006_v11 }
 0x185   :  { %v981_v17 = vmul.f32 %v3048_v56, %v3048_v56  ;;  %v982_v38 = vsel %vm574_vm1, %v978_v22, 0.0  ;;  %v603_v5 = vadd.f32 %v602_v18, %v601_v9  ;;  %v983_v24 = vsel %vm574_vm1, %v979_v10, 0.0  ;;  %v4350_v10 = vld [vmem:[#allocation22_spill] sm:$0xff] }
 0x186   :  { %v1372_v31 = vadd.f32 %v1371_v27, %v1370_v21  ;;  %v1557_v3 = vmul.f32 %v3132_v8, %v3132_v8  ;;  %v984_v33 = vadd.f32 %v983_v24, %v982_v38  ;;  %v985_v20 = vsel %vm574_vm1, %v980_v37, 0.0  ;;  %v3288_v27 = vpop.f32.mrf.mxu3 }
 0x187   :  { %v987_v48 = vsel %vm574_vm1, %v981_v17, 0.0  ;;  %v1558_v58 = vmul.f32 %v3137_v59, %v3137_v59  ;;  %v1559_v53 = vmul.f32 %v3139_v6, %v3139_v6  ;;  %v1560_v18 = vmul.f32 %v3145_v42, %v3145_v42 }
 0x188   :  { %v1374_v25 = vadd.f32 %v1373_v32, %v1372_v31  ;;  %v1561_v22 = vsel %vm574_vm1, %v1557_v3, 0.0  ;;  %v986_v9 = vadd.f32 %v985_v20, %v984_v33  ;;  %v1193_v37 = vmul.f32 %v4350_v10, %v3010_v19  ;;  %v3298_v3 = vpop.f32.mrf.mxu1  ;;  %v4351_v20 = vld [vmem:[#allocation29_spill] sm:$0xff] }
 0x189   :  { %604 = vadd.xlane.f32.xlu0 %v603_v5  ;;  %v1562_v21 = vsel %vm574_vm1, %v1558_v58, 0.0  ;;  %v1194_v32 = vmul.f32 %v4350_v10, %v3067_v46  ;;  %v1564_v38 = vsel %vm574_vm1, %v1559_v53, 0.0  ;;  %v1566_v31 = vsel %vm574_vm1, %v1560_v18, 0.0 }
 0x18a   :  { %v1563_v17 = vadd.f32 %v1562_v21, %v1561_v22  ;;  %v1195_v24 = vmul.f32 %v4350_v10, %v3116_v23  ;;  %1375 = vadd.xlane.f32.xlu2 %v1374_v25  ;;  %v988_v5 = vadd.f32 %v987_v48, %v986_v9  ;;  %v1196_v33 = vmul.f32 %v4350_v10, %v3172_v30 }
 0x18b   :  { %v1197_v58 = vmul.f32 %v4351_v20, %v3121_v60  ;;  %v1198_v22 = vmul.f32 %v4351_v20, %v3186_v50  ;;  %v3306_v21 = vpop.f32.mrf.mxu2  ;;  %v1199_v18 = vmul.f32 %v4351_v20, %v3240_v61  ;;  %v1200_v48 = vmul.f32 %v4351_v20, %v3288_v27 }
 0x18c   :  { %v1565_v53 = vadd.f32 %v1564_v38, %v1563_v17  ;;  %v1205_v25 = vmul.f32 %v2671_v34, %v3129_v45  ;;  %v1206_v42 = vmul.f32 %v2671_v34, %v3194_v14  ;;  %v1207_v6 = vmul.f32 %v2671_v34, %v3252_v7 }
 0x18d   :  { %v1201_v9 = vadd.f32 %v1197_v58, %v1193_v37  ;;  %v1202_v10 = vadd.f32 %v1198_v22, %v1194_v32  ;;  %v1203_v8 = vadd.f32 %v1199_v18, %v1195_v24  ;;  %v1204_v17 = vadd.f32 %v1200_v48, %v1196_v33 }
 0x18e   :  { %v1567_v59 = vadd.f32 %v1566_v31, %v1565_v53  ;;  %v1208_v38 = vmul.f32 %v2671_v34, %v3298_v3  ;;  %v1213_v20 = vmul.f32 %v4325_v55, %v3225_v1  ;;  %v1214_v37 = vmul.f32 %v4325_v55, %v3264_v47  ;;  %v4352_v31 = vld [vmem:[#allocation12_spill] sm:$0xff] }
 0x18f   :  { %v1209_v2 = vadd.f32 %v1205_v25, %v1201_v9  ;;  %v1210_v26 = vadd.f32 %v1206_v42, %v1202_v10  ;;  %v1211_v32 = vadd.f32 %v1207_v6, %v1203_v8  ;;  %v1215_v22 = vmul.f32 %v4325_v55, %v3306_v21  ;;  %v4356_v6 = vld [vmem:[#allocation16_spill] sm:$0xff] }
 0x190   :  { %v1212_v58 = vadd.f32 %v1208_v38, %v1204_v17  ;;  %v807_v24 = vmul.f32 %v4352_v31, %v3010_v19  ;;  %v808_v42 = vmul.f32 %v4352_v31, %v3067_v46  ;;  %v809_v53 = vmul.f32 %v4352_v31, %v3116_v23 }
 0x191   :  { %989 = vadd.xlane.f32.xlu0 %v988_v5  ;;  %v3328_v33 = vadd.f32 %v1213_v20, %v1209_v2  ;;  %v3330_v34 = vadd.f32 %v1214_v37, %v1210_v26  ;;  %v3336_v18 = vadd.f32 %v1215_v22, %v1211_v32  ;;  %v810_v8 = vmul.f32 %v4352_v31, %v3172_v30 }
 0x192   :  { %v811_v48 = vmul.f32 %v4356_v6, %v3121_v60  ;;  %v812_v2 = vmul.f32 %v4356_v6, %v3186_v50  ;;  %v813_v25 = vmul.f32 %v4356_v6, %v3240_v61  ;;  %v814_v9 = vmul.f32 %v4356_v6, %v3288_v27 }
 0x193   :  { %4353 = vst [vmem:[#allocation22_spill] sm:$0xff] %v3328_v33  ;;  %v1221_v26 = vsel %vm574_vm1, %v3328_v33, 0.0  ;;  %v1222_v5 = vsel %vm574_vm1, %v3330_v34, 0.0  ;;  %v3352_v10 = vpop.f32.mrf.mxu2  ;;  %v1224_v38 = vsel %vm574_vm1, %v3336_v18, 0.0  ;;  %v819_v51 = vmul.f32 %v4357_v35, %v3129_v45 }
 0x194   :  { %4354 = vst [vmem:[#allocation29_spill] sm:$0xff] %v3330_v34  ;;  %v1223_v17 = vadd.f32 %v1222_v5, %v1221_v26  ;;  %v815_v20 = vadd.f32 %v811_v48, %v807_v24  ;;  %v816_v37 = vadd.f32 %v812_v2, %v808_v42  ;;  %v1216_v32 = vmul.f32 %v4325_v55, %v3352_v10 }
 0x195   :  { %4355 = vst [vmem:[#allocation12_spill] sm:$0xff] %v3336_v18  ;;  %v817_v22 = vadd.f32 %v813_v25, %v809_v53  ;;  %v818_v31 = vadd.f32 %v814_v9, %v810_v8  ;;  %v820_v6 = vmul.f32 %v4357_v35, %v3194_v14  ;;  %v821_v26 = vmul.f32 %v4357_v35, %v3252_v7 }
 0x196   :  { %v1225_v56 = vadd.f32 %v1224_v38, %v1223_v17  ;;  %v822_v5 = vmul.f32 %v4357_v35, %v3298_v3  ;;  %v3366_v24 = vadd.f32 %v1216_v32, %v1212_v58  ;;  %v823_v42 = vadd.f32 %v819_v51, %v815_v20  ;;  %v4359_v58 = vld [vmem:[#allocation14_spill] sm:$0xff] }
 0x197   :  { %v827_v55 = vmul.f32 %v2684_v39, %v3225_v1  ;;  %v828_v53 = vmul.f32 %v2684_v39, %v3264_v47  ;;  %v824_v8 = vadd.f32 %v820_v6, %v816_v37  ;;  %v825_v48 = vadd.f32 %v821_v26, %v817_v22  ;;  %v4360_v26 = vld [vmem:[#allocation21_spill] sm:$0xff] }
 0x198   :  { %4358 = vst [vmem:[#allocation16_spill] sm:$0xff] %v3366_v24  ;;  %v826_v2 = vadd.f32 %v822_v5, %v818_v31  ;;  %v829_v25 = vmul.f32 %v2684_v39, %v3306_v21  ;;  %v1226_v9 = vsel %vm574_vm1, %v3366_v24, 0.0  ;;  %v830_v35 = vmul.f32 %v2684_v39, %v3352_v10 }
 0x199   :  { %1568 = vadd.xlane.f32.xlu0 %v1567_v59  ;;  %v3378_v51 = vadd.f32 %v827_v55, %v823_v42  ;;  %v615_v17 = vmul.f32 %v4359_v58, %v3010_v19  ;;  %v1227_v38 = vadd.f32 %v1226_v9, %v1225_v56  ;;  %v3382_v20 = vadd.f32 %v828_v53, %v824_v8  ;;  %v4361_v9 = vld [vmem:[#allocation24_spill] sm:$0xff] }
 0x19a   :  { %v3384_v37 = vadd.f32 %v829_v25, %v825_v48  ;;  %v616_v32 = vmul.f32 %v4359_v58, %v3067_v46  ;;  %v3388_v59 = vadd.f32 %v830_v35, %v826_v2  ;;  %v617_v39 = vmul.f32 %v4359_v58, %v3116_v23 }
 0x19b   :  { %v835_v22 = vsel %vm574_vm1, %v3378_v51, 0.0  ;;  %v618_v31 = vmul.f32 %v4359_v58, %v3172_v30  ;;  %1228 = vadd.xlane.f32.xlu2 %v1227_v38  ;;  %v836_v56 = vsel %vm574_vm1, %v3382_v20, 0.0  ;;  %v619_v5 = vmul.f32 %v4360_v26, %v3121_v60 }
 0x19c   :  { %v838_v6 = vsel %vm574_vm1, %v3384_v37, 0.0  ;;  %v620_v42 = vmul.f32 %v4360_v26, %v3186_v50  ;;  %v837_v55 = vadd.f32 %v836_v56, %v835_v22  ;;  %v840_v53 = vsel %vm574_vm1, %v3388_v59, 0.0 }
 0x19d   :  { %v621_v8 = vmul.f32 %v4360_v26, %v3240_v61  ;;  %v622_v48 = vmul.f32 %v4360_v26, %v3288_v27  ;;  %v623_v2 = vadd.f32 %v619_v5, %v615_v17  ;;  %v627_v35 = vmul.f32 %v4361_v9, %v3129_v45 }
 0x19e   :  { %v624_v25 = vadd.f32 %v620_v42, %v616_v32  ;;  %v628_v58 = vmul.f32 %v4361_v9, %v3194_v14  ;;  %v839_v38 = vadd.f32 %v838_v6, %v837_v55  ;;  %v629_v56 = vmul.f32 %v4361_v9, %v3252_v7 }
 0x19f   :  { %v625_v11 = vadd.f32 %v621_v8, %v617_v39  ;;  %v626_v22 = vadd.f32 %v622_v48, %v618_v31  ;;  %v630_v44 = vmul.f32 %v4361_v9, %v3298_v3  ;;  %v631_v4 = vadd.f32 %v627_v35, %v623_v2 }
 0x1a0   :  { %v632_v43 = vadd.f32 %v628_v58, %v624_v25  ;;  %v635_v17 = vmul.f32 %v2687_v40, %v3225_v1  ;;  %v841_v32 = vadd.f32 %v840_v53, %v839_v38  ;;  %v636_v5 = vmul.f32 %v2687_v40, %v3264_v47 }
 0x1a1   :  { %v633_v26 = vadd.f32 %v629_v56, %v625_v11  ;;  %v637_v39 = vmul.f32 %v2687_v40, %v3306_v21  ;;  %v634_v31 = vadd.f32 %v630_v44, %v626_v22  ;;  %v638_v6 = vmul.f32 %v2687_v40, %v3352_v10 }
 0x1a2   :  { %v3426_v42 = vadd.f32 %v635_v17, %v631_v4  ;;  %v1772_v55 = vmul.f32 %v2826_v54, %v3010_v19  ;;  %842 = vadd.xlane.f32.xlu0 %v841_v32  ;;  %v3430_v8 = vadd.f32 %v636_v5, %v632_v43  ;;  %v1773_v11 = vmul.f32 %v2826_v54, %v3067_v46 }
 0x1a3   :  { %v3432_v53 = vadd.f32 %v637_v39, %v633_v26  ;;  %v1774_v48 = vmul.f32 %v2826_v54, %v3116_v23  ;;  %v3438_v44 = vadd.f32 %v638_v6, %v634_v31  ;;  %v1775_v4 = vmul.f32 %v2826_v54, %v3172_v30 }
 0x1a4   :  { %v643_v40 = vsel %vm574_vm1, %v3426_v42, 0.0  ;;  %v1776_v43 = vmul.f32 %v3135_v28, %v3121_v60  ;;  %v644_v2 = vsel %vm574_vm1, %v3430_v8, 0.0  ;;  %v1777_v9 = vmul.f32 %v3135_v28, %v3186_v50 }
 0x1a5   :  { %v646_v25 = vsel %vm574_vm1, %v3432_v53, 0.0  ;;  %v1778_v35 = vmul.f32 %v3135_v28, %v3240_v61  ;;  %v645_v58 = vadd.f32 %v644_v2, %v643_v40  ;;  %v648_v38 = vsel %vm574_vm1, %v3438_v44, 0.0 }
 0x1a6   :  { %v1779_v54 = vmul.f32 %v3135_v28, %v3288_v27  ;;  %v1780_v22 = vadd.f32 %v1776_v43, %v1772_v55  ;;  %v1781_v56 = vadd.f32 %v1777_v9, %v1773_v11  ;;  %v1784_v32 = vmul.f32 %v3167_v29, %v3129_v45 }
 0x1a7   :  { %v1782_v17 = vadd.f32 %v1778_v35, %v1774_v48  ;;  %v1785_v26 = vmul.f32 %v3167_v29, %v3194_v14  ;;  %v647_v5 = vadd.f32 %v646_v25, %v645_v58  ;;  %v1786_v31 = vmul.f32 %v3167_v29, %v3252_v7  ;;  %v4364_v35 = vld [vmem:[#allocation11_spill] sm:$0xff] }
 0x1a8   :  { %v1783_v39 = vadd.f32 %v1779_v54, %v1775_v4  ;;  %v1787_v6 = vmul.f32 %v3167_v29, %v3298_v3  ;;  %v1788_v40 = vadd.f32 %v1784_v32, %v1780_v22  ;;  %v1792_v28 = vmul.f32 %v3170_v15, %v3225_v1 }
 0x1a9   :  { %v1789_v2 = vadd.f32 %v1785_v26, %v1781_v56  ;;  %v1793_v55 = vmul.f32 %v3170_v15, %v3264_v47  ;;  %v649_v11 = vadd.f32 %v648_v38, %v647_v5  ;;  %v1790_v48 = vadd.f32 %v1786_v31, %v1782_v17  ;;  %v4367_v26 = vld [vmem:[#allocation13_spill] sm:$0xff] }
 0x1aa   :  { %v1791_v43 = vadd.f32 %v1787_v6, %v1783_v39  ;;  %v1794_v4 = vmul.f32 %v3170_v15, %v3306_v21  ;;  %v1795_v25 = vmul.f32 %v3170_v15, %v3352_v10  ;;  %v3474_v9 = vadd.f32 %v1792_v28, %v1788_v40 }
 0x1ab   :  { %v3476_v29 = vadd.f32 %v1793_v55, %v1789_v2  ;;  %v1386_v58 = vmul.f32 %v4364_v35, %v3010_v19  ;;  %650 = vadd.xlane.f32.xlu1 %v649_v11  ;;  %v1387_v38 = vmul.f32 %v4364_v35, %v3067_v46  ;;  %v1388_v22 = vmul.f32 %v4364_v35, %v3116_v23  ;;  %v4368_v11 = vld [vmem:[#allocation19_spill] sm:$0xff] }
 0x1ac   :  { %4362 = vst [vmem:[#allocation20_spill] sm:$0xff] %v3474_v9  ;;  %v3480_v54 = vadd.f32 %v1794_v4, %v1790_v48  ;;  %v1389_v56 = vmul.f32 %v4364_v35, %v3172_v30  ;;  %v3488_v15 = vadd.f32 %v1795_v25, %v1791_v43  ;;  %v1800_v17 = vsel %vm574_vm1, %v3474_v9, 0.0 }
 0x1ad   :  { %4363 = vst [vmem:[#allocation14_spill] sm:$0xff] %v3476_v29  ;;  %v1801_v32 = vsel %vm574_vm1, %v3476_v29, 0.0  ;;  %v1390_v5 = vmul.f32 %v4367_v26, %v3121_v60  ;;  %v1391_v6 = vmul.f32 %v4367_v26, %v3186_v50  ;;  %v1392_v40 = vmul.f32 %v4367_v26, %v3240_v61 }
 0x1ae   :  { %4365 = vst [vmem:[#allocation21_spill] sm:$0xff] %v3480_v54  ;;  %v1802_v39 = vadd.f32 %v1801_v32, %v1800_v17  ;;  %v1803_v31 = vsel %vm574_vm1, %v3480_v54, 0.0  ;;  %v1805_v2 = vsel %vm574_vm1, %v3488_v15, 0.0  ;;  %v1393_v28 = vmul.f32 %v4367_v26, %v3288_v27 }
 0x1af   :  { %4366 = vst [vmem:[#allocation24_spill] sm:$0xff] %v3488_v15  ;;  %v1394_v55 = vadd.f32 %v1390_v5, %v1386_v58  ;;  %v1398_v48 = vmul.f32 %v4368_v11, %v3129_v45  ;;  %v1395_v4 = vadd.f32 %v1391_v6, %v1387_v38  ;;  %v1396_v25 = vadd.f32 %v1392_v40, %v1388_v22  ;;  %v4369_v58 = vld [vmem:[#allocation30_spill] sm:$0xff] }
 0x1b0   :  { %v1804_v43 = vadd.f32 %v1803_v31, %v1802_v39  ;;  %v1399_v35 = vmul.f32 %v4368_v11, %v3194_v14  ;;  %v1397_v17 = vadd.f32 %v1393_v28, %v1389_v56  ;;  %v1400_v32 = vmul.f32 %v4368_v11, %v3252_v7 }
 0x1b1   :  { %v1401_v63 = vmul.f32 %v4368_v11, %v3298_v3  ;;  %v1402_v16 = vadd.f32 %v1398_v48, %v1394_v55  ;;  %v1406_v5 = vmul.f32 %v4369_v58, %v3225_v1  ;;  %v1407_v38 = vmul.f32 %v4369_v58, %v3264_v47 }
 0x1b2   :  { %v1806_v12 = vadd.f32 %v1805_v2, %v1804_v43  ;;  %v1403_v26 = vadd.f32 %v1399_v35, %v1395_v4  ;;  %v1404_v22 = vadd.f32 %v1400_v32, %v1396_v25  ;;  %v1408_v56 = vmul.f32 %v4369_v58, %v3306_v21  ;;  %v4371_v2 = vld [vmem:[#allocation17_spill] sm:$0xff]  ;;  %v4374_v4 = vld [vmem:[#allocation27_spill] sm:$0xff] }
 0x1b3   :  { %v1405_v39 = vadd.f32 %v1401_v63, %v1397_v17  ;;  %v1409_v31 = vmul.f32 %v4369_v58, %v3352_v10  ;;  %v3522_v6 = vadd.f32 %v1406_v5, %v1402_v16  ;;  %v1000_v28 = vmul.f32 %v4371_v2, %v3010_v19 }
 0x1b4   :  { %1807 = vadd.xlane.f32.xlu2 %v1806_v12  ;;  %v3524_v40 = vadd.f32 %v1407_v38, %v1403_v26  ;;  %v1001_v55 = vmul.f32 %v4371_v2, %v3067_v46  ;;  %v3530_v11 = vadd.f32 %v1408_v56, %v1404_v22  ;;  %v1002_v48 = vmul.f32 %v4371_v2, %v3116_v23 }
 0x1b5   :  { %v3532_v63 = vadd.f32 %v1409_v31, %v1405_v39  ;;  %v1003_v12 = vmul.f32 %v4371_v2, %v3172_v30  ;;  %v1414_v16 = vsel %vm574_vm1, %v3522_v6, 0.0  ;;  %v1004_v25 = vmul.f32 %v4374_v4, %v3121_v60  ;;  %v4375_v39 = vld [vmem:[#allocation28_spill] sm:$0xff] }
 0x1b6   :  { %4370 = vst [vmem:[#allocation11_spill] sm:$0xff] %v3524_v40  ;;  %v1415_v43 = vsel %vm574_vm1, %v3524_v40, 0.0  ;;  %v1005_v35 = vmul.f32 %v4374_v4, %v3186_v50  ;;  %v1417_v32 = vsel %vm574_vm1, %v3530_v11, 0.0  ;;  %v1006_v58 = vmul.f32 %v4374_v4, %v3240_v61 }
 0x1b7   :  { %4372 = vst [vmem:[#allocation13_spill] sm:$0xff] %v3530_v11  ;;  %v1416_v17 = vadd.f32 %v1415_v43, %v1414_v16  ;;  %v1419_v26 = vsel %vm574_vm1, %v3532_v63, 0.0  ;;  %v1007_v5 = vmul.f32 %v4374_v4, %v3288_v27  ;;  %v1008_v38 = vadd.f32 %v1004_v25, %v1000_v28  ;;  %v4376_v4 = vld [vmem:[#allocation32_spill] sm:$0xff] }
 0x1b8   :  { %4373 = vst [vmem:[#allocation19_spill] sm:$0xff] %v3532_v63  ;;  %v1009_v22 = vadd.f32 %v1005_v35, %v1001_v55  ;;  %v1012_v56 = vmul.f32 %v4375_v39, %v3129_v45  ;;  %v1010_v2 = vadd.f32 %v1006_v58, %v1002_v48  ;;  %v1013_v16 = vmul.f32 %v4375_v39, %v3194_v14 }
 0x1b9   :  { %v1418_v31 = vadd.f32 %v1417_v32, %v1416_v17  ;;  %v1014_v43 = vmul.f32 %v4375_v39, %v3252_v7  ;;  %v1011_v62 = vadd.f32 %v1007_v5, %v1003_v12  ;;  %v1015_v52 = vmul.f32 %v4375_v39, %v3298_v3 }
 0x1ba   :  { %v1016_v57 = vadd.f32 %v1012_v56, %v1008_v38  ;;  %v1020_v28 = vmul.f32 %v4376_v4, %v3225_v1  ;;  %v1017_v25 = vadd.f32 %v1013_v16, %v1009_v22  ;;  %v1021_v48 = vmul.f32 %v4376_v4, %v3264_v47 }
 0x1bb   :  { %v1420_v55 = vadd.f32 %v1419_v26, %v1418_v31  ;;  %v1018_v35 = vadd.f32 %v1014_v43, %v1010_v2  ;;  %v1019_v17 = vadd.f32 %v1015_v52, %v1011_v62  ;;  %v1022_v32 = vmul.f32 %v4376_v4, %v3306_v21 }
 0x1bc   :  { %v1023_v12 = vmul.f32 %v4376_v4, %v3352_v10  ;;  %v3570_v58 = vadd.f32 %v1020_v28, %v1016_v57  ;;  %v3572_v5 = vadd.f32 %v1021_v48, %v1017_v25  ;;  %v1239_v26 = vmul.f32 %v3328_v33, %v3328_v33 }
 0x1bd   :  { %1421 = vadd.xlane.f32.xlu0 %v1420_v55  ;;  %v1240_v38 = vmul.f32 %v3330_v34, %v3330_v34  ;;  %v1241_v52 = vmul.f32 %v3336_v18, %v3336_v18  ;;  %v3580_v62 = vadd.f32 %v1022_v32, %v1018_v35  ;;  %v1242_v2 = vmul.f32 %v3366_v24, %v3366_v24 }
 0x1be   :  { %v3582_v22 = vadd.f32 %v1023_v12, %v1019_v17  ;;  %v1028_v57 = vsel %vm574_vm1, %v3570_v58, 0.0  ;;  %v1046_v39 = vmul.f32 %v3570_v58, %v3570_v58  ;;  %v1029_v56 = vsel %vm574_vm1, %v3572_v5, 0.0 }
 0x1bf   :  { %v1047_v31 = vmul.f32 %v3572_v5, %v3572_v5  ;;  %v1243_v16 = vsel %vm574_vm1, %v1239_v26, 0.0  ;;  %v1030_v43 = vadd.f32 %v1029_v56, %v1028_v57  ;;  %v1031_v4 = vsel %vm574_vm1, %v3580_v62, 0.0 }
 0x1c0   :  { %4377 = vst [vmem:[#allocation30_spill] sm:$0xff] %v3582_v22  ;;  %v1033_v28 = vsel %vm574_vm1, %v3582_v22, 0.0  ;;  %v1048_v55 = vmul.f32 %v3580_v62, %v3580_v62  ;;  %v1049_v25 = vmul.f32 %v3582_v22, %v3582_v22  ;;  %v1050_v35 = vsel %vm574_vm1, %v1046_v39, 0.0 }
 0x1c1   :  { %v1051_v48 = vsel %vm574_vm1, %v1047_v31, 0.0  ;;  %v1244_v17 = vsel %vm574_vm1, %v1240_v38, 0.0  ;;  %v1032_v32 = vadd.f32 %v1031_v4, %v1030_v43  ;;  %v1246_v24 = vsel %vm574_vm1, %v1241_v52, 0.0 }
 0x1c2   :  { %v1052_v12 = vadd.f32 %v1051_v48, %v1050_v35  ;;  %v1053_v26 = vsel %vm574_vm1, %v1048_v55, 0.0  ;;  %v1245_v57 = vadd.f32 %v1244_v17, %v1243_v16  ;;  %v1055_v56 = vsel %vm574_vm1, %v1049_v25, 0.0 }
 0x1c3   :  { %v1248_v18 = vsel %vm574_vm1, %v1242_v2, 0.0  ;;  %v1579_v34 = vmul.f32 %v2732_v0, %v3010_v19  ;;  %v1034_v33 = vadd.f32 %v1033_v28, %v1032_v32  ;;  %v1580_v38 = vmul.f32 %v2732_v0, %v3067_v46 }
 0x1c4   :  { %v1054_v39 = vadd.f32 %v1053_v26, %v1052_v12  ;;  %v1247_v22 = vadd.f32 %v1246_v24, %v1245_v57  ;;  %v1581_v31 = vmul.f32 %v2732_v0, %v3116_v23  ;;  %v1582_v16 = vmul.f32 %v2732_v0, %v3172_v30 }
 0x1c5   :  { %v1583_v52 = vmul.f32 %v2755_v36, %v3121_v60  ;;  %v1584_v2 = vmul.f32 %v2755_v36, %v3186_v50  ;;  %1035 = vadd.xlane.f32.xlu1 %v1034_v33  ;;  %v1585_v24 = vmul.f32 %v2755_v36, %v3240_v61  ;;  %v1586_v28 = vmul.f32 %v2755_v36, %v3288_v27 }
 0x1c6   :  { %v1056_v43 = vadd.f32 %v1055_v56, %v1054_v39  ;;  %v1249_v4 = vadd.f32 %v1248_v18, %v1247_v22  ;;  %v1591_v0 = vmul.f32 %v2785_v13, %v3129_v45  ;;  %v1592_v35 = vmul.f32 %v2785_v13, %v3194_v14 }
 0x1c7   :  { %v1587_v55 = vadd.f32 %v1583_v52, %v1579_v34  ;;  %v1588_v25 = vadd.f32 %v1584_v2, %v1580_v38  ;;  %v1589_v48 = vadd.f32 %v1585_v24, %v1581_v31  ;;  %v1590_v33 = vadd.f32 %v1586_v28, %v1582_v16 }
 0x1c8   :  { %1057 = vadd.xlane.f32.xlu2 %v1056_v43  ;;  %1250 = vadd.xlane.f32.xlu0 %v1249_v4  ;;  %v1593_v18 = vmul.f32 %v2785_v13, %v3252_v7  ;;  %v1594_v22 = vmul.f32 %v2785_v13, %v3298_v3  ;;  %v1599_v34 = vmul.f32 %v3112_v49, %v3225_v1 }
 0x1c9   :  { %v1595_v17 = vadd.f32 %v1591_v0, %v1587_v55  ;;  %v1596_v36 = vadd.f32 %v1592_v35, %v1588_v25  ;;  %v1600_v12 = vmul.f32 %v3112_v49, %v3264_v47  ;;  %v1601_v26 = vmul.f32 %v3112_v49, %v3306_v21 }
 0x1ca   :  { %v1597_v32 = vadd.f32 %v1593_v18, %v1589_v48  ;;  %v1602_v57 = vmul.f32 %v3112_v49, %v3352_v10  ;;  %v1598_v56 = vadd.f32 %v1594_v22, %v1590_v33  ;;  %v1818_v13 = vmul.f32 %v3474_v9, %v3474_v9 }
 0x1cb   :  { %v3642_v39 = vadd.f32 %v1599_v34, %v1595_v17  ;;  %v1819_v38 = vmul.f32 %v3476_v29, %v3476_v29  ;;  %v3648_v31 = vadd.f32 %v1600_v12, %v1596_v36  ;;  %v1820_v52 = vmul.f32 %v3480_v54, %v3480_v54 }
 0x1cc   :  { %v3650_v16 = vadd.f32 %v1601_v26, %v1597_v32  ;;  %v1821_v2 = vmul.f32 %v3488_v15, %v3488_v15  ;;  %v3656_v49 = vadd.f32 %v1602_v57, %v1598_v56  ;;  %v1822_v24 = vsel %vm574_vm1, %v1818_v13, 0.0 }
 0x1cd   :  { %4378 = vst [vmem:[#allocation17_spill] sm:$0xff] %v3642_v39  ;;  %v1607_v43 = vsel %vm574_vm1, %v3642_v39, 0.0  ;;  %v1625_v4 = vmul.f32 %v3642_v39, %v3642_v39  ;;  %v1608_v28 = vsel %vm574_vm1, %v3648_v31, 0.0  ;;  %v1626_v25 = vmul.f32 %v3648_v31, %v3648_v31 }
 0x1ce   :  { %4379 = vst [vmem:[#allocation27_spill] sm:$0xff] %v3648_v31  ;;  %v1610_v55 = vsel %vm574_vm1, %v3650_v16, 0.0  ;;  %v1627_v0 = vmul.f32 %v3650_v16, %v3650_v16  ;;  %v1609_v35 = vadd.f32 %v1608_v28, %v1607_v43  ;;  %v1612_v48 = vsel %vm574_vm1, %v3656_v49, 0.0 }
 0x1cf   :  { %4380 = vst [vmem:[#allocation28_spill] sm:$0xff] %v3650_v16  ;;  %v1628_v33 = vmul.f32 %v3656_v49, %v3656_v49  ;;  %v1629_v18 = vsel %vm574_vm1, %v1625_v4, 0.0  ;;  %v1630_v22 = vsel %vm574_vm1, %v1626_v25, 0.0  ;;  %v1823_v36 = vsel %vm574_vm1, %v1819_v38, 0.0 }
 0x1d0   :  { %4381 = vst [vmem:[#allocation32_spill] sm:$0xff] %v3656_v49  ;;  %v1632_v17 = vsel %vm574_vm1, %v1627_v0, 0.0  ;;  %v1825_v34 = vsel %vm574_vm1, %v1820_v52, 0.0  ;;  %v1611_v32 = vadd.f32 %v1610_v55, %v1609_v35  ;;  %v1631_v12 = vadd.f32 %v1630_v22, %v1629_v18  ;;  %v4382_v0 = vld [vmem:[#allocation43_spill] sm:$0xff] }
 0x1d1   :  { %v1634_v26 = vsel %vm574_vm1, %v1628_v33, 0.0  ;;  %v1824_v57 = vadd.f32 %v1823_v36, %v1822_v24  ;;  %v1827_v56 = vsel %vm574_vm1, %v1821_v2, 0.0  ;;  %v661_v13 = vmul.f32 %v3426_v42, %v3426_v42 }
 0x1d2   :  { %v662_v43 = vmul.f32 %v3430_v8, %v3430_v8  ;;  %v663_v4 = vmul.f32 %v3432_v53, %v3432_v53  ;;  %v1613_v28 = vadd.f32 %v1612_v48, %v1611_v32  ;;  %v1633_v38 = vadd.f32 %v1632_v17, %v1631_v12  ;;  %v4383_v17 = vld [vmem:[#allocation46_spill] sm:$0xff] }
 0x1d3   :  { %v1826_v25 = vadd.f32 %v1825_v34, %v1824_v57  ;;  %v664_v52 = vmul.f32 %v3438_v44, %v3438_v44  ;;  %v665_v55 = vsel %vm574_vm1, %v661_v13, 0.0  ;;  %v1943_v35 = vmul.f32 %v4382_v0, %v4382_v0  ;;  %v4384_v34 = vld [vmem:[#allocation50_spill] sm:$0xff] }
 0x1d4   :  { %v666_v24 = vsel %vm574_vm1, %v662_v43, 0.0  ;;  %v668_v2 = vsel %vm574_vm1, %v663_v4, 0.0  ;;  %1614 = vadd.xlane.f32.xlu1 %v1613_v28  ;;  %v1635_v33 = vadd.f32 %v1634_v26, %v1633_v38  ;;  %v1944_v36 = vmul.f32 %v4383_v17, %v4383_v17  ;;  %v4385_v26 = vld [vmem:[#allocation15_spill] sm:$0xff] }
 0x1d5   :  { %v1828_v18 = vadd.f32 %v1827_v56, %v1826_v25  ;;  %v667_v22 = vadd.f32 %v666_v24, %v665_v55  ;;  %v670_v48 = vsel %vm574_vm1, %v664_v52, 0.0  ;;  %v1945_v32 = vmul.f32 %v4384_v34, %v4384_v34 }
 0x1d6   :  { %v1946_v12 = vmul.f32 %v3046_v41, %v3046_v41  ;;  %1636 = vadd.xlane.f32.xlu2 %v1635_v33  ;;  %v1947_v13 = vsel %vm574_vm1, %v1943_v35, 0.0  ;;  %v1965_v56 = vmul.f32 %v4385_v26, %v3010_v19  ;;  %v1966_v43 = vmul.f32 %v4385_v26, %v3067_v46 }
 0x1d7   :  { %1829 = vadd.xlane.f32.xlu0 %v1828_v18  ;;  %v669_v57 = vadd.f32 %v668_v2, %v667_v22  ;;  %v1948_v4 = vsel %vm574_vm1, %v1944_v36, 0.0  ;;  %v1950_v28 = vsel %vm574_vm1, %v1945_v32, 0.0  ;;  %v1967_v25 = vmul.f32 %v4385_v26, %v3116_v23  ;;  %v4386_v2 = vld [vmem:[#allocation25_spill] sm:$0xff]  ;;  %v4387_v18 = vld [vmem:[#allocation26_spill] sm:$0xff] }
 0x1d8   :  { %v1952_v38 = vsel %vm574_vm1, %v1946_v12, 0.0  ;;  %v1949_v55 = vadd.f32 %v1948_v4, %v1947_v13  ;;  %v1968_v24 = vmul.f32 %v4385_v26, %v3172_v30  ;;  %v1969_v19 = vmul.f32 %v4386_v2, %v3121_v60 }
 0x1d9   :  { %v671_v52 = vadd.f32 %v670_v48, %v669_v57  ;;  %v1970_v46 = vmul.f32 %v4386_v2, %v3186_v50  ;;  %v1971_v35 = vmul.f32 %v4386_v2, %v3240_v61  ;;  %v1972_v33 = vmul.f32 %v4386_v2, %v3288_v27  ;;  %v4388_v57 = vld [vmem:[#allocation31_spill] sm:$0xff] }
 0x1da   :  { %v1977_v23 = vmul.f32 %v4387_v18, %v3129_v45  ;;  %v1951_v22 = vadd.f32 %v1950_v28, %v1949_v55  ;;  %v1973_v48 = vadd.f32 %v1969_v19, %v1965_v56  ;;  %v1978_v30 = vmul.f32 %v4387_v18, %v3194_v14 }
 0x1db   :  { %v1979_v60 = vmul.f32 %v4387_v18, %v3252_v7  ;;  %v1974_v36 = vadd.f32 %v1970_v46, %v1966_v43  ;;  %v1975_v32 = vadd.f32 %v1971_v35, %v1967_v25  ;;  %v1976_v50 = vadd.f32 %v1972_v33, %v1968_v24  ;;  %v583_v25 = vpop.xlane.xlu0 %582 }
 0x1dc   :  { %v1980_v61 = vmul.f32 %v4387_v18, %v3298_v3  ;;  %672 = vadd.xlane.f32.xlu1 %v671_v52  ;;  %v1953_v12 = vadd.f32 %v1952_v38, %v1951_v22  ;;  %v1981_v27 = vadd.f32 %v1977_v23, %v1973_v48  ;;  %v1985_v45 = vmul.f32 %v4388_v57, %v3225_v1 }
 0x1dd   :  { %v1986_v13 = vmul.f32 %v4388_v57, %v3264_v47  ;;  %v1982_v26 = vadd.f32 %v1978_v30, %v1974_v36  ;;  %v1983_v14 = vadd.f32 %v1979_v60, %v1975_v32  ;;  %v1987_v7 = vmul.f32 %v4388_v57, %v3306_v21 }
 0x1de   :  { %v1984_v56 = vadd.f32 %v1980_v61, %v1976_v50  ;;  %1954 = vadd.xlane.f32.xlu2 %v1953_v12  ;;  %v1988_v43 = vmul.f32 %v4388_v57, %v3352_v10  ;;  %v3738_v3 = vadd.f32 %v1985_v45, %v1981_v27  ;;  %v853_v4 = vmul.f32 %v3378_v51, %v3378_v51 }
 0x1df   :  { %v854_v1 = vmul.f32 %v3382_v20, %v3382_v20  ;;  %v3744_v28 = vadd.f32 %v1986_v13, %v1982_v26  ;;  %v3746_v47 = vadd.f32 %v1987_v7, %v1983_v14  ;;  %v855_v38 = vmul.f32 %v3384_v37, %v3384_v37 }
 0x1e0   :  { %4389 = vst [vmem:[#allocation15_spill] sm:$0xff] %v3738_v3  ;;  %v856_v21 = vmul.f32 %v3388_v59, %v3388_v59  ;;  %v3752_v10 = vadd.f32 %v1988_v43, %v1984_v56  ;;  %v1993_v52 = vsel %vm574_vm1, %v3738_v3, 0.0  ;;  %v857_v55 = vsel %vm574_vm1, %v853_v4, 0.0 }
 0x1e1   :  { %4390 = vst [vmem:[#allocation25_spill] sm:$0xff] %v3744_v28  ;;  %v858_v24 = vsel %vm574_vm1, %v854_v1, 0.0  ;;  %v1994_v2 = vsel %vm574_vm1, %v3744_v28, 0.0  ;;  %v1996_v19 = vsel %vm574_vm1, %v3746_v47, 0.0  ;;  %v860_v35 = vsel %vm574_vm1, %v855_v38, 0.0 }
 0x1e2   :  { %4391 = vst [vmem:[#allocation26_spill] sm:$0xff] %v3746_v47  ;;  %v859_v46 = vadd.f32 %v858_v24, %v857_v55  ;;  %v1995_v33 = vadd.f32 %v1994_v2, %v1993_v52  ;;  %v862_v18 = vsel %vm574_vm1, %v856_v21, 0.0  ;;  %v1998_v23 = vsel %vm574_vm1, %v3752_v10, 0.0 }
 0x1e3   :  { %4392 = vst [vmem:[#allocation31_spill] sm:$0xff] %v3752_v10  ;;  %v1433_v48 = vmul.f32 %v3524_v40, %v3524_v40  ;;  %v1432_v60 = vmul.f32 %v3522_v6, %v3522_v6  ;;  %v1434_v36 = vmul.f32 %v3530_v11, %v3530_v11  ;;  %v1435_v61 = vmul.f32 %v3532_v63, %v3532_v63  ;;  %v3777_v26 = vpop.xlane.xlu0 %1160 }
 0x1e4   :  { %v861_v22 = vadd.f32 %v860_v35, %v859_v46  ;;  %v1997_v30 = vadd.f32 %v1996_v19, %v1995_v33  ;;  %v584_v13 = vrot.slane %v583_v25, 4  ;;  %v2012_v56 = vmul.f32 %v3744_v28, %v3744_v28 }
 0x1e5   :  { %v1437_v12 = vsel %vm574_vm1, %v1433_v48, 0.0  ;;  %v1436_v27 = vsel %vm574_vm1, %v1432_v60, 0.0  ;;  %v1439_v57 = vsel %vm574_vm1, %v1434_v36, 0.0  ;;  %v1441_v14 = vsel %vm574_vm1, %v1435_v61, 0.0  ;;  %v1354_v48 = vpop.xlane.xlu1 %1353 }
 0x1e6   :  { %v863_v32 = vadd.f32 %v862_v18, %v861_v22  ;;  %v1999_v50 = vadd.f32 %v1998_v23, %v1997_v30  ;;  %v1438_v45 = vadd.f32 %v1437_v12, %v1436_v27  ;;  %v585_v43 = vadd.f32 %v584_v13, %v583_v25 }
 0x1e7   :  { %v2011_v4 = vmul.f32 %v3738_v3, %v3738_v3  ;;  %v2013_v1 = vmul.f32 %v3746_v47, %v3746_v47  ;;  %v2014_v52 = vmul.f32 %v3752_v10, %v3752_v10  ;;  %v2016_v55 = vsel %vm574_vm1, %v2012_v56, 0.0 }
 0x1e8   :  { %864 = vadd.xlane.f32.xlu1 %v863_v32  ;;  %2000 = vadd.xlane.f32.xlu0 %v1999_v50  ;;  %v1440_v7 = vadd.f32 %v1439_v57, %v1438_v45  ;;  %v586_v21 = vrot.slane %v585_v43, 2  ;;  %v775_v57 = vpop.xlane.xlu2 %774 }
 0x1e9   :  { %v2015_v2 = vsel %vm574_vm1, %v2011_v4, 0.0  ;;  %v2018_v19 = vsel %vm574_vm1, %v2013_v1, 0.0  ;;  %v2020_v35 = vsel %vm574_vm1, %v2014_v52, 0.0 }
 0x1ea   :  { %v1442_v38 = vadd.f32 %v1441_v14, %v1440_v7  ;;  %v587_v24 = vadd.f32 %v586_v21, %v585_v43  ;;  %v2017_v25 = vadd.f32 %v2016_v55, %v2015_v2 }
 0x1ec   :  { %v588_v46 = vrot.slane %v587_v24, 1  ;;  %v2019_v33 = vadd.f32 %v2018_v19, %v2017_v25 }
 0x1ed   :  { %v1933_v50 = vpop.xlane.xlu1 %1932 }
 0x1ee   :  { %v589_v18 = vadd.f32 %v588_v46, %v587_v24  ;;  %v2021_v22 = vadd.f32 %v2020_v35, %v2019_v33 }
 0x1f0   :  { %1443 = vadd.xlane.f32.xlu1 %v1442_v38  ;;  %2198 = vpush %v589_v18  ;;  %v968_v13 = vpop.xlane.xlu2 %967  ;;  %v776_v18 = vrot.slane %v775_v57, 4 }
 0x1f4   :  { %v3792_v23 = vpop.xlane.xlu0 %1739 }
 0x1f5   :  { %v1183_v45 = vpop.xlane.xlu1 %1182  ;;  %v1741_v3 = vrot.slane %v3792_v23, 4 }
 0x1f8   :  { %2022 = vadd.xlane.f32.xlu1 %v2021_v22  ;;  %v1547_v7 = vpop.xlane.xlu2 %1546 }
 0x1fc   :  { %v605_v30 = vpop.xlane.xlu0 %604 }
 0x1fd   :  { %v606_v60 = vrot.slane %v605_v30, 4  ;;  %v3794_v14 = vpop.xlane.xlu1 %1761 }
 0x1ff   :  { %v607_v36 = vadd.f32 %v606_v60, %v605_v30 }
 0x200   :  { %v797_v52 = vpop.xlane.xlu2 %796 }
 0x201   :  { %v608_v32 = vrot.slane %v607_v36, 2  ;;  %v798_v60 = vrot.slane %v797_v52, 4 }
 0x203   :  { %v609_v61 = vadd.f32 %v608_v32, %v607_v36  ;;  %v1355_v36 = vrot.slane %v1354_v48, 4 }
 0x204   :  { %v990_v24 = vpop.xlane.xlu0 %989 }
 0x205   :  { %v610_v12 = vrot.slane %v609_v61, 1 }
 0x207   :  { %v611_v27 = vadd.f32 %v610_v12, %v609_v61  ;;  %v1934_v61 = vrot.slane %v1933_v50, 4  ;;  %v777_v12 = vadd.f32 %v776_v18, %v775_v57 }
 0x208   :  { %v3796_v2 = vpop.xlane.xlu2 %1375 }
 0x209   :  { %2200 = vpush %v611_v27  ;;  %v969_v27 = vrot.slane %v968_v13, 4  ;;  %v778_v10 = vrot.slane %v777_v12, 2 }
 0x20b   :  { %v970_v47 = vadd.f32 %v969_v27, %v968_v13  ;;  %v991_v13 = vrot.slane %v990_v24, 4  ;;  %v3825_v27 = vadd.f32 %v1741_v3, %v3792_v23 }
 0x20c   :  { %v3798_v19 = vpop.xlane.xlu0 %1568 }
 0x210   :  { %v3800_v25 = vpop.xlane.xlu2 %1228 }
 0x215   :  { %v843_v46 = vpop.xlane.xlu0 %842 }
 0x216   :  { %v844_v32 = vrot.slane %v843_v46, 4 }
 0x21e   :  { %v651_v56 = vpop.xlane.xlu1 %650 }
 0x21f   :  { %v652_v43 = vrot.slane %v651_v56, 4 }
 0x221   :  { %v653_v4 = vadd.f32 %v652_v43, %v651_v56  ;;  %v1162_v56 = vrot.slane %v3777_v26, 4  ;;  %v1184_v43 = vrot.slane %v1183_v45, 4  ;;  %s2199_s13 = spop %2198 }
 0x223   :  { %v654_v1 = vrot.slane %v653_v4, 2  ;;  %v3814_v28 = vadd.f32 %v1162_v56, %v3777_v26  ;;  %v3817_v18 = vadd.f32 %v1184_v43, %v1183_v45  ;;  %v779_v45 = vadd.f32 %v778_v10, %v777_v12 }
 0x224   :  { %v1763_v43 = vrot.slane %v3794_v14, 4  ;;  %v1230_v10 = vrot.slane %v3800_v25, 4 }
 0x225   :  { %v655_v38 = vadd.f32 %v654_v1, %v653_v4  ;;  %v799_v4 = vadd.f32 %v798_v60, %v797_v52  ;;  %v3809_v1 = vadd.f32 %v1355_v36, %v1354_v48  ;;  %v1377_v60 = vrot.slane %v3796_v2, 4 }
 0x226   :  { %v780_v12 = vrot.slane %v779_v45, 1 }
 0x227   :  { %v656_v21 = vrot.slane %v655_v38, 1  ;;  %v3802_v33 = vpop.xlane.xlu2 %1807  ;;  %v800_v34 = vrot.slane %v799_v4, 2 }
 0x228   :  { %v1809_v23 = vrot.slane %v3802_v33, 4 }
 0x229   :  { %v657_v55 = vadd.f32 %v656_v21, %v655_v38  ;;  %v1548_v38 = vrot.slane %v1547_v7, 4  ;;  %v845_v21 = vadd.f32 %v844_v32, %v843_v46  ;;  %v971_v32 = vrot.slane %v970_v47, 2 }
 0x22b   :  { %2202 = vpush %v657_v55  ;;  %v3811_v55 = vadd.f32 %v1934_v61, %v1933_v50  ;;  %v3820_v52 = vadd.f32 %v1548_v38, %v1547_v7  ;;  %v846_v46 = vrot.slane %v845_v21, 2  ;;  %v801_v38 = vadd.f32 %v800_v34, %v799_v4 }
 0x22c   :  { %v3836_v34 = vadd.f32 %v1763_v43, %v3794_v14  ;;  %v1231_v14 = vadd.f32 %v1230_v10, %v3800_v25  ;;  %v3847_v43 = vadd.f32 %v1809_v23, %v3802_v33  ;;  %v972_v16 = vadd.f32 %v971_v32, %v970_v47 }
 0x22d   :  { %v847_v15 = vadd.f32 %v846_v46, %v845_v21  ;;  %v802_v56 = vrot.slane %v801_v38, 1 }
 0x230   :  { %v3804_v22 = vpop.xlane.xlu0 %1421 }
 0x231   :  { %v1423_v4 = vrot.slane %v3804_v22, 4 }
 0x238   :  { %v1036_v35 = vpop.xlane.xlu1 %1035 }
 0x239   :  { %v1037_v36 = vrot.slane %v1036_v35, 4 }
 0x23a   :  { %s2201_s14 = spop %2200 }
 0x23b   :  { %v1058_v41 = vpop.xlane.xlu2 %1057  ;;  %v1251_v50 = vpop.xlane.xlu0 %1250  ;;  %v1038_v61 = vadd.f32 %v1037_v36, %v1036_v35 }
 0x23c   :  { %v1059_v0 = vrot.slane %v1058_v41, 4  ;;  %v1252_v35 = vrot.slane %v1251_v50, 4 }
 0x23e   :  { %v1060_v21 = vadd.f32 %v1059_v0, %v1058_v41  ;;  %v1424_v41 = vadd.f32 %v1423_v4, %v3804_v22  ;;  %v1232_v22 = vrot.slane %v1231_v14, 2 }
 0x247   :  { %v3806_v30 = vpop.xlane.xlu1 %1614 }
 0x248   :  { %v1616_v0 = vrot.slane %v3806_v30, 4 }
 0x249   :  { %v1637_v46 = vpop.xlane.xlu2 %1636 }
 0x24a   :  { %v1830_v9 = vpop.xlane.xlu0 %1829  ;;  %v1638_v23 = vrot.slane %v1637_v46, 4  ;;  %v1617_v47 = vadd.f32 %v1616_v0, %v3806_v30 }
 0x24f   :  { %v673_v57 = vpop.xlane.xlu1 %672 }
 0x250   :  { %v674_v17 = vrot.slane %v673_v57, 4 }
 0x252   :  { %v675_v26 = vadd.f32 %v674_v17, %v673_v57  ;;  %v992_v17 = vadd.f32 %v991_v13, %v990_v24  ;;  %v1570_v57 = vrot.slane %v3798_v19, 4  ;;  %v3840_v24 = vadd.f32 %v1377_v60, %v3796_v2 }
 0x253   :  { %v848_v13 = vrot.slane %v847_v15, 1  ;;  %v781_v2 = vadd.f32 %v780_v12, %v779_v45  ;;  %v803_v60 = vadd.f32 %v802_v56, %v801_v38 }
 0x254   :  { %v676_v7 = vrot.slane %v675_v26, 2  ;;  %v993_v36 = vrot.slane %v992_v17, 2  ;;  %v1379_v33 = vrot.slane %v3840_v24, 2 }
 0x256   :  { %v677_v54 = vadd.f32 %v676_v7, %v675_v26  ;;  %v3843_v26 = vadd.f32 %v1570_v57, %v3798_v19  ;;  %v1039_v7 = vrot.slane %v1038_v61, 2  ;;  %v1061_v19 = vrot.slane %v1060_v21, 2 }
 0x257   :  { %v1253_v57 = vadd.f32 %v1252_v35, %v1251_v50  ;;  %v973_v50 = vrot.slane %v972_v16, 1 }
 0x258   :  { %v678_v48 = vrot.slane %v677_v54, 1  ;;  %v1040_v10 = vadd.f32 %v1039_v7, %v1038_v61  ;;  %v1572_v45 = vrot.slane %v3843_v26, 2  ;;  %v1062_v38 = vadd.f32 %v1061_v19, %v1060_v21 }
 0x259   :  { %v1254_v32 = vrot.slane %v1253_v57, 2  ;;  %v4393_v61 = vrot.slane %v3814_v28, 2  ;;  %v1639_v7 = vadd.f32 %v1638_v23, %v1637_v46  ;;  %v1618_v21 = vrot.slane %v1617_v47, 2 }
 0x25a   :  { %v679_v29 = vadd.f32 %v678_v48, %v677_v54  ;;  %v849_v54 = vadd.f32 %v848_v13, %v847_v15  ;;  %v994_v48 = vadd.f32 %v993_v36, %v992_v17  ;;  %v1425_v15 = vrot.slane %v1424_v41, 2 }
 0x25b   :  { %v865_v3 = vpop.xlane.xlu1 %864  ;;  %v1041_v17 = vrot.slane %v1040_v10, 1  ;;  %v1165_v35 = vadd.f32 %v4393_v61, %v3814_v28  ;;  %v4394_v13 = vrot.slane %v3809_v1, 2  ;;  %v1063_v61 = vrot.slane %v1062_v38, 1 }
 0x25c   :  { %v866_v49 = vrot.slane %v865_v3, 4  ;;  %2204 = vpush %v679_v29  ;;  %v995_v4 = vrot.slane %v994_v48, 1  ;;  %v2001_v29 = vpop.xlane.xlu0 %2000  ;;  %v1255_v39 = vadd.f32 %v1254_v32, %v1253_v57  ;;  %v1380_v23 = vadd.f32 %v1379_v33, %v3840_v24  ;;  %s2203_s15 = spop %2202 }
 0x25d   :  { %2206 = vpush %v781_v2  ;;  %v1358_v36 = vadd.f32 %v4394_v13, %v3809_v1  ;;  %v1955_v2 = vpop.xlane.xlu2 %1954  ;;  %v1166_v46 = vrot.slane %v1165_v35, 1  ;;  %v1640_v13 = vrot.slane %v1639_v7, 2  ;;  %v1042_v40 = vadd.f32 %v1041_v17, %v1040_v10 }
 0x25e   :  { %v867_v31 = vadd.f32 %v866_v49, %v865_v3  ;;  %2208 = vpush %v803_v60  ;;  %v1831_v49 = vrot.slane %v1830_v9, 4  ;;  %v4395_v60 = vrot.slane %v3817_v18, 2  ;;  %v1956_v63 = vrot.slane %v1955_v2, 4 }
 0x25f   :  { %2210 = vpush %v849_v54  ;;  %v974_v54 = vadd.f32 %v973_v50, %v972_v16  ;;  %v996_v1 = vadd.f32 %v995_v4, %v994_v48  ;;  %v1256_v50 = vrot.slane %v1255_v39, 1  ;;  %v1359_v57 = vrot.slane %v1358_v36, 1 }
 0x260   :  { %v868_v12 = vrot.slane %v867_v31, 2  ;;  %v3865_v19 = vadd.f32 %v1831_v49, %v1830_v9  ;;  %v2002_v49 = vrot.slane %v2001_v29, 4  ;;  %v1957_v48 = vadd.f32 %v1956_v63, %v1955_v2 }
 0x261   :  { %v1381_v24 = vrot.slane %v1380_v23, 1  ;;  %v4396_v10 = vrot.slane %v3820_v52, 2  ;;  %v1360_v63 = vadd.f32 %v1359_v57, %v1358_v36 }
 0x262   :  { %v869_v56 = vadd.f32 %v868_v12, %v867_v31  ;;  %v1187_v31 = vadd.f32 %v4395_v60, %v3817_v18  ;;  %v1233_v12 = vadd.f32 %v1232_v22, %v1231_v14  ;;  %v1833_v9 = vrot.slane %v3865_v19, 2 }
 0x263   :  { %v1444_v3 = vpop.xlane.xlu1 %1443  ;;  %v1426_v14 = vadd.f32 %v1425_v15, %v1424_v41  ;;  %v1064_v22 = vadd.f32 %v1063_v61, %v1062_v38  ;;  %v1573_v41 = vadd.f32 %v1572_v45, %v3843_v26  ;;  %v2003_v15 = vadd.f32 %v2002_v49, %v2001_v29 }
 0x264   :  { %v1445_v30 = vrot.slane %v1444_v3, 4  ;;  %v870_v0 = vrot.slane %v869_v56, 1  ;;  %v1188_v18 = vrot.slane %v1187_v31, 1  ;;  %v1234_v16 = vrot.slane %v1233_v12, 1 }
 0x265   :  { %v1958_v2 = vrot.slane %v1957_v48, 2  ;;  %v1382_v60 = vadd.f32 %v1381_v24, %v1380_v23  ;;  %v1574_v29 = vrot.slane %v1573_v41, 1  ;;  %v4400_v23 = vrot.slane %v3811_v55, 2 }
 0x266   :  { %v1446_v25 = vadd.f32 %v1445_v30, %v1444_v3  ;;  %v871_v28 = vadd.f32 %v870_v0, %v869_v56  ;;  %v1167_v56 = vadd.f32 %v1166_v46, %v1165_v35  ;;  %v1551_v3 = vadd.f32 %v4396_v10, %v3820_v52 }
 0x267   :  { %v1189_v4 = vadd.f32 %v1188_v18, %v1187_v31  ;;  %v1235_v38 = vadd.f32 %v1234_v16, %v1233_v12  ;;  %v1427_v0 = vrot.slane %v1426_v14, 1  ;;  %v1641_v35 = vadd.f32 %v1640_v13, %v1639_v7 }
 0x268   :  { %v1447_v11 = vrot.slane %v1446_v25, 2  ;;  %2212 = vpush %v871_v28  ;;  %v1552_v52 = vrot.slane %v1551_v3, 1  ;;  %v4397_v31 = vrot.slane %v3825_v27, 2  ;;  %v4399_v12 = vrot.slane %v3847_v43, 2 }
 0x269   :  { %2214 = vpush %v974_v54  ;;  %v1428_v36 = vadd.f32 %v1427_v0, %v1426_v14  ;;  %v1642_v61 = vrot.slane %v1641_v35, 1  ;;  %v1937_v13 = vadd.f32 %v4400_v23, %v3811_v55  ;;  %v1575_v49 = vadd.f32 %v1574_v29, %v1573_v41 }
 0x26a   :  { %2216 = vpush %v996_v1  ;;  %v1448_v32 = vadd.f32 %v1447_v11, %v1446_v25  ;;  %v1619_v11 = vadd.f32 %v1618_v21, %v1617_v47  ;;  %v1744_v54 = vadd.f32 %v4397_v31, %v3825_v27  ;;  %v4398_v47 = vrot.slane %v3836_v34, 2 }
 0x26b   :  { %2218 = vpush %v1042_v40  ;;  %v2023_v33 = vpop.xlane.xlu1 %2022  ;;  %v1257_v40 = vadd.f32 %v1256_v50, %v1255_v39  ;;  %v2004_v39 = vrot.slane %v2003_v15, 2  ;;  %v1812_v28 = vadd.f32 %v4399_v12, %v3847_v43  ;;  %v1834_v27 = vadd.f32 %v1833_v9, %v3865_v19 }
 0x26c   :  { %2220 = vpush %v1064_v22  ;;  %v2024_v17 = vrot.slane %v2023_v33, 4  ;;  %v1449_v30 = vrot.slane %v1448_v32, 1  ;;  %v1766_v21 = vadd.f32 %v4398_v47, %v3836_v34  ;;  %v1620_v7 = vrot.slane %v1619_v11, 1 }
 0x26d   :  { %2222 = vpush %v1167_v56  ;;  %v1553_v1 = vadd.f32 %v1552_v52, %v1551_v3  ;;  %v1745_v46 = vrot.slane %v1744_v54, 1  ;;  %v1959_v34 = vadd.f32 %v1958_v2, %v1957_v48  ;;  %v2005_v14 = vadd.f32 %v2004_v39, %v2003_v15 }
 0x26e   :  { %2224 = vpush %v1189_v4  ;;  %v2025_v25 = vadd.f32 %v2024_v17, %v2023_v33  ;;  %v1450_v45 = vadd.f32 %v1449_v30, %v1448_v32  ;;  %v1767_v16 = vrot.slane %v1766_v21, 1  ;;  %v1621_v22 = vadd.f32 %v1620_v7, %v1619_v11 }
 0x26f   :  { %2226 = vpush %v1235_v38  ;;  %v1813_v43 = vrot.slane %v1812_v28, 1  ;;  %v1643_v50 = vadd.f32 %v1642_v61, %v1641_v35  ;;  %v1835_v57 = vrot.slane %v1834_v27, 1  ;;  %v1746_v19 = vadd.f32 %v1745_v46, %v1744_v54 }
 0x270   :  { %2228 = vpush %v1257_v40  ;;  %v2026_v26 = vrot.slane %v2025_v25, 2  ;;  %v1938_v9 = vrot.slane %v1937_v13, 1  ;;  %v1768_v32 = vadd.f32 %v1767_v16, %v1766_v21  ;;  %v1960_v56 = vrot.slane %v1959_v34, 1 }
 0x271   :  { %2230 = vpush %v1360_v63  ;;  %v1814_v55 = vadd.f32 %v1813_v43, %v1812_v28  ;;  %v2006_v48 = vrot.slane %v2005_v14, 1  ;;  %v1836_v33 = vadd.f32 %v1835_v57, %v1834_v27  ;;  %v659_v30 = vstv %s2203_s15 }
 0x272   :  { %2232 = vpush %v1382_v60  ;;  %v2027_v18 = vadd.f32 %v2026_v26, %v2025_v25  ;;  %v1939_v10 = vadd.f32 %v1938_v9, %v1937_v13  ;;  %v1961_v3 = vadd.f32 %v1960_v56, %v1959_v34  ;;  %v591_v41 = vstv %s2199_s13  ;;  %v4401_v9 = vld [vmem:[#allocation42_spill] sm:$0xff] }
 0x273   :  { %2234 = vpush %v1428_v36  ;;  %v2007_v17 = vadd.f32 %v2006_v48, %v2005_v14  ;;  %v660_v15 = vadd.f32 %v659_v30, %v591_v41  ;;  %v613_v0 = vstv %s2201_s14  ;;  %v700_v13 = vstv %s699_s21  ;;  %v4403_v48 = vld [vmem:[#allocation49_spill] sm:$0xff] }
 0x274   :  { %2236 = vpush %v1450_v45  ;;  %v2028_v24 = vrot.slane %v2027_v18, 1  ;;  %v704_v14 = vstv %s2153_s22 }
 0x275   :  { %2238 = vpush %v1553_v1  ;;  %v683_v38 = vmul.f32 0.00048828125, %v660_v15 }
 0x276   :  { %2240 = vpush %v1575_v49  ;;  %v2029_v4 = vadd.f32 %v2028_v24, %v2027_v18  ;;  %v4402_v24 = vld [vmem:[#allocation45_spill] sm:$0xff] }
 0x277   :  { %2242 = vpush %v1621_v22  ;;  %v685_v63 = vmul.f32 %v683_v38, %v683_v38 }
 0x278   :  { %2244 = vpush %v1643_v50 }
 0x279   :  { %2246 = vpush %v1746_v19 }
 0x27a   :  { %2248 = vpush %v1768_v32 }
 0x27b   :  { %2250 = vpush %v1814_v55 }
 0x27c   :  { %2252 = vpush %v1836_v33 }
 0x27d   :  { %2254 = vpush %v1939_v10 }
 0x27e   :  { %2256 = vpush %v1961_v3  ;;  %v4404_v3 = vld [vmem:[#allocation52_spill] sm:$0xff] }
 0x27f   :  { %2258 = vpush %v2007_v17 }
 0x280   :  { %2260 = vpush %v2029_v4 }
 0x28d   :  { %s2205_s16 = spop %2204 }
 0x28e   :  { %v681_v11 = vstv %s2205_s16  ;;  %s2207_s17 = spop %2206  ;;  %s3991_s16 = sld [smem:[#allocation5 + $0x83]] }
 0x28f   :  { %v682_v40 = vadd.f32 %v681_v11, %v613_v0  ;;  %s2209_s18 = spop %2208  ;;  %v783_v52 = vstv %s2207_s17 }
 0x290   :  { %s2211_s19 = spop %2210  ;;  %v805_v31 = vstv %s2209_s18 }
 0x291   :  { %v684_v25 = vmul.f32 0.00048828125, %v682_v40  ;;  %v851_v54 = vstv %s2211_s19 }
 0x292   :  { %v852_v45 = vadd.f32 %v851_v54, %v783_v52 }
 0x293   :  { %v686_v35 = vsub.f32 %v684_v25, %v685_v63 }
 0x294   :  { %v3886_v47 = vmul.f32 0.00048828125, %v852_v45 }
 0x295   :  { %v687_v2 = vmax.f32 %v686_v35, 0.0 }
 0x296   :  { %v877_v36 = vmul.f32 %v3886_v47, %v3886_v47 }
 0x297   :  { %v688_v60 = vadd.f32 1e-05, %v687_v2 }
 0x299   :  { %s2213_s20 = spop %2212  ;;  %2267 = vrsqrt.f32 %v688_v60  ;;  %vm695_vm3 = vweird.f32 %v688_v60 }
 0x29a   :  { %v873_v26 = vstv %s2213_s20  ;;  %s2215_s2 = spop %2214 }
 0x29b   :  { %v874_v29 = vadd.f32 %v873_v26, %v805_v31  ;;  %s2217_s23 = spop %2216  ;;  %v976_v49 = vstv %s2215_s2  ;;  %s4036_s2 = sld [smem:[#allocation5 + $0x4]] }
 0x29c   :  { %s2219_s24 = spop %2218  ;;  %v998_v57 = vstv %s2217_s23  ;;  %s2177_s23 = sld [smem:[#allocation5 + $0x84]] }
 0x29d   :  { %v876_v21 = vmul.f32 0.00048828125, %v874_v29  ;;  %s2221_s25 = spop %2220  ;;  %v1044_v16 = vstv %s2219_s24  ;;  %v892_v29 = vstv %s3901_s26  ;;  %s4065_s24 = sld [smem:[#allocation5 + $0x5]] }
 0x29e   :  { %v1045_v22 = vadd.f32 %v1044_v16, %v976_v49  ;;  %v1066_v19 = vstv %s2221_s25  ;;  %s3914_s3 = spop %2222  ;;  %s4073_s25 = sld [smem:[#allocation5 + $0x85]] }
 0x29f   :  { %v2268_v39 = vpop.eup %2267  ;;  %v878_v12 = vsub.f32 %v876_v21, %v877_v36  ;;  %v1067_v30 = vadd.f32 %v1066_v19, %v998_v57  ;;  %s2225_s28 = spop %2224  ;;  %v1169_v16 = vstv %s3914_s3  ;;  %s4077_s26 = sld [smem:[#allocation5 + $0x6]] }
 0x2a0   :  { %v690_v7 = vmul.f32 %v2268_v39, %v688_v60  ;;  %vm696_vm2 = vweird.f32 %v2268_v39  ;;  %v3898_v17 = vmul.f32 0.00048828125, %v1045_v22  ;;  %s2227_s4 = spop %2226  ;;  %s4103_s3 = sld [smem:[#allocation5 + $0x7]] }
 0x2a1   :  { %v879_v61 = vmax.f32 %v878_v12, 0.0  ;;  %vm697_vm4 = vmor %vm695_vm3, %vm696_vm2  ;;  %v1069_v60 = vmul.f32 0.00048828125, %v1067_v30  ;;  %s2229_s29 = spop %2228  ;;  %v1237_v22 = vstv %s2227_s4  ;;  %s2339_s4 = smov [#allocation7]  }
 0x2a2   :  { %v691_v28 = vmul.f32 %v2268_v39, %v690_v7  ;;  %v1070_v2 = vmul.f32 %v3898_v17, %v3898_v17  ;;  %v896_v7 = vstv %s2159_s27  ;;  %s3942_s7 = spop %2230  ;;  %s4093_s27 = sld [smem:[#allocation5 + $0x86]] }
 0x2a3   :  { %v3890_v1 = vadd.f32 1e-05, %v879_v61  ;;  %s3946_s8 = spop %2232 }
 0x2a4   :  { %v692_v27 = vmul.f32 0.5, %v691_v28  ;;  %v4405_v28 = vld [vmem:[#allocation41_spill] sm:$0xff]  ;;  %s3949_s1 = spop %2234 }
 0x2a5   :  { %2269 = vrsqrt.f32 %v3890_v1  ;;  %vm887_vm6 = vweird.f32 %v3890_v1  ;;  %s3953_s9 = spop %2236 }
 0x2a6   :  { %v693_v46 = vsub.f32 1.5, %v692_v27  ;;  %s3956_s0 = spop %2238 }
 0x2a7   :  { %s3959_s10 = spop %2240 }
 0x2a8   :  { %v694_v23 = vmul.f32 %v2268_v39, %v693_v46  ;;  %v4406_v46 = vld [vmem:[#allocation44_spill] sm:$0xff]  ;;  %s3968_s11 = spop %2242 }
 0x2a9   :  { %s3976_s13 = spop %2244 }
 0x2aa   :  { %v698_v34 = vsel %vm697_vm4, %v2268_v39, %v694_v23  ;;  %v4407_v23 = vld [vmem:[#allocation48_spill] sm:$0xff]  ;;  %s3982_s14 = spop %2246 }
 0x2ab   :  { %v701_v18 = vmul.f32 %v700_v13, %v698_v34  ;;  %v2270_v43 = vpop.eup %2269  ;;  %v4408_v34 = vld [vmem:[#allocation39_spill] sm:$0xff]  ;;  %s3988_s15 = spop %2248 }
 0x2ac   :  { %v882_v10 = vmul.f32 %v2270_v43, %v3890_v1  ;;  %vm888_vm5 = vweird.f32 %v2270_v43  ;;  %s3996_s17 = spop %2250 }
 0x2ad   :  { %v703_v50 = vmul.f32 %v701_v18, %v683_v38  ;;  %v706_v32 = vmul.f32 %v701_v18, %v4401_v9  ;;  %v707_v55 = vmul.f32 %v701_v18, %v4402_v24  ;;  %v708_v33 = vmul.f32 %v701_v18, %v4403_v48  ;;  %vm889_vm7 = vmor %vm887_vm6, %vm888_vm5  ;;  %s2253_s18 = spop %2252 }
 0x2ae   :  { %v709_v4 = vmul.f32 %v701_v18, %v4404_v3  ;;  %v718_v38 = vmul.f32 %v701_v18, %v3426_v42  ;;  %v719_v40 = vmul.f32 %v701_v18, %v3430_v8  ;;  %v720_v63 = vmul.f32 %v701_v18, %v3432_v53  ;;  %s4008_s19 = spop %2254 }
 0x2af   :  { %v705_v56 = vsub.f32 %v704_v14, %v703_v50  ;;  %v883_v35 = vmul.f32 %v2270_v43, %v882_v10  ;;  %v721_v52 = vmul.f32 %v701_v18, %v3438_v44  ;;  %v1071_v53 = vsub.f32 %v1069_v60, %v1070_v2  ;;  %s4015_s20 = spop %2256 }
 0x2b0   :  { %v1191_v14 = vstv %s2225_s28  ;;  %v1238_v48 = vadd.f32 %v1237_v22, %v1169_v16  ;;  %v1089_v2 = vstv %s2165_s6  ;;  %s2259_s21 = spop %2258  ;;  %s4112_s28 = sld [smem:[#allocation5 + $0x87]] }
 0x2b1   :  { %v710_v41 = vadd.f32 %v706_v32, %v705_v56  ;;  %v711_v15 = vadd.f32 %v707_v55, %v705_v56  ;;  %v712_v0 = vadd.f32 %v708_v33, %v705_v56  ;;  %v713_v11 = vadd.f32 %v709_v4, %v705_v56  ;;  %s2261_s22 = spop %2260 }
 0x2b2   :  { %v722_v25 = vadd.f32 %v718_v38, %v705_v56  ;;  %v723_v42 = vadd.f32 %v719_v40, %v705_v56  ;;  %v724_v31 = vadd.f32 %v720_v63, %v705_v56  ;;  %v884_v8 = vmul.f32 0.5, %v883_v35 }
 0x2b3   :  { %714 = vst.msk [vmem:[#allocation7] sm:$0xff] %vm574_vm1, %v710_v41  ;;  %v725_v54 = vadd.f32 %v721_v52, %v705_v56  ;;  %v1072_v45 = vmax.f32 %v1071_v53, 0.0 }
 0x2b4   :  { %715 = vst.msk [vmem:[#allocation7 + $0x8] sm:$0xff] %vm574_vm1, %v711_v15  ;;  %v885_v26 = vsub.f32 1.5, %v884_v8  ;;  %v4410_v8 = vld [vmem:[#allocation37_spill] sm:$0xff] }
 0x2b5   :  { %716 = vst.msk [vmem:[#allocation7 + $0x10] sm:$0xff] %vm574_vm1, %v712_v0  ;;  %v1073_v21 = vadd.f32 1e-05, %v1072_v45  ;;  %v4412_v45 = vld [vmem:[#allocation54_spill] sm:$0xff] }
 0x2b6   :  { %717 = vst.msk [vmem:[#allocation7 + $0x18] sm:$0xff] %vm574_vm1, %v713_v11  ;;  %v886_v44 = vmul.f32 %v2270_v43, %v885_v26  ;;  %v1085_v11 = vstv %s3930_s30 }
 0x2b7   :  { %727 = vst.msk [vmem:[#allocation7 + $0x100] sm:$0xff] %vm574_vm1, %v722_v25  ;;  %2271 = vrsqrt.f32 %v1073_v21  ;;  %vm1080_vm9 = vweird.f32 %v1073_v21 }
 0x2b8   :  { %728 = vst.msk [vmem:[#allocation7 + $0x108] sm:$0xff] %vm574_vm1, %v723_v42  ;;  %v890_v39 = vsel %vm889_vm7, %v2270_v43, %v886_v44  ;;  %v1259_v43 = vstv %s2229_s29  ;;  %v4409_v42 = vld [vmem:[#allocation34_spill] sm:$0xff]  ;;  %s2086_s29 = sshll.u32 %s2339_s4, 4  ;;  %s2087_s29 = int_to_ptr.vmem [resolvable:$true] %s2086_s29 }
 0x2b9   :  { %729 = vst.msk [vmem:[#allocation7 + $0x110] sm:$0xff] %vm574_vm1, %v724_v31  ;;  %v893_v36 = vmul.f32 %v892_v29, %v890_v39  ;;  %v1260_v33 = vadd.f32 %v1259_v43, %v1191_v14  ;;  %v1362_v29 = vstv %s3942_s7  ;;  %v1452_v39 = vstv %s3953_s9  ;;  %s2088_s7 = sshll.u32 %s4171_s5, 4  ;;  %s2089_s7 = int_to_ptr.hbm [resolvable:$true] %s2088_s7 }
 0x2ba   :  { %730 = vst.msk [vmem:[#allocation7 + $0x118] sm:$0xff] %vm574_vm1, %v725_v54  ;;  %v4411_v54 = vld [vmem:[#allocation51_spill] sm:$0xff] }
 0x2bb   :  { %v895_v12 = vmul.f32 %v893_v36, %v3886_v47  ;;  %v898_v61 = vmul.f32 %v893_v36, %v4405_v28  ;;  %v899_v1 = vmul.f32 %v893_v36, %v4406_v46  ;;  %v900_v13 = vmul.f32 %v893_v36, %v4407_v23 }
 0x2bc   :  { %v901_v18 = vmul.f32 %v893_v36, %v4408_v34  ;;  %v911_v47 = vmul.f32 %v893_v36, %v3378_v51  ;;  %v912_v32 = vmul.f32 %v893_v36, %v3382_v20  ;;  %v913_v56 = vmul.f32 %v893_v36, %v3384_v37 }
 0x2bd   :  { %v897_v27 = vsub.f32 %v896_v7, %v895_v12  ;;  %v2272_v49 = vpop.eup %2271  ;;  %v914_v10 = vmul.f32 %v893_v36, %v3388_v59  ;;  %v3935_v20 = vmul.f32 0.00048828125, %v1238_v48  ;;  %v1262_v15 = vmul.f32 0.00048828125, %v1260_v33 }
 0x2be   :  { %v1075_v55 = vmul.f32 %v2272_v49, %v1073_v21  ;;  %vm1081_vm8 = vweird.f32 %v2272_v49  ;;  %v1430_v21 = vstv %s3949_s1  ;;  %s2341_s1 = smov 8  }
 0x2bf   :  { %v902_v50 = vadd.f32 %v898_v61, %v897_v27  ;;  %v903_v57 = vadd.f32 %v899_v1, %v897_v27  ;;  %v904_v19 = vadd.f32 %v900_v13, %v897_v27  ;;  %v905_v9 = vadd.f32 %v901_v18, %v897_v27  ;;  %vm1082_vm10 = vmor %vm1080_vm9, %vm1081_vm8 }
 0x2c0   :  { %v915_v24 = vadd.f32 %v911_v47, %v897_v27  ;;  %v916_v3 = vadd.f32 %v912_v32, %v897_v27  ;;  %v917_v51 = vadd.f32 %v913_v56, %v897_v27  ;;  %v1076_v4 = vmul.f32 %v2272_v49, %v1075_v55 }
 0x2c1   :  { %907 = vst.msk [vmem:[#allocation7 + $0x20] sm:$0xff] %vm574_vm1, %v902_v50  ;;  %v918_v37 = vadd.f32 %v914_v10, %v897_v27  ;;  %v1263_v41 = vmul.f32 %v3935_v20, %v3935_v20  ;;  %v1384_v1 = vstv %s3946_s8  ;;  %v1431_v34 = vadd.f32 %v1430_v21, %v1362_v29  ;;  %v4418_v21 = vld [vmem:[#allocation22_spill] sm:$0xff]  ;;  %s2340_s8 = smov 128  }
 0x2c2   :  { %908 = vst.msk [vmem:[#allocation7 + $0x28] sm:$0xff] %vm574_vm1, %v903_v57  ;;  %v1077_v30 = vmul.f32 0.5, %v1076_v4  ;;  %v1453_v18 = vadd.f32 %v1452_v39, %v1384_v1  ;;  %v1278_v47 = vstv %s3971_s12  ;;  %v1555_v32 = vstv %s3956_s0  ;;  %v4420_v1 = vld [vmem:[#allocation12_spill] sm:$0xff] }
 0x2c3   :  { %909 = vst.msk [vmem:[#allocation7 + $0x30] sm:$0xff] %vm574_vm1, %v904_v19  ;;  %v1264_v0 = vsub.f32 %v1262_v15, %v1263_v41  ;;  %v3985_v14 = vmul.f32 0.00048828125, %v1431_v34  ;;  %v1577_v56 = vstv %s3959_s10  ;;  %v1645_v55 = vstv %s3976_s13 }
 0x2c4   :  { %910 = vst.msk [vmem:[#allocation7 + $0x38] sm:$0xff] %vm574_vm1, %v905_v9  ;;  %v1078_v59 = vsub.f32 1.5, %v1077_v30  ;;  %v1455_v22 = vmul.f32 0.00048828125, %v1453_v18  ;;  %v1816_v4 = vstv %s3996_s17 }
 0x2c5   :  { %920 = vst.msk [vmem:[#allocation7 + $0x120] sm:$0xff] %vm574_vm1, %v915_v24  ;;  %v1265_v40 = vmax.f32 %v1264_v0, 0.0  ;;  %v1456_v57 = vmul.f32 %v3985_v14, %v3985_v14  ;;  %v1623_v24 = vstv %s3968_s11  ;;  %v1838_v0 = vstv %s2253_s18 }
 0x2c6   :  { %921 = vst.msk [vmem:[#allocation7 + $0x128] sm:$0xff] %vm574_vm1, %v916_v3  ;;  %v1079_v38 = vmul.f32 %v2272_v49, %v1078_v59  ;;  %v1624_v10 = vadd.f32 %v1623_v24, %v1555_v32  ;;  %v1646_v3 = vadd.f32 %v1645_v55, %v1577_v56  ;;  %v1770_v59 = vstv %s3988_s15 }
 0x2c7   :  { %922 = vst.msk [vmem:[#allocation7 + $0x130] sm:$0xff] %vm574_vm1, %v917_v51  ;;  %v3951_v25 = vadd.f32 1e-05, %v1265_v40  ;;  %v1457_v9 = vsub.f32 %v1455_v22, %v1456_v57  ;;  %v1748_v51 = vstv %s3982_s14 }
 0x2c8   :  { %923 = vst.msk [vmem:[#allocation7 + $0x138] sm:$0xff] %vm574_vm1, %v918_v37  ;;  %v1083_v63 = vsel %vm1082_vm10, %v2272_v49, %v1079_v38  ;;  %v4012_v41 = vmul.f32 0.00048828125, %v1624_v10  ;;  %v1282_v38 = vstv %s3991_s16  ;;  %v1817_v40 = vadd.f32 %v1816_v4, %v1748_v51 }
 0x2c9   :  { %v1086_v35 = vmul.f32 %v1085_v11, %v1083_v63  ;;  %2273 = vrsqrt.f32 %v3951_v25  ;;  %vm1273_vm12 = vweird.f32 %v3951_v25  ;;  %v1458_v33 = vmax.f32 %v1457_v9, 0.0 }
 0x2ca   :  { %v1649_v11 = vmul.f32 %v4012_v41, %v4012_v41 }
 0x2cb   :  { %v1088_v60 = vmul.f32 %v1086_v35, %v3898_v17  ;;  %v1091_v31 = vmul.f32 %v1086_v35, %v4409_v42  ;;  %v1092_v53 = vmul.f32 %v1086_v35, %v4410_v8  ;;  %v1093_v26 = vmul.f32 %v1086_v35, %v4411_v54  ;;  %v4415_v8 = vld [vmem:[#allocation56_spill] sm:$0xff]  ;;  %v4416_v54 = vld [vmem:[#allocation57_spill] sm:$0xff] }
 0x2cc   :  { %v1094_v44 = vmul.f32 %v1086_v35, %v4412_v45  ;;  %v1104_v12 = vmul.f32 %v1086_v35, %v3570_v58  ;;  %v1105_v27 = vmul.f32 %v1086_v35, %v3572_v5  ;;  %v1106_v46 = vmul.f32 %v1086_v35, %v3580_v62  ;;  %v4413_v58 = vld [vmem:[#allocation30_spill] sm:$0xff] }
 0x2cd   :  { %v1090_v52 = vsub.f32 %v1089_v2, %v1088_v60  ;;  %v1107_v49 = vmul.f32 %v1086_v35, %v4413_v58  ;;  %v4010_v30 = vadd.f32 1e-05, %v1458_v33  ;;  %v4414_v35 = vld [vmem:[#allocation55_spill] sm:$0xff]  ;;  %v1839_v60 = vadd.f32 %v1838_v0, %v1770_v59 }
 0x2ce   :  { %v1963_v42 = vstv %s4015_s20 }
 0x2cf   :  { %v1095_v36 = vadd.f32 %v1091_v31, %v1090_v52  ;;  %v1096_v7 = vadd.f32 %v1092_v53, %v1090_v52  ;;  %v1097_v17 = vadd.f32 %v1093_v26, %v1090_v52  ;;  %v2274_v28 = vpop.eup %2273  ;;  %v1098_v61 = vadd.f32 %v1094_v44, %v1090_v52  ;;  %v4417_v44 = vld [vmem:[#allocation58_spill] sm:$0xff] }
 0x2d0   :  { %v1108_v23 = vadd.f32 %v1104_v12, %v1090_v52  ;;  %v1268_v13 = vmul.f32 %v2274_v28, %v3951_v25  ;;  %v1109_v16 = vadd.f32 %v1105_v27, %v1090_v52  ;;  %v1110_v5 = vadd.f32 %v1106_v46, %v1090_v52 }
 0x2d1   :  { %1100 = vst.msk [vmem:[#allocation7 + $0x40] sm:$0xff] %vm574_vm1, %v1095_v36  ;;  %v1111_v43 = vadd.f32 %v1107_v49, %v1090_v52  ;;  %vm1274_vm11 = vweird.f32 %v2274_v28  ;;  %2275 = vrsqrt.f32 %v4010_v30  ;;  %v1648_v25 = vmul.f32 0.00048828125, %v1646_v3  ;;  %v4419_v36 = vld [vmem:[#allocation29_spill] sm:$0xff] }
 0x2d2   :  { %1101 = vst.msk [vmem:[#allocation7 + $0x48] sm:$0xff] %vm574_vm1, %v1096_v7  ;;  %v1269_v62 = vmul.f32 %v2274_v28, %v1268_v13  ;;  %vm1275_vm13 = vmor %vm1273_vm12, %vm1274_vm11  ;;  %v1941_v52 = vstv %s4008_s19  ;;  %v4421_v13 = vld [vmem:[#allocation16_spill] sm:$0xff]  ;;  %v1841_v18 = vmul.f32 0.00048828125, %v1839_v60  ;;  %vm1466_vm15 = vweird.f32 %v4010_v30 }
 0x2d3   :  { %1102 = vst.msk [vmem:[#allocation7 + $0x50] sm:$0xff] %vm574_vm1, %v1097_v17  ;;  %v1650_v45 = vsub.f32 %v1648_v25, %v1649_v11 }
 0x2d4   :  { %1103 = vst.msk [vmem:[#allocation7 + $0x58] sm:$0xff] %vm574_vm1, %v1098_v61  ;;  %v1270_v50 = vmul.f32 0.5, %v1269_v62  ;;  %v2009_v61 = vstv %s2259_s21 }
 0x2d5   :  { %1113 = vst.msk [vmem:[#allocation7 + $0x140] sm:$0xff] %vm574_vm1, %v1108_v23 }
 0x2d6   :  { %1114 = vst.msk [vmem:[#allocation7 + $0x148] sm:$0xff] %vm574_vm1, %v1109_v16  ;;  %v1271_v19 = vsub.f32 1.5, %v1270_v50  ;;  %v1651_v16 = vmax.f32 %v1650_v45, 0.0  ;;  %v2031_v50 = vstv %s2261_s22 }
 0x2d7   :  { %1115 = vst.msk [vmem:[#allocation7 + $0x150] sm:$0xff] %vm574_vm1, %v1110_v5  ;;  %v2276_v27 = vpop.eup %2275  ;;  %v2032_v9 = vadd.f32 %v2031_v50, %v1963_v42 }
 0x2d8   :  { %1116 = vst.msk [vmem:[#allocation7 + $0x158] sm:$0xff] %vm574_vm1, %v1111_v43  ;;  %v1272_v48 = vmul.f32 %v2274_v28, %v1271_v19  ;;  %v1461_v49 = vmul.f32 %v2276_v27, %v4010_v30  ;;  %v2010_v43 = vadd.f32 %v2009_v61, %v1941_v52  ;;  %v4042_v19 = vadd.f32 1e-05, %v1651_v16  ;;  %v4423_v52 = vld [vmem:[#allocation35_spill] sm:$0xff] }
 0x2d9   :  { %v2034_v33 = vmul.f32 0.00048828125, %v2032_v9  ;;  %vm1467_vm14 = vweird.f32 %v2276_v27  ;;  %v1857_v9 = vstv %s4077_s26 }
 0x2da   :  { %v1276_v37 = vsel %vm1275_vm13, %v2274_v28, %v1272_v48  ;;  %v1462_v57 = vmul.f32 %v2276_v27, %v1461_v49  ;;  %v4045_v56 = vmul.f32 0.00048828125, %v2010_v43  ;;  %2277 = vrsqrt.f32 %v4042_v19  ;;  %vm1468_vm0 = vmor %vm1466_vm15, %vm1467_vm14 }
 0x2db   :  { %v1279_v15 = vmul.f32 %v1278_v47, %v1276_v37  ;;  %v1471_v37 = vstv %s4036_s2  ;;  %vm1659_vm3 = vweird.f32 %v4042_v19  ;;  %v1664_v49 = vstv %s4065_s24 }
 0x2dc   :  { %v1463_v24 = vmul.f32 0.5, %v1462_v57  ;;  %v2035_v48 = vmul.f32 %v4045_v56, %v4045_v56 }
 0x2dd   :  { %v1281_v63 = vmul.f32 %v1279_v15, %v3935_v20  ;;  %v1284_v2 = vmul.f32 %v1279_v15, %v4414_v35  ;;  %v1285_v53 = vmul.f32 %v1279_v15, %v4415_v8  ;;  %v1286_v26 = vmul.f32 %v1279_v15, %v4416_v54 }
 0x2de   :  { %v1287_v29 = vmul.f32 %v1279_v15, %v4417_v44  ;;  %v1297_v39 = vmul.f32 %v1279_v15, %v4418_v21  ;;  %v1298_v7 = vmul.f32 %v1279_v15, %v4419_v36  ;;  %v4030_v20 = vmul.f32 0.00048828125, %v1817_v40  ;;  %v4426_v36 = vld [vmem:[#allocation11_spill] sm:$0xff] }
 0x2df   :  { %v1283_v31 = vsub.f32 %v1282_v38, %v1281_v63  ;;  %v1299_v23 = vmul.f32 %v1279_v15, %v4420_v1  ;;  %v1300_v34 = vmul.f32 %v1279_v15, %v4421_v13  ;;  %v1464_v10 = vsub.f32 1.5, %v1463_v24 }
 0x2e0   :  { %v1842_v5 = vmul.f32 %v4030_v20, %v4030_v20  ;;  %v2036_v51 = vsub.f32 %v2034_v33, %v2035_v48  ;;  %v2278_v59 = vpop.eup %2277  ;;  %v1475_v40 = vstv %s2177_s23 }
 0x2e1   :  { %v1288_v17 = vadd.f32 %v1284_v2, %v1283_v31  ;;  %v1289_v12 = vadd.f32 %v1285_v53, %v1283_v31  ;;  %v1290_v28 = vadd.f32 %v1286_v26, %v1283_v31  ;;  %v1291_v46 = vadd.f32 %v1287_v29, %v1283_v31  ;;  %v4422_v2 = vld [vmem:[#allocation40_spill] sm:$0xff]  ;;  %v4425_v26 = vld [vmem:[#allocation38_spill] sm:$0xff] }
 0x2e2   :  { %v1301_v58 = vadd.f32 %v1297_v39, %v1283_v31  ;;  %v1302_v62 = vadd.f32 %v1298_v7, %v1283_v31  ;;  %v1303_v22 = vadd.f32 %v1299_v23, %v1283_v31  ;;  %v1843_v47 = vsub.f32 %v1841_v18, %v1842_v5 }
 0x2e3   :  { %1293 = vst.msk [vmem:[#allocation7 + $0x60] sm:$0xff] %vm574_vm1, %v1288_v17  ;;  %v1304_v32 = vadd.f32 %v1300_v34, %v1283_v31  ;;  %v1465_v4 = vmul.f32 %v2276_v27, %v1464_v10  ;;  %v2037_v15 = vmax.f32 %v2036_v51, 0.0  ;;  %v1654_v11 = vmul.f32 %v2278_v59, %v4042_v19  ;;  %v4424_v31 = vld [vmem:[#allocation47_spill] sm:$0xff]  ;;  %v4427_v17 = vld [vmem:[#allocation13_spill] sm:$0xff] }
 0x2e4   :  { %1294 = vst.msk [vmem:[#allocation7 + $0x68] sm:$0xff] %vm574_vm1, %v1289_v12  ;;  %v1844_v55 = vmax.f32 %v1843_v47, 0.0  ;;  %vm1660_vm2 = vweird.f32 %v2278_v59  ;;  %v1668_v19 = vstv %s4073_s25  ;;  %v4430_v10 = vld [vmem:[#allocation33_spill] sm:$0xff]  ;;  %v4431_v51 = vld [vmem:[#allocation59_spill] sm:$0xff] }
 0x2e5   :  { %1295 = vst.msk [vmem:[#allocation7 + $0x70] sm:$0xff] %vm574_vm1, %v1290_v28  ;;  %v1469_v0 = vsel %vm1468_vm0, %v2276_v27, %v1465_v4  ;;  %v4060_v63 = vadd.f32 1e-05, %v2037_v15  ;;  %v1655_v53 = vmul.f32 %v2278_v59, %v1654_v11  ;;  %vm1661_vm5 = vmor %vm1659_vm3, %vm1660_vm2  ;;  %v4432_v15 = vld [vmem:[#allocation60_spill] sm:$0xff] }
 0x2e6   :  { %1296 = vst.msk [vmem:[#allocation7 + $0x78] sm:$0xff] %vm574_vm1, %v1291_v46  ;;  %v4053_v3 = vadd.f32 1e-05, %v1844_v55  ;;  %v1472_v38 = vmul.f32 %v1471_v37, %v1469_v0  ;;  %v4428_v46 = vld [vmem:[#allocation19_spill] sm:$0xff]  ;;  %v4433_v0 = vld [vmem:[#allocation17_spill] sm:$0xff] }
 0x2e7   :  { %1306 = vst.msk [vmem:[#allocation7 + $0x160] sm:$0xff] %vm574_vm1, %v1301_v58  ;;  %v1656_v61 = vmul.f32 0.5, %v1655_v53  ;;  %v4429_v55 = vld [vmem:[#allocation23_spill] sm:$0xff]  ;;  %v4436_v53 = vld [vmem:[#allocation32_spill] sm:$0xff]  ;;  %vm2045_vm9 = vweird.f32 %v4060_v63 }
 0x2e8   :  { %1307 = vst.msk [vmem:[#allocation7 + $0x168] sm:$0xff] %vm574_vm1, %v1302_v62  ;;  %2279 = vrsqrt.f32 %v4053_v3  ;;  %v1474_v25 = vmul.f32 %v1472_v38, %v3985_v14  ;;  %v1477_v60 = vmul.f32 %v1472_v38, %v4422_v2  ;;  %v1478_v30 = vmul.f32 %v1472_v38, %v4423_v52  ;;  %v4434_v2 = vld [vmem:[#allocation27_spill] sm:$0xff] }
 0x2e9   :  { %1308 = vst.msk [vmem:[#allocation7 + $0x170] sm:$0xff] %vm574_vm1, %v1303_v22  ;;  %v1479_v8 = vmul.f32 %v1472_v38, %v4424_v31  ;;  %v1480_v45 = vmul.f32 %v1472_v38, %v4425_v26  ;;  %2281 = vrsqrt.f32 %v4060_v63  ;;  %v1490_v21 = vmul.f32 %v1472_v38, %v3522_v6 }
 0x2ea   :  { %1309 = vst.msk [vmem:[#allocation7 + $0x178] sm:$0xff] %vm574_vm1, %v1304_v32  ;;  %v1476_v42 = vsub.f32 %v1475_v40, %v1474_v25  ;;  %v1491_v7 = vmul.f32 %v1472_v38, %v4426_v36  ;;  %v1492_v12 = vmul.f32 %v1472_v38, %v4427_v17  ;;  %v1493_v1 = vmul.f32 %v1472_v38, %v4428_v46 }
 0x2eb   :  { %v1657_v13 = vsub.f32 1.5, %v1656_v61  ;;  %vm1852_vm6 = vweird.f32 %v4053_v3  ;;  %v1861_v52 = vstv %s4093_s27  ;;  %v4440_v61 = vld [vmem:[#allocation62_spill] sm:$0xff] }
 0x2ec   :  { %v1481_v44 = vadd.f32 %v1477_v60, %v1476_v42  ;;  %v1482_v29 = vadd.f32 %v1478_v30, %v1476_v42  ;;  %v1483_v14 = vadd.f32 %v1479_v8, %v1476_v42  ;;  %v1484_v39 = vadd.f32 %v1480_v45, %v1476_v42  ;;  %v4435_v30 = vld [vmem:[#allocation28_spill] sm:$0xff] }
 0x2ed   :  { %v1494_v28 = vadd.f32 %v1490_v21, %v1476_v42  ;;  %v1495_v6 = vadd.f32 %v1491_v7, %v1476_v42  ;;  %v1496_v23 = vadd.f32 %v1492_v12, %v1476_v42  ;;  %v1497_v58 = vadd.f32 %v1493_v1, %v1476_v42  ;;  %v4439_v7 = vld [vmem:[#allocation61_spill] sm:$0xff] }
 0x2ee   :  { %v2280_v35 = vpop.eup %2279  ;;  %1486 = vst.msk [vmem:[#allocation7 + $0x80] sm:$0xff] %vm574_vm1, %v1481_v44  ;;  %v1658_v16 = vmul.f32 %v2278_v59, %v1657_v13 }
 0x2ef   :  { %v1847_v54 = vmul.f32 %v2280_v35, %v4053_v3  ;;  %1487 = vst.msk [vmem:[#allocation7 + $0x88] sm:$0xff] %vm574_vm1, %v1482_v29  ;;  %v4082_v18 = vpop.eup %2281  ;;  %vm1853_vm4 = vweird.f32 %v2280_v35  ;;  %v4437_v29 = vld [vmem:[#allocation18_spill] sm:$0xff] }
 0x2f0   :  { %1488 = vst.msk [vmem:[#allocation7 + $0x90] sm:$0xff] %vm574_vm1, %v1483_v14  ;;  %v2040_v62 = vmul.f32 %v4082_v18, %v4060_v63  ;;  %v1662_v22 = vsel %vm1661_vm5, %v2278_v59, %v1658_v16  ;;  %vm1854_vm7 = vmor %vm1852_vm6, %vm1853_vm4  ;;  %vm2046_vm8 = vweird.f32 %v4082_v18  ;;  %v4443_v16 = vld [vmem:[#allocation21_spill] sm:$0xff] }
 0x2f1   :  { %v1848_v27 = vmul.f32 %v2280_v35, %v1847_v54  ;;  %1489 = vst.msk [vmem:[#allocation7 + $0x98] sm:$0xff] %vm574_vm1, %v1484_v39  ;;  %v1665_v57 = vmul.f32 %v1664_v49, %v1662_v22  ;;  %v4438_v39 = vld [vmem:[#allocation36_spill] sm:$0xff]  ;;  %vm2047_vm10 = vmor %vm2045_vm9, %vm2046_vm8  ;;  %v2054_v22 = vstv %s4112_s28 }
 0x2f2   :  { %1499 = vst.msk [vmem:[#allocation7 + $0x180] sm:$0xff] %vm574_vm1, %v1494_v28  ;;  %v2041_v50 = vmul.f32 %v4082_v18, %v2040_v62  ;;  %v2050_v28 = vstv %s4103_s3 }
 0x2f3   :  { %v1849_v34 = vmul.f32 0.5, %v1848_v27  ;;  %1500 = vst.msk [vmem:[#allocation7 + $0x188] sm:$0xff] %vm574_vm1, %v1495_v6  ;;  %v1667_v32 = vmul.f32 %v1665_v57, %v4012_v41  ;;  %v1670_v48 = vmul.f32 %v1665_v57, %v4429_v55  ;;  %v1671_v3 = vmul.f32 %v1665_v57, %v4430_v10  ;;  %v4441_v6 = vld [vmem:[#allocation20_spill] sm:$0xff]  ;;  %v4446_v55 = vld [vmem:[#allocation46_spill] sm:$0xff] }
 0x2f4   :  { %1501 = vst.msk [vmem:[#allocation7 + $0x190] sm:$0xff] %vm574_vm1, %v1496_v23  ;;  %v2042_v24 = vmul.f32 0.5, %v2041_v50  ;;  %v1672_v4 = vmul.f32 %v1665_v57, %v4431_v51  ;;  %v1673_v59 = vmul.f32 %v1665_v57, %v4432_v15  ;;  %v1683_v38 = vmul.f32 %v1665_v57, %v4433_v0  ;;  %v4449_v15 = vld [vmem:[#allocation15_spill] sm:$0xff] }
 0x2f5   :  { %v1850_v5 = vsub.f32 1.5, %v1849_v34  ;;  %1502 = vst.msk [vmem:[#allocation7 + $0x198] sm:$0xff] %vm574_vm1, %v1497_v58  ;;  %v1669_v33 = vsub.f32 %v1668_v19, %v1667_v32  ;;  %v1684_v60 = vmul.f32 %v1665_v57, %v4434_v2  ;;  %v1685_v42 = vmul.f32 %v1665_v57, %v4435_v30  ;;  %v4442_v34 = vld [vmem:[#allocation14_spill] sm:$0xff]  ;;  %v4445_v32 = vld [vmem:[#allocation43_spill] sm:$0xff] }
 0x2f6   :  { %v2043_v41 = vsub.f32 1.5, %v2042_v24  ;;  %v1686_v54 = vmul.f32 %v1665_v57, %v4436_v53 }
 0x2f7   :  { %v1851_v43 = vmul.f32 %v2280_v35, %v1850_v5  ;;  %v1674_v11 = vadd.f32 %v1670_v48, %v1669_v33  ;;  %v1675_v40 = vadd.f32 %v1671_v3, %v1669_v33  ;;  %v1676_v25 = vadd.f32 %v1672_v4, %v1669_v33  ;;  %v4448_v3 = vld [vmem:[#allocation53_spill] sm:$0xff] }
 0x2f8   :  { %v1687_v31 = vadd.f32 %v1683_v38, %v1669_v33  ;;  %v1688_v26 = vadd.f32 %v1684_v60, %v1669_v33  ;;  %v1689_v45 = vadd.f32 %v1685_v42, %v1669_v33  ;;  %v2044_v21 = vmul.f32 %v4082_v18, %v2043_v41  ;;  %v4450_v38 = vld [vmem:[#allocation25_spill] sm:$0xff] }
 0x2f9   :  { %v1855_v47 = vsel %vm1854_vm7, %v2280_v35, %v1851_v43  ;;  %v1677_v35 = vadd.f32 %v1673_v59, %v1669_v33  ;;  %1679 = vst.msk [vmem:[#allocation7 + $0xa0] sm:$0xff] %vm574_vm1, %v1674_v11  ;;  %v4444_v43 = vld [vmem:[#allocation24_spill] sm:$0xff] }
 0x2fa   :  { %v1858_v37 = vmul.f32 %v1857_v9, %v1855_v47  ;;  %1680 = vst.msk [vmem:[#allocation7 + $0xa8] sm:$0xff] %vm574_vm1, %v1675_v40  ;;  %v2048_v13 = vsel %vm2047_vm10, %v4082_v18, %v2044_v21  ;;  %v4451_v40 = vld [vmem:[#allocation26_spill] sm:$0xff] }
 0x2fb   :  { %1681 = vst.msk [vmem:[#allocation7 + $0xb0] sm:$0xff] %vm574_vm1, %v1676_v25  ;;  %v2051_v49 = vmul.f32 %v2050_v28, %v2048_v13 }
 0x2fc   :  { %v1860_v8 = vmul.f32 %v1858_v37, %v4030_v20  ;;  %v1863_v14 = vmul.f32 %v1858_v37, %v4437_v29  ;;  %1682 = vst.msk [vmem:[#allocation7 + $0xb8] sm:$0xff] %vm574_vm1, %v1677_v35  ;;  %v1690_v20 = vadd.f32 %v1686_v54, %v1669_v33  ;;  %v1864_v36 = vmul.f32 %v1858_v37, %v4438_v39  ;;  %v4447_v33 = vld [vmem:[#allocation50_spill] sm:$0xff]  ;;  %v4452_v35 = vld [vmem:[#allocation31_spill] sm:$0xff] }
 0x2fd   :  { %1692 = vst.msk [vmem:[#allocation7 + $0x1a0] sm:$0xff] %vm574_vm1, %v1687_v31  ;;  %v1865_v17 = vmul.f32 %v1858_v37, %v4439_v7  ;;  %v1866_v27 = vmul.f32 %v1858_v37, %v4440_v61  ;;  %v1876_v23 = vmul.f32 %v1858_v37, %v4441_v6  ;;  %v1877_v58 = vmul.f32 %v1858_v37, %v4442_v34 }
 0x2fe   :  { %v1862_v44 = vsub.f32 %v1861_v52, %v1860_v8  ;;  %1693 = vst.msk [vmem:[#allocation7 + $0x1a8] sm:$0xff] %vm574_vm1, %v1688_v26  ;;  %v1878_v5 = vmul.f32 %v1858_v37, %v4443_v16  ;;  %v1879_v50 = vmul.f32 %v1858_v37, %v4444_v43  ;;  %v2053_v19 = vmul.f32 %v2051_v49, %v4045_v56 }
 0x2ff   :  { %1694 = vst.msk [vmem:[#allocation7 + $0x1b0] sm:$0xff] %vm574_vm1, %v1689_v45  ;;  %v2056_v24 = vmul.f32 %v2051_v49, %v4445_v32  ;;  %v2057_v48 = vmul.f32 %v2051_v49, %v4446_v55  ;;  %v2058_v10 = vmul.f32 %v2051_v49, %v4447_v33  ;;  %v2059_v51 = vmul.f32 %v2051_v49, %v4448_v3 }
 0x300   :  { %v1867_v12 = vadd.f32 %v1863_v14, %v1862_v44  ;;  %v1868_v46 = vadd.f32 %v1864_v36, %v1862_v44  ;;  %v1869_v1 = vadd.f32 %v1865_v17, %v1862_v44  ;;  %1695 = vst.msk [vmem:[#allocation7 + $0x1b8] sm:$0xff] %vm574_vm1, %v1690_v20  ;;  %v1870_v63 = vadd.f32 %v1866_v27, %v1862_v44 }
 0x301   :  { %v1880_v62 = vadd.f32 %v1876_v23, %v1862_v44  ;;  %v1881_v57 = vadd.f32 %v1877_v58, %v1862_v44  ;;  %v1882_v18 = vadd.f32 %v1878_v5, %v1862_v44  ;;  %v1883_v47 = vadd.f32 %v1879_v50, %v1862_v44 }
 0x302   :  { %1872 = vst.msk [vmem:[#allocation7 + $0xc0] sm:$0xff] %vm574_vm1, %v1867_v12  ;;  %v2055_v9 = vsub.f32 %v2054_v22, %v2053_v19  ;;  %v2069_v59 = vmul.f32 %v2051_v49, %v4449_v15  ;;  %v2070_v11 = vmul.f32 %v2051_v49, %v4450_v38  ;;  %v2071_v25 = vmul.f32 %v2051_v49, %v4451_v40 }
 0x303   :  { %1873 = vst.msk [vmem:[#allocation7 + $0xc8] sm:$0xff] %vm574_vm1, %v1868_v46  ;;  %v2072_v2 = vmul.f32 %v2051_v49, %v4452_v35 }
 0x304   :  { %1874 = vst.msk [vmem:[#allocation7 + $0xd0] sm:$0xff] %vm574_vm1, %v1869_v1  ;;  %v2060_v56 = vadd.f32 %v2056_v24, %v2055_v9  ;;  %v2061_v4 = vadd.f32 %v2057_v48, %v2055_v9  ;;  %v2062_v37 = vadd.f32 %v2058_v10, %v2055_v9  ;;  %v2063_v0 = vadd.f32 %v2059_v51, %v2055_v9 }
 0x305   :  { %1875 = vst.msk [vmem:[#allocation7 + $0xd8] sm:$0xff] %vm574_vm1, %v1870_v63  ;;  %v2073_v41 = vadd.f32 %v2069_v59, %v2055_v9  ;;  %v2074_v60 = vadd.f32 %v2070_v11, %v2055_v9  ;;  %v2075_v52 = vadd.f32 %v2071_v25, %v2055_v9  ;;  %v2076_v30 = vadd.f32 %v2072_v2, %v2055_v9 }
 0x306   :  { %1885 = vst.msk [vmem:[#allocation7 + $0x1c0] sm:$0xff] %vm574_vm1, %v1880_v62 }
 0x307   :  { %1886 = vst.msk [vmem:[#allocation7 + $0x1c8] sm:$0xff] %vm574_vm1, %v1881_v57 }
 0x308   :  { %1887 = vst.msk [vmem:[#allocation7 + $0x1d0] sm:$0xff] %vm574_vm1, %v1882_v18 }
 0x309   :  { %1888 = vst.msk [vmem:[#allocation7 + $0x1d8] sm:$0xff] %vm574_vm1, %v1883_v47 }
 0x30a   :  { %2065 = vst.msk [vmem:[#allocation7 + $0xe0] sm:$0xff] %vm574_vm1, %v2060_v56 }
 0x30b   :  { %2066 = vst.msk [vmem:[#allocation7 + $0xe8] sm:$0xff] %vm574_vm1, %v2061_v4 }
 0x30c   :  { %2067 = vst.msk [vmem:[#allocation7 + $0xf0] sm:$0xff] %vm574_vm1, %v2062_v37 }
 0x30d   :  { %2068 = vst.msk [vmem:[#allocation7 + $0xf8] sm:$0xff] %vm574_vm1, %v2063_v0 }
 0x30e   :  { %2078 = vst.msk [vmem:[#allocation7 + $0x1e0] sm:$0xff] %vm574_vm1, %v2073_v41 }
 0x30f   :  { %2079 = vst.msk [vmem:[#allocation7 + $0x1e8] sm:$0xff] %vm574_vm1, %v2074_v60 }
 0x310   :  { %2080 = vst.msk [vmem:[#allocation7 + $0x1f0] sm:$0xff] %vm574_vm1, %v2075_v52 }
 0x311   :  { %2081 = vst.msk [vmem:[#allocation7 + $0x1f8] sm:$0xff] %vm574_vm1, %v2076_v30 }
 0x312   :  { %2094 = dma.vmem_to_hbm [thread:$0]  %s2087_s29, 8192, %s2089_s7, [#allocation3], %s2340_s8, %s2340_s8, %s2341_s1  }
 0x313   :  { %2335 = dma.done.wait [#allocation3], 8192  }
 0x314   :  { %2336 = vsyncadd [#allocation3], 4294959104 }
 0x315   :  { %2099 = vsyncpa [#allocation3], 1 }
 0x316   :  { %2100 = vsyncpa [#allocation4], 1 }
 0x317   :  { %2101 = vsyncpa [#allocation6], 1 }

</bundles_post_ra>
